<compile_context>
chip_gen: v5e
topology: v5e:2x2
jax: 0.10.0
libtpu: 0.0.40
codegen_flags: <defaults>
</compile_context>

<pallas_src>
import jax
import jax.numpy as jnp
from jax.experimental import pallas as pl
from jax.experimental.pallas import tpu as pltpu

LANE = 128                # lane width / gate-block alignment
SUBLANE = 8               # sublane (row) granularity
_STATIC_UNROLL_T = 32     # fully unroll the time loop at trace time up to this length


def _round_up(n, m):
    return (n + m - 1) // m * m


# ----------------------------- fused LSTM-net kernel -------------------------
def _make_fused_kernel(num_layers, T, Bp, Hp):
    """Kernel refs: [x, (w_ih, w_hh, b) * L, w_cls, b_cls] + [out] + [xg_sc, hseq_sc]."""

    def kernel(*refs):
        x_ref = refs[0]
        layer_refs = refs[1:1 + 3 * num_layers]
        wcls_ref = refs[1 + 3 * num_layers]
        bcls_ref = refs[2 + 3 * num_layers]
        out_ref = refs[3 + 3 * num_layers]
        xg_ref = refs[4 + 3 * num_layers]     # (T*Bp, 4*Hp): hoisted input projection
        hseq_ref = refs[5 + 3 * num_layers]   # (T*Bp, Hp):   inter-layer hidden sequence

        h_final = jnp.zeros((Bp, Hp), jnp.float32)

        for l in range(num_layers):
            wih_ref = layer_refs[3 * l + 0]
            whh_ref = layer_refs[3 * l + 1]
            b_ref = layer_refs[3 * l + 2]

            # ---- hoisted, time-independent input projection: one big MXU matmul ----
            xin = x_ref[...] if l == 0 else hseq_ref[...]
            xg_ref[...] = (
                jnp.dot(xin, wih_ref[...], preferred_element_type=jnp.float32)
                + b_ref[...]
            )

            write_hseq = l < num_layers - 1   # last layer only needs its final h

            def step(t, carry, _whh_ref=whh_ref, _write=write_hseq):
                h, c = carry
                if isinstance(t, int):
                    row = t * Bp
                else:
                    row = pl.multiple_of(t * Bp, Bp)
                # Single small recurrent matmul per step (x-projection + bias already folded in).
                gates = xg_ref[pl.ds(row, Bp), :] + jnp.dot(
                    h, _whh_ref[...], preferred_element_type=jnp.float32)
                # Lane-aligned gate slices (each gate block is Hp = k*128 wide).
                i_g = jax.nn.sigmoid(gates[:, 0 * Hp:1 * Hp])
                f_g = jax.nn.sigmoid(gates[:, 1 * Hp:2 * Hp])
                g_g = jnp.tanh(gates[:, 2 * Hp:3 * Hp])
                o_g = jax.nn.sigmoid(gates[:, 3 * Hp:4 * Hp])
                c_new = f_g * c + i_g * g_g
                h_new = o_g * jnp.tanh(c_new)
                if _write:
                    hseq_ref[pl.ds(row, Bp), :] = h_new
                return (h_new, c_new)

            carry = (jnp.zeros((Bp, Hp), jnp.float32),
                     jnp.zeros((Bp, Hp), jnp.float32))
            if T <= _STATIC_UNROLL_T:
                for t in range(T):            # static unroll: every slice is static
                    carry = step(t, carry)
            else:
                carry = jax.lax.fori_loop(0, T, step, carry)
            h_final = carry[0]

        # ---- fused classifier: Dropout(eval)=identity, Linear(H,1) + Sigmoid ----
        # Output is a lane-dense (Bp, 128) slab; column 0 is the real logit.
        logits = (jnp.dot(h_final, wcls_ref[...], preferred_element_type=jnp.float32)
                  + bcls_ref[...])
        out_ref[...] = jax.nn.sigmoid(logits)

    return kernel


def _fused_lstm_net(x_flat, kparams, *, T, Bp, Hp):
    layers = kparams["layers"]
    num_layers = len(layers)

    args = [x_flat]
    for lyr in layers:
        args += [lyr["w_ih"], lyr["w_hh"], lyr["b"]]
    args += [kparams["cls_w"], kparams["cls_b"]]

    scratch = [
        pltpu.VMEM((T * Bp, 4 * Hp), jnp.float32),   # hoisted x-projection gates
        pltpu.VMEM((T * Bp, Hp), jnp.float32),       # hidden sequence between layers
    ]

    # VMEM budget: inputs + scratch + output with 2x headroom, clamped to v7x's 64 MiB.
    vmem_bytes = sum(int(a.size) * a.dtype.itemsize for a in args)
    vmem_bytes += (T * Bp * 4 * Hp + T * Bp * Hp + Bp * LANE) * 4
    vmem_limit = int(min(64 * 1024 * 1024, max(16 * 1024 * 1024, 2 * vmem_bytes)))

    return pl.pallas_call(
        _make_fused_kernel(num_layers, T, Bp, Hp),
        out_shape=jax.ShapeDtypeStruct((Bp, LANE), jnp.float32),
        in_specs=[pl.BlockSpec(memory_space=pltpu.MemorySpace.VMEM)] * len(args),
        out_specs=pl.BlockSpec(memory_space=pltpu.MemorySpace.VMEM),
        scratch_shapes=scratch,
        compiler_params=pltpu.CompilerParams(vmem_limit_bytes=vmem_limit),
    )(*args)


# ----------------------------- full forward ----------------------------------
@jax.jit
def lstm_net_forward(token_ids, kparams):
    """token_ids: (B, T) int32. Returns (B, 1) float32, matching LSTM_Net.forward (eval)."""
    B, T = token_ids.shape
    emb = kparams["embedding"]                       # (V, Ep) column-padded table
    Ep = emb.shape[1]
    Hp = kparams["layers"][0]["w_hh"].shape[0]
    Bp = max(SUBLANE, _round_up(B, SUBLANE))

    # Embedding gather stays in XLA (table is tiny here); for a large vocab this would
    # become a scalar-prefetched pl.Element row-gather kernel overlapping layer 0.
    x = jnp.take(emb, token_ids, axis=0)             # (B, T, Ep)
    x = jnp.transpose(x, (1, 0, 2))                  # (T, B, Ep)  time-major
    x = jnp.pad(x, ((0, 0), (0, Bp - B), (0, 0)))    # (T, Bp, Ep) sublane-padded batch
    x = x.reshape(T * Bp, Ep)                        # row = t*Bp + b

    out = _fused_lstm_net(x, kparams, T=T, Bp=Bp, Hp=Hp)   # (Bp, 128)
    return out[:B, :1]


# ----------------------------- param preparation -----------------------------
def _pad_gates(w_t, H, Hp, rows_p):
    """w_t: (rows, 4H), torch gate order i,f,g,o -> (rows_p, 4Hp) with each gate block
    placed at a 128-lane-aligned offset k*Hp; all padding is exact zeros."""
    rows = w_t.shape[0]
    out = jnp.zeros((rows_p, 4 * Hp), jnp.float32)
    for k in range(4):
        out = out.at[:rows, k * Hp:k * Hp + H].set(w_t[:, k * H:(k + 1) * H])
    return out


def prepare_kernel_params(raw):
    """Pre-transpose and zero-pad raw torch-layout params into the kernel layout."""
    emb = raw["embedding"]
    E = emb.shape[1]
    H = raw["lstm"][0]["w_hh"].shape[1]
    Ep = _round_up(E, LANE)
    Hp = _round_up(H, LANE)

    kp = {
        "embedding": jnp.pad(emb.astype(jnp.float32), ((0, 0), (0, Ep - E))),
        "layers": [],
    }
    in_p = Ep
    for lyr in raw["lstm"]:
        w_ih_t = lyr["w_ih"].T                      # (in_dim, 4H)
        w_hh_t = lyr["w_hh"].T                      # (H, 4H)
        bias = (lyr["b_ih"] + lyr["b_hh"])[None, :]  # (1, 4H) combined bias
        kp["layers"].append({
            "w_ih": _pad_gates(w_ih_t, H, Hp, in_p),   # (in_p, 4Hp)
            "w_hh": _pad_gates(w_hh_t, H, Hp, Hp),     # (Hp, 4Hp)
            "b": _pad_gates(bias, H, Hp, 1),           # (1, 4Hp)
        })
        in_p = Hp

    # Classifier: Linear(H, 1) -> lane-dense (Hp, 128) weight, column 0 is the real unit.
    w_cls = raw["cls_w"]                            # (1, H)
    b_cls = raw["cls_b"]                            # (1,)
    kp["cls_w"] = jnp.zeros((Hp, LANE), jnp.float32).at[:H, 0].set(w_cls[0])
    kp["cls_b"] = jnp.zeros((1, LANE), jnp.float32).at[0, 0].set(b_cls[0])
    return kp


# ----------------------------- pure-JAX reference ----------------------------
def lstm_net_reference(token_ids, raw):
    x = jnp.take(raw["embedding"], token_ids, axis=0)   # (B, T, E)
    B = x.shape[0]
    for lyr in raw["lstm"]:
        w_ih, w_hh = lyr["w_ih"], lyr["w_hh"]
        b = lyr["b_ih"] + lyr["b_hh"]
        H = w_hh.shape[1]

        def step(carry, xt):
            h, c = carry
            gates = xt @ w_ih.T + h @ w_hh.T + b
            i = jax.nn.sigmoid(gates[:, 0 * H:1 * H])
            f = jax.nn.sigmoid(gates[:, 1 * H:2 * H])
            g = jnp.tanh(gates[:, 2 * H:3 * H])
            o = jax.nn.sigmoid(gates[:, 3 * H:4 * H])
            c = f * c + i * g
            h = o * jnp.tanh(c)
            return (h, c), h

        h0 = jnp.zeros((B, H), jnp.float32)
        (_, _), hs = jax.lax.scan(step, (h0, h0), jnp.transpose(x, (1, 0, 2)))
        x = jnp.transpose(hs, (1, 0, 2))
    x_last = x[:, -1, :]
    return jax.nn.sigmoid(x_last @ raw["cls_w"].T + raw["cls_b"])


# ----------------------------- param init (torch layout) ---------------------
def init_params(key, vocab, embed_dim, hidden_dim, num_layers):
    keys = jax.random.split(key, 3 + 4 * num_layers)
    it = iter(keys)
    scale = 1.0 / jnp.sqrt(jnp.float32(hidden_dim))

    params = {
        "embedding": jax.random.normal(next(it), (vocab, embed_dim), jnp.float32) * 0.1,
        "lstm": [],
    }
    in_dim = embed_dim
    for _ in range(num_layers):
        params["lstm"].append({
            "w_ih": jax.random.uniform(next(it), (4 * hidden_dim, in_dim), jnp.float32, -scale, scale),
            "w_hh": jax.random.uniform(next(it), (4 * hidden_dim, hidden_dim), jnp.float32, -scale, scale),
            "b_ih": jax.random.uniform(next(it), (4 * hidden_dim,), jnp.float32, -scale, scale),
            "b_hh": jax.random.uniform(next(it), (4 * hidden_dim,), jnp.float32, -scale, scale),
        })
        in_dim = hidden_dim

    params["cls_w"] = jax.random.uniform(next(it), (1, hidden_dim), jnp.float32, -scale, scale)
    params["cls_b"] = jax.random.uniform(next(it), (1,), jnp.float32, -scale, scale)
    return params


# ----------------------------- main -------------------------------------------
if __name__ == "__main__":
    B, T = 2, 8
    VOCAB, EMBED_DIM, HIDDEN_DIM, NUM_LAYERS = 100, 32, 32, 2

    key = jax.random.PRNGKey(0)
    k_param, k_tok = jax.random.split(key)
    raw_params = init_params(k_param, VOCAB, EMBED_DIM, HIDDEN_DIM, NUM_LAYERS)
    token_ids = jax.random.randint(k_tok, (B, T), 0, VOCAB, dtype=jnp.int32)

    kernel_params = prepare_kernel_params(raw_params)

    out = lstm_net_forward(token_ids, kernel_params)
    out = jax.block_until_ready(out)

    ref = lstm_net_reference(token_ids, raw_params)
    assert out.shape == (B, 1), out.shape
    assert jnp.allclose(out, ref, atol=1e-5, rtol=1e-5), (out, ref)

    print("KERNEL_OK")
</pallas_src>

<mosaic_0001>
module attributes {stable_mosaic.version = 11 : i64} {
  func.func @kernel(%arg0: memref<64x128xf32, #tpu.memory_space<vmem>>, %arg1: memref<128x512xf32, #tpu.memory_space<vmem>>, %arg2: memref<128x512xf32, #tpu.memory_space<vmem>>, %arg3: memref<1x512xf32, #tpu.memory_space<vmem>>, %arg4: memref<128x512xf32, #tpu.memory_space<vmem>>, %arg5: memref<128x512xf32, #tpu.memory_space<vmem>>, %arg6: memref<1x512xf32, #tpu.memory_space<vmem>>, %arg7: memref<128x128xf32, #tpu.memory_space<vmem>>, %arg8: memref<1x128xf32, #tpu.memory_space<vmem>>, %arg9: memref<8x128xf32, #tpu.memory_space<vmem>>, %arg10: memref<64x512xf32, #tpu.memory_space<vmem>>, %arg11: memref<64x128xf32, #tpu.memory_space<vmem>>) attributes {dimension_semantics = [], scalar_prefetch = 0 : i64, scratch_operands = 2 : i64, tpu.core_type = #tpu.core_type<tc>} {
    %c0 = arith.constant 0 : index
    %c0_0 = arith.constant 0 : index
    %0 = vector.load %arg0[%c0, %c0_0] : memref<64x128xf32, #tpu.memory_space<vmem>>, vector<64x128xf32>
    %c0_1 = arith.constant 0 : index
    %c0_2 = arith.constant 0 : index
    %1 = vector.load %arg1[%c0_1, %c0_2] : memref<128x512xf32, #tpu.memory_space<vmem>>, vector<128x512xf32>
    %cst = arith.constant dense<0.000000e+00> : vector<64x512xf32>
    %2 = tpu.matmul %0, %1, %cst {dimension_numbers = #tpu.dot_dimension_numbers<[1], [0], [0], [1], [0, 0, 1, 1], [], []>} : vector<64x128xf32>, vector<128x512xf32>, vector<64x512xf32> -> vector<64x512xf32>
    %c0_3 = arith.constant 0 : index
    %c0_4 = arith.constant 0 : index
    %3 = vector.load %arg3[%c0_3, %c0_4] : memref<1x512xf32, #tpu.memory_space<vmem>>, vector<1x512xf32>
    %4 = vector.broadcast %3 : vector<1x512xf32> to vector<64x512xf32>
    %5 = arith.addf %2, %4 : vector<64x512xf32>
    %c0_5 = arith.constant 0 : index
    %c0_6 = arith.constant 0 : index
    %6 = vector.load %arg10[%c0_5, %c0_6] : memref<64x512xf32, #tpu.memory_space<vmem>>, vector<64x512xf32>
    tpu.vector_store %arg10[%c0_5, %c0_6], %5 {strides = array<i32>} : memref<64x512xf32, #tpu.memory_space<vmem>>, vector<64x512xf32>,
    %cst_7 = arith.constant 0.000000e+00 : f32
    %7 = vector.broadcast %cst_7 : f32 to vector<8x128xf32>
    %cst_8 = arith.constant 0.000000e+00 : f32
    %8 = vector.broadcast %cst_8 : f32 to vector<8x128xf32>
    %c0_9 = arith.constant 0 : index
    %c0_10 = arith.constant 0 : index
    %9 = vector.load %arg10[%c0_9, %c0_10] : memref<64x512xf32, #tpu.memory_space<vmem>>, vector<8x512xf32>
    %c0_11 = arith.constant 0 : index
    %c0_12 = arith.constant 0 : index
    %10 = vector.load %arg2[%c0_11, %c0_12] : memref<128x512xf32, #tpu.memory_space<vmem>>, vector<128x512xf32>
    %cst_13 = arith.constant dense<0.000000e+00> : vector<8x512xf32>
    %11 = tpu.matmul %7, %10, %cst_13 {dimension_numbers = #tpu.dot_dimension_numbers<[1], [0], [0], [1], [0, 0, 1, 1], [], []>} : vector<8x128xf32>, vector<128x512xf32>, vector<8x512xf32> -> vector<8x512xf32>
    %12 = arith.addf %9, %11 : vector<8x512xf32>
    %13 = vector.extract_strided_slice %12 {offsets = [0, 0], sizes = [8, 128], strides = [1, 1]} : vector<8x512xf32> to vector<8x128xf32>
    %14 = arith.negf %13 : vector<8x128xf32>
    %15 = math.exp %14 : vector<8x128xf32>
    %cst_14 = arith.constant 1.000000e+00 : f32
    %16 = vector.broadcast %cst_14 : f32 to vector<8x128xf32>
    %17 = arith.addf %16, %15 : vector<8x128xf32>
    %18 = arith.divf %16, %17 : vector<8x128xf32>
    %19 = vector.extract_strided_slice %12 {offsets = [0, 128], sizes = [8, 128], strides = [1, 1]} : vector<8x512xf32> to vector<8x128xf32>
    %20 = arith.negf %19 : vector<8x128xf32>
    %21 = math.exp %20 : vector<8x128xf32>
    %cst_15 = arith.constant 1.000000e+00 : f32
    %22 = vector.broadcast %cst_15 : f32 to vector<8x128xf32>
    %23 = arith.addf %22, %21 : vector<8x128xf32>
    %24 = arith.divf %22, %23 : vector<8x128xf32>
    %25 = vector.extract_strided_slice %12 {offsets = [0, 256], sizes = [8, 128], strides = [1, 1]} : vector<8x512xf32> to vector<8x128xf32>
    %26 = math.tanh %25 : vector<8x128xf32>
    %27 = vector.extract_strided_slice %12 {offsets = [0, 384], sizes = [8, 128], strides = [1, 1]} : vector<8x512xf32> to vector<8x128xf32>
    %28 = arith.negf %27 : vector<8x128xf32>
    %29 = math.exp %28 : vector<8x128xf32>
    %cst_16 = arith.constant 1.000000e+00 : f32
    %30 = vector.broadcast %cst_16 : f32 to vector<8x128xf32>
    %31 = arith.addf %30, %29 : vector<8x128xf32>
    %32 = arith.divf %30, %31 : vector<8x128xf32>
    %33 = arith.mulf %24, %8 : vector<8x128xf32>
    %34 = arith.mulf %18, %26 : vector<8x128xf32>
    %35 = arith.addf %33, %34 : vector<8x128xf32>
    %36 = math.tanh %35 : vector<8x128xf32>
    %37 = arith.mulf %32, %36 : vector<8x128xf32>
    %c0_17 = arith.constant 0 : index
    %c0_18 = arith.constant 0 : index
    %38 = vector.load %arg11[%c0_17, %c0_18] : memref<64x128xf32, #tpu.memory_space<vmem>>, vector<8x128xf32>
    tpu.vector_store %arg11[%c0_17, %c0_18], %37 {strides = array<i32>} : memref<64x128xf32, #tpu.memory_space<vmem>>, vector<8x128xf32>,
    %c8 = arith.constant 8 : index
    %c0_19 = arith.constant 0 : index
    %39 = vector.load %arg10[%c8, %c0_19] : memref<64x512xf32, #tpu.memory_space<vmem>>, vector<8x512xf32>
    %c0_20 = arith.constant 0 : index
    %c0_21 = arith.constant 0 : index
    %40 = vector.load %arg2[%c0_20, %c0_21] : memref<128x512xf32, #tpu.memory_space<vmem>>, vector<128x512xf32>
    %cst_22 = arith.constant dense<0.000000e+00> : vector<8x512xf32>
    %41 = tpu.matmul %37, %40, %cst_22 {dimension_numbers = #tpu.dot_dimension_numbers<[1], [0], [0], [1], [0, 0, 1, 1], [], []>} : vector<8x128xf32>, vector<128x512xf32>, vector<8x512xf32> -> vector<8x512xf32>
    %42 = arith.addf %39, %41 : vector<8x512xf32>
    %43 = vector.extract_strided_slice %42 {offsets = [0, 0], sizes = [8, 128], strides = [1, 1]} : vector<8x512xf32> to vector<8x128xf32>
    %44 = arith.negf %43 : vector<8x128xf32>
    %45 = math.exp %44 : vector<8x128xf32>
    %cst_23 = arith.constant 1.000000e+00 : f32
    %46 = vector.broadcast %cst_23 : f32 to vector<8x128xf32>
    %47 = arith.addf %46, %45 : vector<8x128xf32>
    %48 = arith.divf %46, %47 : vector<8x128xf32>
    %49 = vector.extract_strided_slice %42 {offsets = [0, 128], sizes = [8, 128], strides = [1, 1]} : vector<8x512xf32> to vector<8x128xf32>
    %50 = arith.negf %49 : vector<8x128xf32>
    %51 = math.exp %50 : vector<8x128xf32>
    %cst_24 = arith.constant 1.000000e+00 : f32
    %52 = vector.broadcast %cst_24 : f32 to vector<8x128xf32>
    %53 = arith.addf %52, %51 : vector<8x128xf32>
    %54 = arith.divf %52, %53 : vector<8x128xf32>
    %55 = vector.extract_strided_slice %42 {offsets = [0, 256], sizes = [8, 128], strides = [1, 1]} : vector<8x512xf32> to vector<8x128xf32>
    %56 = math.tanh %55 : vector<8x128xf32>
    %57 = vector.extract_strided_slice %42 {offsets = [0, 384], sizes = [8, 128], strides = [1, 1]} : vector<8x512xf32> to vector<8x128xf32>
    %58 = arith.negf %57 : vector<8x128xf32>
    %59 = math.exp %58 : vector<8x128xf32>
    %cst_25 = arith.constant 1.000000e+00 : f32
    %60 = vector.broadcast %cst_25 : f32 to vector<8x128xf32>
    %61 = arith.addf %60, %59 : vector<8x128xf32>
    %62 = arith.divf %60, %61 : vector<8x128xf32>
    %63 = arith.mulf %54, %35 : vector<8x128xf32>
    %64 = arith.mulf %48, %56 : vector<8x128xf32>
    %65 = arith.addf %63, %64 : vector<8x128xf32>
    %66 = math.tanh %65 : vector<8x128xf32>
    %67 = arith.mulf %62, %66 : vector<8x128xf32>
    %c8_26 = arith.constant 8 : index
    %c0_27 = arith.constant 0 : index
    %68 = vector.load %arg11[%c8_26, %c0_27] : memref<64x128xf32, #tpu.memory_space<vmem>>, vector<8x128xf32>
    tpu.vector_store %arg11[%c8_26, %c0_27], %67 {strides = array<i32>} : memref<64x128xf32, #tpu.memory_space<vmem>>, vector<8x128xf32>,
    %c16 = arith.constant 16 : index
    %c0_28 = arith.constant 0 : index
    %69 = vector.load %arg10[%c16, %c0_28] : memref<64x512xf32, #tpu.memory_space<vmem>>, vector<8x512xf32>
    %c0_29 = arith.constant 0 : index
    %c0_30 = arith.constant 0 : index
    %70 = vector.load %arg2[%c0_29, %c0_30] : memref<128x512xf32, #tpu.memory_space<vmem>>, vector<128x512xf32>
    %cst_31 = arith.constant dense<0.000000e+00> : vector<8x512xf32>
    %71 = tpu.matmul %67, %70, %cst_31 {dimension_numbers = #tpu.dot_dimension_numbers<[1], [0], [0], [1], [0, 0, 1, 1], [], []>} : vector<8x128xf32>, vector<128x512xf32>, vector<8x512xf32> -> vector<8x512xf32>
    %72 = arith.addf %69, %71 : vector<8x512xf32>
    %73 = vector.extract_strided_slice %72 {offsets = [0, 0], sizes = [8, 128], strides = [1, 1]} : vector<8x512xf32> to vector<8x128xf32>
    %74 = arith.negf %73 : vector<8x128xf32>
    %75 = math.exp %74 : vector<8x128xf32>
    %cst_32 = arith.constant 1.000000e+00 : f32
    %76 = vector.broadcast %cst_32 : f32 to vector<8x128xf32>
    %77 = arith.addf %76, %75 : vector<8x128xf32>
    %78 = arith.divf %76, %77 : vector<8x128xf32>
    %79 = vector.extract_strided_slice %72 {offsets = [0, 128], sizes = [8, 128], strides = [1, 1]} : vector<8x512xf32> to vector<8x128xf32>
    %80 = arith.negf %79 : vector<8x128xf32>
    %81 = math.exp %80 : vector<8x128xf32>
    %cst_33 = arith.constant 1.000000e+00 : f32
    %82 = vector.broadcast %cst_33 : f32 to vector<8x128xf32>
    %83 = arith.addf %82, %81 : vector<8x128xf32>
    %84 = arith.divf %82, %83 : vector<8x128xf32>
    %85 = vector.extract_strided_slice %72 {offsets = [0, 256], sizes = [8, 128], strides = [1, 1]} : vector<8x512xf32> to vector<8x128xf32>
    %86 = math.tanh %85 : vector<8x128xf32>
    %87 = vector.extract_strided_slice %72 {offsets = [0, 384], sizes = [8, 128], strides = [1, 1]} : vector<8x512xf32> to vector<8x128xf32>
    %88 = arith.negf %87 : vector<8x128xf32>
    %89 = math.exp %88 : vector<8x128xf32>
    %cst_34 = arith.constant 1.000000e+00 : f32
    %90 = vector.broadcast %cst_34 : f32 to vector<8x128xf32>
    %91 = arith.addf %90, %89 : vector<8x128xf32>
    %92 = arith.divf %90, %91 : vector<8x128xf32>
    %93 = arith.mulf %84, %65 : vector<8x128xf32>
    %94 = arith.mulf %78, %86 : vector<8x128xf32>
    %95 = arith.addf %93, %94 : vector<8x128xf32>
    %96 = math.tanh %95 : vector<8x128xf32>
    %97 = arith.mulf %92, %96 : vector<8x128xf32>
    %c16_35 = arith.constant 16 : index
    %c0_36 = arith.constant 0 : index
    %98 = vector.load %arg11[%c16_35, %c0_36] : memref<64x128xf32, #tpu.memory_space<vmem>>, vector<8x128xf32>
    tpu.vector_store %arg11[%c16_35, %c0_36], %97 {strides = array<i32>} : memref<64x128xf32, #tpu.memory_space<vmem>>, vector<8x128xf32>,
    %c24 = arith.constant 24 : index
    %c0_37 = arith.constant 0 : index
    %99 = vector.load %arg10[%c24, %c0_37] : memref<64x512xf32, #tpu.memory_space<vmem>>, vector<8x512xf32>
    %c0_38 = arith.constant 0 : index
    %c0_39 = arith.constant 0 : index
    %100 = vector.load %arg2[%c0_38, %c0_39] : memref<128x512xf32, #tpu.memory_space<vmem>>, vector<128x512xf32>
    %cst_40 = arith.constant dense<0.000000e+00> : vector<8x512xf32>
    %101 = tpu.matmul %97, %100, %cst_40 {dimension_numbers = #tpu.dot_dimension_numbers<[1], [0], [0], [1], [0, 0, 1, 1], [], []>} : vector<8x128xf32>, vector<128x512xf32>, vector<8x512xf32> -> vector<8x512xf32>
    %102 = arith.addf %99, %101 : vector<8x512xf32>
    %103 = vector.extract_strided_slice %102 {offsets = [0, 0], sizes = [8, 128], strides = [1, 1]} : vector<8x512xf32> to vector<8x128xf32>
    %104 = arith.negf %103 : vector<8x128xf32>
    %105 = math.exp %104 : vector<8x128xf32>
    %cst_41 = arith.constant 1.000000e+00 : f32
    %106 = vector.broadcast %cst_41 : f32 to vector<8x128xf32>
    %107 = arith.addf %106, %105 : vector<8x128xf32>
    %108 = arith.divf %106, %107 : vector<8x128xf32>
    %109 = vector.extract_strided_slice %102 {offsets = [0, 128], sizes = [8, 128], strides = [1, 1]} : vector<8x512xf32> to vector<8x128xf32>
    %110 = arith.negf %109 : vector<8x128xf32>
    %111 = math.exp %110 : vector<8x128xf32>
    %cst_42 = arith.constant 1.000000e+00 : f32
    %112 = vector.broadcast %cst_42 : f32 to vector<8x128xf32>
    %113 = arith.addf %112, %111 : vector<8x128xf32>
    %114 = arith.divf %112, %113 : vector<8x128xf32>
    %115 = vector.extract_strided_slice %102 {offsets = [0, 256], sizes = [8, 128], strides = [1, 1]} : vector<8x512xf32> to vector<8x128xf32>
    %116 = math.tanh %115 : vector<8x128xf32>
    %117 = vector.extract_strided_slice %102 {offsets = [0, 384], sizes = [8, 128], strides = [1, 1]} : vector<8x512xf32> to vector<8x128xf32>
    %118 = arith.negf %117 : vector<8x128xf32>
    %119 = math.exp %118 : vector<8x128xf32>
    %cst_43 = arith.constant 1.000000e+00 : f32
    %120 = vector.broadcast %cst_43 : f32 to vector<8x128xf32>
    %121 = arith.addf %120, %119 : vector<8x128xf32>
    %122 = arith.divf %120, %121 : vector<8x128xf32>
    %123 = arith.mulf %114, %95 : vector<8x128xf32>
    %124 = arith.mulf %108, %116 : vector<8x128xf32>
    %125 = arith.addf %123, %124 : vector<8x128xf32>
    %126 = math.tanh %125 : vector<8x128xf32>
    %127 = arith.mulf %122, %126 : vector<8x128xf32>
    %c24_44 = arith.constant 24 : index
    %c0_45 = arith.constant 0 : index
    %128 = vector.load %arg11[%c24_44, %c0_45] : memref<64x128xf32, #tpu.memory_space<vmem>>, vector<8x128xf32>
    tpu.vector_store %arg11[%c24_44, %c0_45], %127 {strides = array<i32>} : memref<64x128xf32, #tpu.memory_space<vmem>>, vector<8x128xf32>,
    %c32 = arith.constant 32 : index
    %c0_46 = arith.constant 0 : index
    %129 = vector.load %arg10[%c32, %c0_46] : memref<64x512xf32, #tpu.memory_space<vmem>>, vector<8x512xf32>
    %c0_47 = arith.constant 0 : index
    %c0_48 = arith.constant 0 : index
    %130 = vector.load %arg2[%c0_47, %c0_48] : memref<128x512xf32, #tpu.memory_space<vmem>>, vector<128x512xf32>
    %cst_49 = arith.constant dense<0.000000e+00> : vector<8x512xf32>
    %131 = tpu.matmul %127, %130, %cst_49 {dimension_numbers = #tpu.dot_dimension_numbers<[1], [0], [0], [1], [0, 0, 1, 1], [], []>} : vector<8x128xf32>, vector<128x512xf32>, vector<8x512xf32> -> vector<8x512xf32>
    %132 = arith.addf %129, %131 : vector<8x512xf32>
    %133 = vector.extract_strided_slice %132 {offsets = [0, 0], sizes = [8, 128], strides = [1, 1]} : vector<8x512xf32> to vector<8x128xf32>
    %134 = arith.negf %133 : vector<8x128xf32>
    %135 = math.exp %134 : vector<8x128xf32>
    %cst_50 = arith.constant 1.000000e+00 : f32
    %136 = vector.broadcast %cst_50 : f32 to vector<8x128xf32>
    %137 = arith.addf %136, %135 : vector<8x128xf32>
    %138 = arith.divf %136, %137 : vector<8x128xf32>
    %139 = vector.extract_strided_slice %132 {offsets = [0, 128], sizes = [8, 128], strides = [1, 1]} : vector<8x512xf32> to vector<8x128xf32>
    %140 = arith.negf %139 : vector<8x128xf32>
    %141 = math.exp %140 : vector<8x128xf32>
    %cst_51 = arith.constant 1.000000e+00 : f32
    %142 = vector.broadcast %cst_51 : f32 to vector<8x128xf32>
    %143 = arith.addf %142, %141 : vector<8x128xf32>
    %144 = arith.divf %142, %143 : vector<8x128xf32>
    %145 = vector.extract_strided_slice %132 {offsets = [0, 256], sizes = [8, 128], strides = [1, 1]} : vector<8x512xf32> to vector<8x128xf32>
    %146 = math.tanh %145 : vector<8x128xf32>
    %147 = vector.extract_strided_slice %132 {offsets = [0, 384], sizes = [8, 128], strides = [1, 1]} : vector<8x512xf32> to vector<8x128xf32>
    %148 = arith.negf %147 : vector<8x128xf32>
    %149 = math.exp %148 : vector<8x128xf32>
    %cst_52 = arith.constant 1.000000e+00 : f32
    %150 = vector.broadcast %cst_52 : f32 to vector<8x128xf32>
    %151 = arith.addf %150, %149 : vector<8x128xf32>
    %152 = arith.divf %150, %151 : vector<8x128xf32>
    %153 = arith.mulf %144, %125 : vector<8x128xf32>
    %154 = arith.mulf %138, %146 : vector<8x128xf32>
    %155 = arith.addf %153, %154 : vector<8x128xf32>
    %156 = math.tanh %155 : vector<8x128xf32>
    %157 = arith.mulf %152, %156 : vector<8x128xf32>
    %c32_53 = arith.constant 32 : index
    %c0_54 = arith.constant 0 : index
    %158 = vector.load %arg11[%c32_53, %c0_54] : memref<64x128xf32, #tpu.memory_space<vmem>>, vector<8x128xf32>
    tpu.vector_store %arg11[%c32_53, %c0_54], %157 {strides = array<i32>} : memref<64x128xf32, #tpu.memory_space<vmem>>, vector<8x128xf32>,
    %c40 = arith.constant 40 : index
    %c0_55 = arith.constant 0 : index
    %159 = vector.load %arg10[%c40, %c0_55] : memref<64x512xf32, #tpu.memory_space<vmem>>, vector<8x512xf32>
    %c0_56 = arith.constant 0 : index
    %c0_57 = arith.constant 0 : index
    %160 = vector.load %arg2[%c0_56, %c0_57] : memref<128x512xf32, #tpu.memory_space<vmem>>, vector<128x512xf32>
    %cst_58 = arith.constant dense<0.000000e+00> : vector<8x512xf32>
    %161 = tpu.matmul %157, %160, %cst_58 {dimension_numbers = #tpu.dot_dimension_numbers<[1], [0], [0], [1], [0, 0, 1, 1], [], []>} : vector<8x128xf32>, vector<128x512xf32>, vector<8x512xf32> -> vector<8x512xf32>
    %162 = arith.addf %159, %161 : vector<8x512xf32>
    %163 = vector.extract_strided_slice %162 {offsets = [0, 0], sizes = [8, 128], strides = [1, 1]} : vector<8x512xf32> to vector<8x128xf32>
    %164 = arith.negf %163 : vector<8x128xf32>
    %165 = math.exp %164 : vector<8x128xf32>
    %cst_59 = arith.constant 1.000000e+00 : f32
    %166 = vector.broadcast %cst_59 : f32 to vector<8x128xf32>
    %167 = arith.addf %166, %165 : vector<8x128xf32>
    %168 = arith.divf %166, %167 : vector<8x128xf32>
    %169 = vector.extract_strided_slice %162 {offsets = [0, 128], sizes = [8, 128], strides = [1, 1]} : vector<8x512xf32> to vector<8x128xf32>
    %170 = arith.negf %169 : vector<8x128xf32>
    %171 = math.exp %170 : vector<8x128xf32>
    %cst_60 = arith.constant 1.000000e+00 : f32
    %172 = vector.broadcast %cst_60 : f32 to vector<8x128xf32>
    %173 = arith.addf %172, %171 : vector<8x128xf32>
    %174 = arith.divf %172, %173 : vector<8x128xf32>
    %175 = vector.extract_strided_slice %162 {offsets = [0, 256], sizes = [8, 128], strides = [1, 1]} : vector<8x512xf32> to vector<8x128xf32>
    %176 = math.tanh %175 : vector<8x128xf32>
    %177 = vector.extract_strided_slice %162 {offsets = [0, 384], sizes = [8, 128], strides = [1, 1]} : vector<8x512xf32> to vector<8x128xf32>
    %178 = arith.negf %177 : vector<8x128xf32>
    %179 = math.exp %178 : vector<8x128xf32>
    %cst_61 = arith.constant 1.000000e+00 : f32
    %180 = vector.broadcast %cst_61 : f32 to vector<8x128xf32>
    %181 = arith.addf %180, %179 : vector<8x128xf32>
    %182 = arith.divf %180, %181 : vector<8x128xf32>
    %183 = arith.mulf %174, %155 : vector<8x128xf32>
    %184 = arith.mulf %168, %176 : vector<8x128xf32>
    %185 = arith.addf %183, %184 : vector<8x128xf32>
    %186 = math.tanh %185 : vector<8x128xf32>
    %187 = arith.mulf %182, %186 : vector<8x128xf32>
    %c40_62 = arith.constant 40 : index
    %c0_63 = arith.constant 0 : index
    %188 = vector.load %arg11[%c40_62, %c0_63] : memref<64x128xf32, #tpu.memory_space<vmem>>, vector<8x128xf32>
    tpu.vector_store %arg11[%c40_62, %c0_63], %187 {strides = array<i32>} : memref<64x128xf32, #tpu.memory_space<vmem>>, vector<8x128xf32>,
    %c48 = arith.constant 48 : index
    %c0_64 = arith.constant 0 : index
    %189 = vector.load %arg10[%c48, %c0_64] : memref<64x512xf32, #tpu.memory_space<vmem>>, vector<8x512xf32>
    %c0_65 = arith.constant 0 : index
    %c0_66 = arith.constant 0 : index
    %190 = vector.load %arg2[%c0_65, %c0_66] : memref<128x512xf32, #tpu.memory_space<vmem>>, vector<128x512xf32>
    %cst_67 = arith.constant dense<0.000000e+00> : vector<8x512xf32>
    %191 = tpu.matmul %187, %190, %cst_67 {dimension_numbers = #tpu.dot_dimension_numbers<[1], [0], [0], [1], [0, 0, 1, 1], [], []>} : vector<8x128xf32>, vector<128x512xf32>, vector<8x512xf32> -> vector<8x512xf32>
    %192 = arith.addf %189, %191 : vector<8x512xf32>
    %193 = vector.extract_strided_slice %192 {offsets = [0, 0], sizes = [8, 128], strides = [1, 1]} : vector<8x512xf32> to vector<8x128xf32>
    %194 = arith.negf %193 : vector<8x128xf32>
    %195 = math.exp %194 : vector<8x128xf32>
    %cst_68 = arith.constant 1.000000e+00 : f32
    %196 = vector.broadcast %cst_68 : f32 to vector<8x128xf32>
    %197 = arith.addf %196, %195 : vector<8x128xf32>
    %198 = arith.divf %196, %197 : vector<8x128xf32>
    %199 = vector.extract_strided_slice %192 {offsets = [0, 128], sizes = [8, 128], strides = [1, 1]} : vector<8x512xf32> to vector<8x128xf32>
    %200 = arith.negf %199 : vector<8x128xf32>
    %201 = math.exp %200 : vector<8x128xf32>
    %cst_69 = arith.constant 1.000000e+00 : f32
    %202 = vector.broadcast %cst_69 : f32 to vector<8x128xf32>
    %203 = arith.addf %202, %201 : vector<8x128xf32>
    %204 = arith.divf %202, %203 : vector<8x128xf32>
    %205 = vector.extract_strided_slice %192 {offsets = [0, 256], sizes = [8, 128], strides = [1, 1]} : vector<8x512xf32> to vector<8x128xf32>
    %206 = math.tanh %205 : vector<8x128xf32>
    %207 = vector.extract_strided_slice %192 {offsets = [0, 384], sizes = [8, 128], strides = [1, 1]} : vector<8x512xf32> to vector<8x128xf32>
    %208 = arith.negf %207 : vector<8x128xf32>
    %209 = math.exp %208 : vector<8x128xf32>
    %cst_70 = arith.constant 1.000000e+00 : f32
    %210 = vector.broadcast %cst_70 : f32 to vector<8x128xf32>
    %211 = arith.addf %210, %209 : vector<8x128xf32>
    %212 = arith.divf %210, %211 : vector<8x128xf32>
    %213 = arith.mulf %204, %185 : vector<8x128xf32>
    %214 = arith.mulf %198, %206 : vector<8x128xf32>
    %215 = arith.addf %213, %214 : vector<8x128xf32>
    %216 = math.tanh %215 : vector<8x128xf32>
    %217 = arith.mulf %212, %216 : vector<8x128xf32>
    %c48_71 = arith.constant 48 : index
    %c0_72 = arith.constant 0 : index
    %218 = vector.load %arg11[%c48_71, %c0_72] : memref<64x128xf32, #tpu.memory_space<vmem>>, vector<8x128xf32>
    tpu.vector_store %arg11[%c48_71, %c0_72], %217 {strides = array<i32>} : memref<64x128xf32, #tpu.memory_space<vmem>>, vector<8x128xf32>,
    %c56 = arith.constant 56 : index
    %c0_73 = arith.constant 0 : index
    %219 = vector.load %arg10[%c56, %c0_73] : memref<64x512xf32, #tpu.memory_space<vmem>>, vector<8x512xf32>
    %c0_74 = arith.constant 0 : index
    %c0_75 = arith.constant 0 : index
    %220 = vector.load %arg2[%c0_74, %c0_75] : memref<128x512xf32, #tpu.memory_space<vmem>>, vector<128x512xf32>
    %cst_76 = arith.constant dense<0.000000e+00> : vector<8x512xf32>
    %221 = tpu.matmul %217, %220, %cst_76 {dimension_numbers = #tpu.dot_dimension_numbers<[1], [0], [0], [1], [0, 0, 1, 1], [], []>} : vector<8x128xf32>, vector<128x512xf32>, vector<8x512xf32> -> vector<8x512xf32>
    %222 = arith.addf %219, %221 : vector<8x512xf32>
    %223 = vector.extract_strided_slice %222 {offsets = [0, 0], sizes = [8, 128], strides = [1, 1]} : vector<8x512xf32> to vector<8x128xf32>
    %224 = arith.negf %223 : vector<8x128xf32>
    %225 = math.exp %224 : vector<8x128xf32>
    %cst_77 = arith.constant 1.000000e+00 : f32
    %226 = vector.broadcast %cst_77 : f32 to vector<8x128xf32>
    %227 = arith.addf %226, %225 : vector<8x128xf32>
    %228 = arith.divf %226, %227 : vector<8x128xf32>
    %229 = vector.extract_strided_slice %222 {offsets = [0, 128], sizes = [8, 128], strides = [1, 1]} : vector<8x512xf32> to vector<8x128xf32>
    %230 = arith.negf %229 : vector<8x128xf32>
    %231 = math.exp %230 : vector<8x128xf32>
    %cst_78 = arith.constant 1.000000e+00 : f32
    %232 = vector.broadcast %cst_78 : f32 to vector<8x128xf32>
    %233 = arith.addf %232, %231 : vector<8x128xf32>
    %234 = arith.divf %232, %233 : vector<8x128xf32>
    %235 = vector.extract_strided_slice %222 {offsets = [0, 256], sizes = [8, 128], strides = [1, 1]} : vector<8x512xf32> to vector<8x128xf32>
    %236 = math.tanh %235 : vector<8x128xf32>
    %237 = vector.extract_strided_slice %222 {offsets = [0, 384], sizes = [8, 128], strides = [1, 1]} : vector<8x512xf32> to vector<8x128xf32>
    %238 = arith.negf %237 : vector<8x128xf32>
    %239 = math.exp %238 : vector<8x128xf32>
    %cst_79 = arith.constant 1.000000e+00 : f32
    %240 = vector.broadcast %cst_79 : f32 to vector<8x128xf32>
    %241 = arith.addf %240, %239 : vector<8x128xf32>
    %242 = arith.divf %240, %241 : vector<8x128xf32>
    %243 = arith.mulf %234, %215 : vector<8x128xf32>
    %244 = arith.mulf %228, %236 : vector<8x128xf32>
    %245 = arith.addf %243, %244 : vector<8x128xf32>
    %246 = math.tanh %245 : vector<8x128xf32>
    %247 = arith.mulf %242, %246 : vector<8x128xf32>
    %c56_80 = arith.constant 56 : index
    %c0_81 = arith.constant 0 : index
    %248 = vector.load %arg11[%c56_80, %c0_81] : memref<64x128xf32, #tpu.memory_space<vmem>>, vector<8x128xf32>
    tpu.vector_store %arg11[%c56_80, %c0_81], %247 {strides = array<i32>} : memref<64x128xf32, #tpu.memory_space<vmem>>, vector<8x128xf32>,
    %c0_82 = arith.constant 0 : index
    %c0_83 = arith.constant 0 : index
    %249 = vector.load %arg11[%c0_82, %c0_83] : memref<64x128xf32, #tpu.memory_space<vmem>>, vector<64x128xf32>
    %c0_84 = arith.constant 0 : index
    %c0_85 = arith.constant 0 : index
    %250 = vector.load %arg4[%c0_84, %c0_85] : memref<128x512xf32, #tpu.memory_space<vmem>>, vector<128x512xf32>
    %cst_86 = arith.constant dense<0.000000e+00> : vector<64x512xf32>
    %251 = tpu.matmul %249, %250, %cst_86 {dimension_numbers = #tpu.dot_dimension_numbers<[1], [0], [0], [1], [0, 0, 1, 1], [], []>} : vector<64x128xf32>, vector<128x512xf32>, vector<64x512xf32> -> vector<64x512xf32>
    %c0_87 = arith.constant 0 : index
    %c0_88 = arith.constant 0 : index
    %252 = vector.load %arg6[%c0_87, %c0_88] : memref<1x512xf32, #tpu.memory_space<vmem>>, vector<1x512xf32>
    %253 = vector.broadcast %252 : vector<1x512xf32> to vector<64x512xf32>
    %254 = arith.addf %251, %253 : vector<64x512xf32>
    %c0_89 = arith.constant 0 : index
    %c0_90 = arith.constant 0 : index
    %255 = vector.load %arg10[%c0_89, %c0_90] : memref<64x512xf32, #tpu.memory_space<vmem>>, vector<64x512xf32>
    tpu.vector_store %arg10[%c0_89, %c0_90], %254 {strides = array<i32>} : memref<64x512xf32, #tpu.memory_space<vmem>>, vector<64x512xf32>,
    %cst_91 = arith.constant 0.000000e+00 : f32
    %256 = vector.broadcast %cst_91 : f32 to vector<8x128xf32>
    %cst_92 = arith.constant 0.000000e+00 : f32
    %257 = vector.broadcast %cst_92 : f32 to vector<8x128xf32>
    %c0_93 = arith.constant 0 : index
    %c0_94 = arith.constant 0 : index
    %258 = vector.load %arg10[%c0_93, %c0_94] : memref<64x512xf32, #tpu.memory_space<vmem>>, vector<8x512xf32>
    %c0_95 = arith.constant 0 : index
    %c0_96 = arith.constant 0 : index
    %259 = vector.load %arg5[%c0_95, %c0_96] : memref<128x512xf32, #tpu.memory_space<vmem>>, vector<128x512xf32>
    %cst_97 = arith.constant dense<0.000000e+00> : vector<8x512xf32>
    %260 = tpu.matmul %256, %259, %cst_97 {dimension_numbers = #tpu.dot_dimension_numbers<[1], [0], [0], [1], [0, 0, 1, 1], [], []>} : vector<8x128xf32>, vector<128x512xf32>, vector<8x512xf32> -> vector<8x512xf32>
    %261 = arith.addf %258, %260 : vector<8x512xf32>
    %262 = vector.extract_strided_slice %261 {offsets = [0, 0], sizes = [8, 128], strides = [1, 1]} : vector<8x512xf32> to vector<8x128xf32>
    %263 = arith.negf %262 : vector<8x128xf32>
    %264 = math.exp %263 : vector<8x128xf32>
    %cst_98 = arith.constant 1.000000e+00 : f32
    %265 = vector.broadcast %cst_98 : f32 to vector<8x128xf32>
    %266 = arith.addf %265, %264 : vector<8x128xf32>
    %267 = arith.divf %265, %266 : vector<8x128xf32>
    %268 = vector.extract_strided_slice %261 {offsets = [0, 128], sizes = [8, 128], strides = [1, 1]} : vector<8x512xf32> to vector<8x128xf32>
    %269 = arith.negf %268 : vector<8x128xf32>
    %270 = math.exp %269 : vector<8x128xf32>
    %cst_99 = arith.constant 1.000000e+00 : f32
    %271 = vector.broadcast %cst_99 : f32 to vector<8x128xf32>
    %272 = arith.addf %271, %270 : vector<8x128xf32>
    %273 = arith.divf %271, %272 : vector<8x128xf32>
    %274 = vector.extract_strided_slice %261 {offsets = [0, 256], sizes = [8, 128], strides = [1, 1]} : vector<8x512xf32> to vector<8x128xf32>
    %275 = math.tanh %274 : vector<8x128xf32>
    %276 = vector.extract_strided_slice %261 {offsets = [0, 384], sizes = [8, 128], strides = [1, 1]} : vector<8x512xf32> to vector<8x128xf32>
    %277 = arith.negf %276 : vector<8x128xf32>
    %278 = math.exp %277 : vector<8x128xf32>
    %cst_100 = arith.constant 1.000000e+00 : f32
    %279 = vector.broadcast %cst_100 : f32 to vector<8x128xf32>
    %280 = arith.addf %279, %278 : vector<8x128xf32>
    %281 = arith.divf %279, %280 : vector<8x128xf32>
    %282 = arith.mulf %273, %257 : vector<8x128xf32>
    %283 = arith.mulf %267, %275 : vector<8x128xf32>
    %284 = arith.addf %282, %283 : vector<8x128xf32>
    %285 = math.tanh %284 : vector<8x128xf32>
    %286 = arith.mulf %281, %285 : vector<8x128xf32>
    %c8_101 = arith.constant 8 : index
    %c0_102 = arith.constant 0 : index
    %287 = vector.load %arg10[%c8_101, %c0_102] : memref<64x512xf32, #tpu.memory_space<vmem>>, vector<8x512xf32>
    %c0_103 = arith.constant 0 : index
    %c0_104 = arith.constant 0 : index
    %288 = vector.load %arg5[%c0_103, %c0_104] : memref<128x512xf32, #tpu.memory_space<vmem>>, vector<128x512xf32>
    %cst_105 = arith.constant dense<0.000000e+00> : vector<8x512xf32>
    %289 = tpu.matmul %286, %288, %cst_105 {dimension_numbers = #tpu.dot_dimension_numbers<[1], [0], [0], [1], [0, 0, 1, 1], [], []>} : vector<8x128xf32>, vector<128x512xf32>, vector<8x512xf32> -> vector<8x512xf32>
    %290 = arith.addf %287, %289 : vector<8x512xf32>
    %291 = vector.extract_strided_slice %290 {offsets = [0, 0], sizes = [8, 128], strides = [1, 1]} : vector<8x512xf32> to vector<8x128xf32>
    %292 = arith.negf %291 : vector<8x128xf32>
    %293 = math.exp %292 : vector<8x128xf32>
    %cst_106 = arith.constant 1.000000e+00 : f32
    %294 = vector.broadcast %cst_106 : f32 to vector<8x128xf32>
    %295 = arith.addf %294, %293 : vector<8x128xf32>
    %296 = arith.divf %294, %295 : vector<8x128xf32>
    %297 = vector.extract_strided_slice %290 {offsets = [0, 128], sizes = [8, 128], strides = [1, 1]} : vector<8x512xf32> to vector<8x128xf32>
    %298 = arith.negf %297 : vector<8x128xf32>
    %299 = math.exp %298 : vector<8x128xf32>
    %cst_107 = arith.constant 1.000000e+00 : f32
    %300 = vector.broadcast %cst_107 : f32 to vector<8x128xf32>
    %301 = arith.addf %300, %299 : vector<8x128xf32>
    %302 = arith.divf %300, %301 : vector<8x128xf32>
    %303 = vector.extract_strided_slice %290 {offsets = [0, 256], sizes = [8, 128], strides = [1, 1]} : vector<8x512xf32> to vector<8x128xf32>
    %304 = math.tanh %303 : vector<8x128xf32>
    %305 = vector.extract_strided_slice %290 {offsets = [0, 384], sizes = [8, 128], strides = [1, 1]} : vector<8x512xf32> to vector<8x128xf32>
    %306 = arith.negf %305 : vector<8x128xf32>
    %307 = math.exp %306 : vector<8x128xf32>
    %cst_108 = arith.constant 1.000000e+00 : f32
    %308 = vector.broadcast %cst_108 : f32 to vector<8x128xf32>
    %309 = arith.addf %308, %307 : vector<8x128xf32>
    %310 = arith.divf %308, %309 : vector<8x128xf32>
    %311 = arith.mulf %302, %284 : vector<8x128xf32>
    %312 = arith.mulf %296, %304 : vector<8x128xf32>
    %313 = arith.addf %311, %312 : vector<8x128xf32>
    %314 = math.tanh %313 : vector<8x128xf32>
    %315 = arith.mulf %310, %314 : vector<8x128xf32>
    %c16_109 = arith.constant 16 : index
    %c0_110 = arith.constant 0 : index
    %316 = vector.load %arg10[%c16_109, %c0_110] : memref<64x512xf32, #tpu.memory_space<vmem>>, vector<8x512xf32>
    %c0_111 = arith.constant 0 : index
    %c0_112 = arith.constant 0 : index
    %317 = vector.load %arg5[%c0_111, %c0_112] : memref<128x512xf32, #tpu.memory_space<vmem>>, vector<128x512xf32>
    %cst_113 = arith.constant dense<0.000000e+00> : vector<8x512xf32>
    %318 = tpu.matmul %315, %317, %cst_113 {dimension_numbers = #tpu.dot_dimension_numbers<[1], [0], [0], [1], [0, 0, 1, 1], [], []>} : vector<8x128xf32>, vector<128x512xf32>, vector<8x512xf32> -> vector<8x512xf32>
    %319 = arith.addf %316, %318 : vector<8x512xf32>
    %320 = vector.extract_strided_slice %319 {offsets = [0, 0], sizes = [8, 128], strides = [1, 1]} : vector<8x512xf32> to vector<8x128xf32>
    %321 = arith.negf %320 : vector<8x128xf32>
    %322 = math.exp %321 : vector<8x128xf32>
    %cst_114 = arith.constant 1.000000e+00 : f32
    %323 = vector.broadcast %cst_114 : f32 to vector<8x128xf32>
    %324 = arith.addf %323, %322 : vector<8x128xf32>
    %325 = arith.divf %323, %324 : vector<8x128xf32>
    %326 = vector.extract_strided_slice %319 {offsets = [0, 128], sizes = [8, 128], strides = [1, 1]} : vector<8x512xf32> to vector<8x128xf32>
    %327 = arith.negf %326 : vector<8x128xf32>
    %328 = math.exp %327 : vector<8x128xf32>
    %cst_115 = arith.constant 1.000000e+00 : f32
    %329 = vector.broadcast %cst_115 : f32 to vector<8x128xf32>
    %330 = arith.addf %329, %328 : vector<8x128xf32>
    %331 = arith.divf %329, %330 : vector<8x128xf32>
    %332 = vector.extract_strided_slice %319 {offsets = [0, 256], sizes = [8, 128], strides = [1, 1]} : vector<8x512xf32> to vector<8x128xf32>
    %333 = math.tanh %332 : vector<8x128xf32>
    %334 = vector.extract_strided_slice %319 {offsets = [0, 384], sizes = [8, 128], strides = [1, 1]} : vector<8x512xf32> to vector<8x128xf32>
    %335 = arith.negf %334 : vector<8x128xf32>
    %336 = math.exp %335 : vector<8x128xf32>
    %cst_116 = arith.constant 1.000000e+00 : f32
    %337 = vector.broadcast %cst_116 : f32 to vector<8x128xf32>
    %338 = arith.addf %337, %336 : vector<8x128xf32>
    %339 = arith.divf %337, %338 : vector<8x128xf32>
    %340 = arith.mulf %331, %313 : vector<8x128xf32>
    %341 = arith.mulf %325, %333 : vector<8x128xf32>
    %342 = arith.addf %340, %341 : vector<8x128xf32>
    %343 = math.tanh %342 : vector<8x128xf32>
    %344 = arith.mulf %339, %343 : vector<8x128xf32>
    %c24_117 = arith.constant 24 : index
    %c0_118 = arith.constant 0 : index
    %345 = vector.load %arg10[%c24_117, %c0_118] : memref<64x512xf32, #tpu.memory_space<vmem>>, vector<8x512xf32>
    %c0_119 = arith.constant 0 : index
    %c0_120 = arith.constant 0 : index
    %346 = vector.load %arg5[%c0_119, %c0_120] : memref<128x512xf32, #tpu.memory_space<vmem>>, vector<128x512xf32>
    %cst_121 = arith.constant dense<0.000000e+00> : vector<8x512xf32>
    %347 = tpu.matmul %344, %346, %cst_121 {dimension_numbers = #tpu.dot_dimension_numbers<[1], [0], [0], [1], [0, 0, 1, 1], [], []>} : vector<8x128xf32>, vector<128x512xf32>, vector<8x512xf32> -> vector<8x512xf32>
    %348 = arith.addf %345, %347 : vector<8x512xf32>
    %349 = vector.extract_strided_slice %348 {offsets = [0, 0], sizes = [8, 128], strides = [1, 1]} : vector<8x512xf32> to vector<8x128xf32>
    %350 = arith.negf %349 : vector<8x128xf32>
    %351 = math.exp %350 : vector<8x128xf32>
    %cst_122 = arith.constant 1.000000e+00 : f32
    %352 = vector.broadcast %cst_122 : f32 to vector<8x128xf32>
    %353 = arith.addf %352, %351 : vector<8x128xf32>
    %354 = arith.divf %352, %353 : vector<8x128xf32>
    %355 = vector.extract_strided_slice %348 {offsets = [0, 128], sizes = [8, 128], strides = [1, 1]} : vector<8x512xf32> to vector<8x128xf32>
    %356 = arith.negf %355 : vector<8x128xf32>
    %357 = math.exp %356 : vector<8x128xf32>
    %cst_123 = arith.constant 1.000000e+00 : f32
    %358 = vector.broadcast %cst_123 : f32 to vector<8x128xf32>
    %359 = arith.addf %358, %357 : vector<8x128xf32>
    %360 = arith.divf %358, %359 : vector<8x128xf32>
    %361 = vector.extract_strided_slice %348 {offsets = [0, 256], sizes = [8, 128], strides = [1, 1]} : vector<8x512xf32> to vector<8x128xf32>
    %362 = math.tanh %361 : vector<8x128xf32>
    %363 = vector.extract_strided_slice %348 {offsets = [0, 384], sizes = [8, 128], strides = [1, 1]} : vector<8x512xf32> to vector<8x128xf32>
    %364 = arith.negf %363 : vector<8x128xf32>
    %365 = math.exp %364 : vector<8x128xf32>
    %cst_124 = arith.constant 1.000000e+00 : f32
    %366 = vector.broadcast %cst_124 : f32 to vector<8x128xf32>
    %367 = arith.addf %366, %365 : vector<8x128xf32>
    %368 = arith.divf %366, %367 : vector<8x128xf32>
    %369 = arith.mulf %360, %342 : vector<8x128xf32>
    %370 = arith.mulf %354, %362 : vector<8x128xf32>
    %371 = arith.addf %369, %370 : vector<8x128xf32>
    %372 = math.tanh %371 : vector<8x128xf32>
    %373 = arith.mulf %368, %372 : vector<8x128xf32>
    %c32_125 = arith.constant 32 : index
    %c0_126 = arith.constant 0 : index
    %374 = vector.load %arg10[%c32_125, %c0_126] : memref<64x512xf32, #tpu.memory_space<vmem>>, vector<8x512xf32>
    %c0_127 = arith.constant 0 : index
    %c0_128 = arith.constant 0 : index
    %375 = vector.load %arg5[%c0_127, %c0_128] : memref<128x512xf32, #tpu.memory_space<vmem>>, vector<128x512xf32>
    %cst_129 = arith.constant dense<0.000000e+00> : vector<8x512xf32>
    %376 = tpu.matmul %373, %375, %cst_129 {dimension_numbers = #tpu.dot_dimension_numbers<[1], [0], [0], [1], [0, 0, 1, 1], [], []>} : vector<8x128xf32>, vector<128x512xf32>, vector<8x512xf32> -> vector<8x512xf32>
    %377 = arith.addf %374, %376 : vector<8x512xf32>
    %378 = vector.extract_strided_slice %377 {offsets = [0, 0], sizes = [8, 128], strides = [1, 1]} : vector<8x512xf32> to vector<8x128xf32>
    %379 = arith.negf %378 : vector<8x128xf32>
    %380 = math.exp %379 : vector<8x128xf32>
    %cst_130 = arith.constant 1.000000e+00 : f32
    %381 = vector.broadcast %cst_130 : f32 to vector<8x128xf32>
    %382 = arith.addf %381, %380 : vector<8x128xf32>
    %383 = arith.divf %381, %382 : vector<8x128xf32>
    %384 = vector.extract_strided_slice %377 {offsets = [0, 128], sizes = [8, 128], strides = [1, 1]} : vector<8x512xf32> to vector<8x128xf32>
    %385 = arith.negf %384 : vector<8x128xf32>
    %386 = math.exp %385 : vector<8x128xf32>
    %cst_131 = arith.constant 1.000000e+00 : f32
    %387 = vector.broadcast %cst_131 : f32 to vector<8x128xf32>
    %388 = arith.addf %387, %386 : vector<8x128xf32>
    %389 = arith.divf %387, %388 : vector<8x128xf32>
    %390 = vector.extract_strided_slice %377 {offsets = [0, 256], sizes = [8, 128], strides = [1, 1]} : vector<8x512xf32> to vector<8x128xf32>
    %391 = math.tanh %390 : vector<8x128xf32>
    %392 = vector.extract_strided_slice %377 {offsets = [0, 384], sizes = [8, 128], strides = [1, 1]} : vector<8x512xf32> to vector<8x128xf32>
    %393 = arith.negf %392 : vector<8x128xf32>
    %394 = math.exp %393 : vector<8x128xf32>
    %cst_132 = arith.constant 1.000000e+00 : f32
    %395 = vector.broadcast %cst_132 : f32 to vector<8x128xf32>
    %396 = arith.addf %395, %394 : vector<8x128xf32>
    %397 = arith.divf %395, %396 : vector<8x128xf32>
    %398 = arith.mulf %389, %371 : vector<8x128xf32>
    %399 = arith.mulf %383, %391 : vector<8x128xf32>
    %400 = arith.addf %398, %399 : vector<8x128xf32>
    %401 = math.tanh %400 : vector<8x128xf32>
    %402 = arith.mulf %397, %401 : vector<8x128xf32>
    %c40_133 = arith.constant 40 : index
    %c0_134 = arith.constant 0 : index
    %403 = vector.load %arg10[%c40_133, %c0_134] : memref<64x512xf32, #tpu.memory_space<vmem>>, vector<8x512xf32>
    %c0_135 = arith.constant 0 : index
    %c0_136 = arith.constant 0 : index
    %404 = vector.load %arg5[%c0_135, %c0_136] : memref<128x512xf32, #tpu.memory_space<vmem>>, vector<128x512xf32>
    %cst_137 = arith.constant dense<0.000000e+00> : vector<8x512xf32>
    %405 = tpu.matmul %402, %404, %cst_137 {dimension_numbers = #tpu.dot_dimension_numbers<[1], [0], [0], [1], [0, 0, 1, 1], [], []>} : vector<8x128xf32>, vector<128x512xf32>, vector<8x512xf32> -> vector<8x512xf32>
    %406 = arith.addf %403, %405 : vector<8x512xf32>
    %407 = vector.extract_strided_slice %406 {offsets = [0, 0], sizes = [8, 128], strides = [1, 1]} : vector<8x512xf32> to vector<8x128xf32>
    %408 = arith.negf %407 : vector<8x128xf32>
    %409 = math.exp %408 : vector<8x128xf32>
    %cst_138 = arith.constant 1.000000e+00 : f32
    %410 = vector.broadcast %cst_138 : f32 to vector<8x128xf32>
    %411 = arith.addf %410, %409 : vector<8x128xf32>
    %412 = arith.divf %410, %411 : vector<8x128xf32>
    %413 = vector.extract_strided_slice %406 {offsets = [0, 128], sizes = [8, 128], strides = [1, 1]} : vector<8x512xf32> to vector<8x128xf32>
    %414 = arith.negf %413 : vector<8x128xf32>
    %415 = math.exp %414 : vector<8x128xf32>
    %cst_139 = arith.constant 1.000000e+00 : f32
    %416 = vector.broadcast %cst_139 : f32 to vector<8x128xf32>
    %417 = arith.addf %416, %415 : vector<8x128xf32>
    %418 = arith.divf %416, %417 : vector<8x128xf32>
    %419 = vector.extract_strided_slice %406 {offsets = [0, 256], sizes = [8, 128], strides = [1, 1]} : vector<8x512xf32> to vector<8x128xf32>
    %420 = math.tanh %419 : vector<8x128xf32>
    %421 = vector.extract_strided_slice %406 {offsets = [0, 384], sizes = [8, 128], strides = [1, 1]} : vector<8x512xf32> to vector<8x128xf32>
    %422 = arith.negf %421 : vector<8x128xf32>
    %423 = math.exp %422 : vector<8x128xf32>
    %cst_140 = arith.constant 1.000000e+00 : f32
    %424 = vector.broadcast %cst_140 : f32 to vector<8x128xf32>
    %425 = arith.addf %424, %423 : vector<8x128xf32>
    %426 = arith.divf %424, %425 : vector<8x128xf32>
    %427 = arith.mulf %418, %400 : vector<8x128xf32>
    %428 = arith.mulf %412, %420 : vector<8x128xf32>
    %429 = arith.addf %427, %428 : vector<8x128xf32>
    %430 = math.tanh %429 : vector<8x128xf32>
    %431 = arith.mulf %426, %430 : vector<8x128xf32>
    %c48_141 = arith.constant 48 : index
    %c0_142 = arith.constant 0 : index
    %432 = vector.load %arg10[%c48_141, %c0_142] : memref<64x512xf32, #tpu.memory_space<vmem>>, vector<8x512xf32>
    %c0_143 = arith.constant 0 : index
    %c0_144 = arith.constant 0 : index
    %433 = vector.load %arg5[%c0_143, %c0_144] : memref<128x512xf32, #tpu.memory_space<vmem>>, vector<128x512xf32>
    %cst_145 = arith.constant dense<0.000000e+00> : vector<8x512xf32>
    %434 = tpu.matmul %431, %433, %cst_145 {dimension_numbers = #tpu.dot_dimension_numbers<[1], [0], [0], [1], [0, 0, 1, 1], [], []>} : vector<8x128xf32>, vector<128x512xf32>, vector<8x512xf32> -> vector<8x512xf32>
    %435 = arith.addf %432, %434 : vector<8x512xf32>
    %436 = vector.extract_strided_slice %435 {offsets = [0, 0], sizes = [8, 128], strides = [1, 1]} : vector<8x512xf32> to vector<8x128xf32>
    %437 = arith.negf %436 : vector<8x128xf32>
    %438 = math.exp %437 : vector<8x128xf32>
    %cst_146 = arith.constant 1.000000e+00 : f32
    %439 = vector.broadcast %cst_146 : f32 to vector<8x128xf32>
    %440 = arith.addf %439, %438 : vector<8x128xf32>
    %441 = arith.divf %439, %440 : vector<8x128xf32>
    %442 = vector.extract_strided_slice %435 {offsets = [0, 128], sizes = [8, 128], strides = [1, 1]} : vector<8x512xf32> to vector<8x128xf32>
    %443 = arith.negf %442 : vector<8x128xf32>
    %444 = math.exp %443 : vector<8x128xf32>
    %cst_147 = arith.constant 1.000000e+00 : f32
    %445 = vector.broadcast %cst_147 : f32 to vector<8x128xf32>
    %446 = arith.addf %445, %444 : vector<8x128xf32>
    %447 = arith.divf %445, %446 : vector<8x128xf32>
    %448 = vector.extract_strided_slice %435 {offsets = [0, 256], sizes = [8, 128], strides = [1, 1]} : vector<8x512xf32> to vector<8x128xf32>
    %449 = math.tanh %448 : vector<8x128xf32>
    %450 = vector.extract_strided_slice %435 {offsets = [0, 384], sizes = [8, 128], strides = [1, 1]} : vector<8x512xf32> to vector<8x128xf32>
    %451 = arith.negf %450 : vector<8x128xf32>
    %452 = math.exp %451 : vector<8x128xf32>
    %cst_148 = arith.constant 1.000000e+00 : f32
    %453 = vector.broadcast %cst_148 : f32 to vector<8x128xf32>
    %454 = arith.addf %453, %452 : vector<8x128xf32>
    %455 = arith.divf %453, %454 : vector<8x128xf32>
    %456 = arith.mulf %447, %429 : vector<8x128xf32>
    %457 = arith.mulf %441, %449 : vector<8x128xf32>
    %458 = arith.addf %456, %457 : vector<8x128xf32>
    %459 = math.tanh %458 : vector<8x128xf32>
    %460 = arith.mulf %455, %459 : vector<8x128xf32>
    %c56_149 = arith.constant 56 : index
    %c0_150 = arith.constant 0 : index
    %461 = vector.load %arg10[%c56_149, %c0_150] : memref<64x512xf32, #tpu.memory_space<vmem>>, vector<8x512xf32>
    %c0_151 = arith.constant 0 : index
    %c0_152 = arith.constant 0 : index
    %462 = vector.load %arg5[%c0_151, %c0_152] : memref<128x512xf32, #tpu.memory_space<vmem>>, vector<128x512xf32>
    %cst_153 = arith.constant dense<0.000000e+00> : vector<8x512xf32>
    %463 = tpu.matmul %460, %462, %cst_153 {dimension_numbers = #tpu.dot_dimension_numbers<[1], [0], [0], [1], [0, 0, 1, 1], [], []>} : vector<8x128xf32>, vector<128x512xf32>, vector<8x512xf32> -> vector<8x512xf32>
    %464 = arith.addf %461, %463 : vector<8x512xf32>
    %465 = vector.extract_strided_slice %464 {offsets = [0, 0], sizes = [8, 128], strides = [1, 1]} : vector<8x512xf32> to vector<8x128xf32>
    %466 = arith.negf %465 : vector<8x128xf32>
    %467 = math.exp %466 : vector<8x128xf32>
    %cst_154 = arith.constant 1.000000e+00 : f32
    %468 = vector.broadcast %cst_154 : f32 to vector<8x128xf32>
    %469 = arith.addf %468, %467 : vector<8x128xf32>
    %470 = arith.divf %468, %469 : vector<8x128xf32>
    %471 = vector.extract_strided_slice %464 {offsets = [0, 128], sizes = [8, 128], strides = [1, 1]} : vector<8x512xf32> to vector<8x128xf32>
    %472 = arith.negf %471 : vector<8x128xf32>
    %473 = math.exp %472 : vector<8x128xf32>
    %cst_155 = arith.constant 1.000000e+00 : f32
    %474 = vector.broadcast %cst_155 : f32 to vector<8x128xf32>
    %475 = arith.addf %474, %473 : vector<8x128xf32>
    %476 = arith.divf %474, %475 : vector<8x128xf32>
    %477 = vector.extract_strided_slice %464 {offsets = [0, 256], sizes = [8, 128], strides = [1, 1]} : vector<8x512xf32> to vector<8x128xf32>
    %478 = math.tanh %477 : vector<8x128xf32>
    %479 = vector.extract_strided_slice %464 {offsets = [0, 384], sizes = [8, 128], strides = [1, 1]} : vector<8x512xf32> to vector<8x128xf32>
    %480 = arith.negf %479 : vector<8x128xf32>
    %481 = math.exp %480 : vector<8x128xf32>
    %cst_156 = arith.constant 1.000000e+00 : f32
    %482 = vector.broadcast %cst_156 : f32 to vector<8x128xf32>
    %483 = arith.addf %482, %481 : vector<8x128xf32>
    %484 = arith.divf %482, %483 : vector<8x128xf32>
    %485 = arith.mulf %476, %458 : vector<8x128xf32>
    %486 = arith.mulf %470, %478 : vector<8x128xf32>
    %487 = arith.addf %485, %486 : vector<8x128xf32>
    %488 = math.tanh %487 : vector<8x128xf32>
    %489 = arith.mulf %484, %488 : vector<8x128xf32>
    %c0_157 = arith.constant 0 : index
    %c0_158 = arith.constant 0 : index
    %490 = vector.load %arg7[%c0_157, %c0_158] : memref<128x128xf32, #tpu.memory_space<vmem>>, vector<128x128xf32>
    %cst_159 = arith.constant dense<0.000000e+00> : vector<8x128xf32>
    %491 = tpu.matmul %489, %490, %cst_159 {dimension_numbers = #tpu.dot_dimension_numbers<[1], [0], [0], [1], [0, 0, 1, 1], [], []>} : vector<8x128xf32>, vector<128x128xf32>, vector<8x128xf32> -> vector<8x128xf32>
    %c0_160 = arith.constant 0 : index
    %c0_161 = arith.constant 0 : index
    %492 = vector.load %arg8[%c0_160, %c0_161] : memref<1x128xf32, #tpu.memory_space<vmem>>, vector<1x128xf32>
    %493 = vector.broadcast %492 : vector<1x128xf32> to vector<8x128xf32>
    %494 = arith.addf %491, %493 : vector<8x128xf32>
    %495 = arith.negf %494 : vector<8x128xf32>
    %496 = math.exp %495 : vector<8x128xf32>
    %cst_162 = arith.constant 1.000000e+00 : f32
    %497 = vector.broadcast %cst_162 : f32 to vector<8x128xf32>
    %498 = arith.addf %497, %496 : vector<8x128xf32>
    %499 = arith.divf %497, %498 : vector<8x128xf32>
    %c0_163 = arith.constant 0 : index
    %c0_164 = arith.constant 0 : index
    %500 = vector.load %arg9[%c0_163, %c0_164] : memref<8x128xf32, #tpu.memory_space<vmem>>, vector<8x128xf32>
    tpu.vector_store %arg9[%c0_163, %c0_164], %499 {strides = array<i32>} : memref<8x128xf32, #tpu.memory_space<vmem>>, vector<8x128xf32>,
    return
  }
}

</mosaic_0001>

<bundles_post_ra>
// kernel: lstm_net_forward.1
= control target key start
LH: loop header
LB: loop body
LE: loop exit
PB: predicated region body
PF: predicated region fallthrough
CT: control target
= control target key end

     0   :  { %14 = vsyncpa [#allocation5], 0  ;;  %s6494_s0 = inlined_call_operand.vmem [shape: f32[64,128], index: 0, kind: input, shape index: {}]   ;;  %s6495_s1 = inlined_call_operand.hbm [shape: f32[128,512], index: 1, kind: input, shape index: {}]   ;;  %s6496_s2 = inlined_call_operand.hbm [shape: f32[128,512], index: 2, kind: input, shape index: {}]   ;;  %s6497_s3 = inlined_call_operand.vmem [shape: f32[1,512], index: 3, kind: input, shape index: {}]   ;;  %s6498_s4 = inlined_call_operand.hbm [shape: f32[128,512], index: 4, kind: input, shape index: {}]   ;;  %s6499_s5 = inlined_call_operand.hbm [shape: f32[128,512], index: 5, kind: input, shape index: {}]   ;;  %s6500_s6 = inlined_call_operand.vmem [shape: f32[1,512], index: 6, kind: input, shape index: {}]   ;;  %s6501_s7 = inlined_call_operand.vmem [shape: f32[128,128], index: 7, kind: input, shape index: {}]   ;;  %s6502_s8 = inlined_call_operand.vmem [shape: f32[1,128], index: 8, kind: input, shape index: {}]   ;;  %s6503_s9 = inlined_call_operand.vmem [shape: f32[8,128], index: 9, kind: output, shape index: {}]  }
   0x1   :  { %15 = vsyncpa [#allocation7], 0 }
   0x2   :  { %16 = vsyncpa [#allocation10], 0  ;;  %s36_s11 = sshll.u32 %s6496_s2, 4  ;;  %s4201_s12 = smov [#allocation6]   ;;  %s37_s11 = int_to_ptr.hbm [resolvable:$true] %s36_s11 }
   0x3   :  { %s38_s13 = sshll.u32 %s4201_s12, 4  ;;  %s23_s16 = sshll.u32 %s6495_s1, 4  ;;  %s39_s13 = int_to_ptr.vmem [resolvable:$true] %s38_s13  ;;  %s24_s16 = int_to_ptr.hbm [resolvable:$true] %s23_s16 }
   0x4   :  { %s4202_s17 = smov 512   ;;  %s4203_s18 = smov 32  }
   0x5   :  { %44 = dma.hbm_to_vmem [thread:$0]  %s37_s11, 8192, %s39_s13, [#allocation7], %s4202_s17, %s4202_s17, %s4203_s18  }
   0x6   :  { %s4204_s19 = smov [#allocation4]   ;;  %s51_s23 = sshll.u32 %s6498_s4, 4  ;;  %s52_s23 = int_to_ptr.hbm [resolvable:$true] %s51_s23 }
   0x7   :  { %s25_s20 = sshll.u32 %s4204_s19, 4  ;;  %s64_s25 = sshll.u32 %s6499_s5, 4  ;;  %s26_s20 = int_to_ptr.vmem [resolvable:$true] %s25_s20  ;;  %s65_s25 = int_to_ptr.hbm [resolvable:$true] %s64_s25 }
   0x8   :  { %31 = dma.hbm_to_vmem [thread:$0]  %s24_s16, 8192, %s26_s20, [#allocation5], %s4202_s17, %s4202_s17, %s4203_s18  }
   0x9   :  { %s4205_s26 = smov [#allocation8]   ;;  %s4206_s1 = smov [#allocation9]  }
   0xa   :  { %s53_s27 = sshll.u32 %s4205_s26, 4  ;;  %s66_s28 = sshll.u32 %s4206_s1, 4  ;;  %s54_s27 = int_to_ptr.vmem [resolvable:$true] %s53_s27  ;;  %s67_s28 = int_to_ptr.vmem [resolvable:$true] %s66_s28 }
   0xb   :  { %59 = dma.hbm_to_vmem [thread:$0]  %s52_s23, 8192, %s54_s27, [#allocation7], %s4202_s17, %s4202_s17, %s4203_s18  }
   0xc   :  { %72 = dma.hbm_to_vmem [thread:$0]  %s65_s25, 8192, %s67_s28, [#allocation10], %s4202_s17, %s4202_s17, %s4203_s18  }
   0xd   :  { %4195 = dma.done.wait [#allocation5], 8192  }
   0xe   :  { %4196 = vsyncadd [#allocation5], 4294959104 }
   0xf   :  { %4197 = dma.done.wait [#allocation7], 16384  }
  0x10   :  { %4198 = vsyncadd [#allocation7], 4294950912 }
  0x11   :  { %4199 = dma.done.wait [#allocation10], 8192  }
  0x12   :  { %4200 = vsyncadd [#allocation10], 4294959104  ;;  %v163_v0 = vld [vmem:[#allocation4 + $0x1e0] sm:$0xff]  ;;  %v164_v1 = vld [vmem:[#allocation4 + $0x1e8] sm:$0xff] }
  0x13   :  { %v165_v2 = vld [vmem:[#allocation4 + $0x1f0] sm:$0xff]  ;;  %177 = vmatpush.msra.mxu0 %v163_v0  ;;  %218 = vmatpush.msra.mxu1 %v164_v1  ;;  %v166_v3 = vld [vmem:[#allocation4 + $0x1f8] sm:$0xff]  ;;  %v159_v4 = vld [vmem:[#allocation4 + $0x1c0] sm:$0xff] }
  0x14   :  { %v160_v5 = vld [vmem:[#allocation4 + $0x1c8] sm:$0xff]  ;;  %259 = vmatpush.msra.mxu2 %v165_v2  ;;  %300 = vmatpush.msra.mxu3 %v166_v3  ;;  %v161_v6 = vld [vmem:[#allocation4 + $0x1d0] sm:$0xff]  ;;  %v162_v7 = vld [vmem:[#allocation4 + $0x1d8] sm:$0xff] }
  0x15   :  { %v155_v8 = vld [vmem:[#allocation4 + $0x1a0] sm:$0xff]  ;;  %178 = vmatpush.msra.mxu0 %v159_v4  ;;  %219 = vmatpush.msra.mxu1 %v160_v5  ;;  %v156_v9 = vld [vmem:[#allocation4 + $0x1a8] sm:$0xff]  ;;  %v157_v10 = vld [vmem:[#allocation4 + $0x1b0] sm:$0xff] }
  0x16   :  { %v158_v11 = vld [vmem:[#allocation4 + $0x1b8] sm:$0xff]  ;;  %260 = vmatpush.msra.mxu2 %v161_v6  ;;  %301 = vmatpush.msra.mxu3 %v162_v7  ;;  %v151_v12 = vld [vmem:[#allocation4 + $0x180] sm:$0xff]  ;;  %v152_v13 = vld [vmem:[#allocation4 + $0x188] sm:$0xff] }
  0x17   :  { %179 = vmatpush.msra.mxu0 %v155_v8  ;;  %220 = vmatpush.msra.mxu1 %v156_v9  ;;  %v153_v14 = vld [vmem:[#allocation4 + $0x190] sm:$0xff]  ;;  %v154_v15 = vld [vmem:[#allocation4 + $0x198] sm:$0xff]  ;;  %v147_v16 = vld [vmem:[#allocation4 + $0x160] sm:$0xff] }
  0x18   :  { %261 = vmatpush.msra.mxu2 %v157_v10  ;;  %302 = vmatpush.msra.mxu3 %v158_v11  ;;  %v148_v17 = vld [vmem:[#allocation4 + $0x168] sm:$0xff]  ;;  %v149_v18 = vld [vmem:[#allocation4 + $0x170] sm:$0xff]  ;;  %v150_v19 = vld [vmem:[#allocation4 + $0x178] sm:$0xff] }
  0x19   :  { %180 = vmatpush.msra.mxu0 %v151_v12  ;;  %221 = vmatpush.msra.mxu1 %v152_v13  ;;  %v143_v20 = vld [vmem:[#allocation4 + $0x140] sm:$0xff]  ;;  %v144_v21 = vld [vmem:[#allocation4 + $0x148] sm:$0xff]  ;;  %v145_v22 = vld [vmem:[#allocation4 + $0x150] sm:$0xff] }
  0x1a   :  { %262 = vmatpush.msra.mxu2 %v153_v14  ;;  %303 = vmatpush.msra.mxu3 %v154_v15  ;;  %v146_v23 = vld [vmem:[#allocation4 + $0x158] sm:$0xff]  ;;  %v139_v24 = vld [vmem:[#allocation4 + $0x120] sm:$0xff]  ;;  %v140_v25 = vld [vmem:[#allocation4 + $0x128] sm:$0xff] }
  0x1b   :  { %181 = vmatpush.msra.mxu0 %v147_v16  ;;  %222 = vmatpush.msra.mxu1 %v148_v17  ;;  %v141_v26 = vld [vmem:[#allocation4 + $0x130] sm:$0xff]  ;;  %v142_v27 = vld [vmem:[#allocation4 + $0x138] sm:$0xff]  ;;  %v135_v28 = vld [vmem:[#allocation4 + $0x100] sm:$0xff] }
  0x1c   :  { %263 = vmatpush.msra.mxu2 %v149_v18  ;;  %304 = vmatpush.msra.mxu3 %v150_v19  ;;  %v136_v29 = vld [vmem:[#allocation4 + $0x108] sm:$0xff]  ;;  %v137_v30 = vld [vmem:[#allocation4 + $0x110] sm:$0xff]  ;;  %v138_v31 = vld [vmem:[#allocation4 + $0x118] sm:$0xff] }
  0x1d   :  { %182 = vmatpush.msra.mxu0 %v143_v20  ;;  %223 = vmatpush.msra.mxu1 %v144_v21  ;;  %v131_v32 = vld [vmem:[#allocation4 + $0xe0] sm:$0xff]  ;;  %v132_v33 = vld [vmem:[#allocation4 + $0xe8] sm:$0xff]  ;;  %v133_v34 = vld [vmem:[#allocation4 + $0xf0] sm:$0xff] }
  0x1e   :  { %264 = vmatpush.msra.mxu2 %v145_v22  ;;  %305 = vmatpush.msra.mxu3 %v146_v23  ;;  %v134_v35 = vld [vmem:[#allocation4 + $0xf8] sm:$0xff]  ;;  %v127_v36 = vld [vmem:[#allocation4 + $0xc0] sm:$0xff]  ;;  %v128_v37 = vld [vmem:[#allocation4 + $0xc8] sm:$0xff] }
  0x1f   :  { %183 = vmatpush.msra.mxu0 %v139_v24  ;;  %224 = vmatpush.msra.mxu1 %v140_v25  ;;  %v129_v38 = vld [vmem:[#allocation4 + $0xd0] sm:$0xff]  ;;  %v130_v39 = vld [vmem:[#allocation4 + $0xd8] sm:$0xff]  ;;  %v123_v40 = vld [vmem:[#allocation4 + $0xa0] sm:$0xff] }
  0x20   :  { %265 = vmatpush.msra.mxu2 %v141_v26  ;;  %306 = vmatpush.msra.mxu3 %v142_v27  ;;  %v124_v41 = vld [vmem:[#allocation4 + $0xa8] sm:$0xff]  ;;  %v125_v42 = vld [vmem:[#allocation4 + $0xb0] sm:$0xff]  ;;  %v126_v43 = vld [vmem:[#allocation4 + $0xb8] sm:$0xff] }
  0x21   :  { %184 = vmatpush.msra.mxu0 %v135_v28  ;;  %225 = vmatpush.msra.mxu1 %v136_v29  ;;  %v119_v44 = vld [vmem:[#allocation4 + $0x80] sm:$0xff]  ;;  %v120_v45 = vld [vmem:[#allocation4 + $0x88] sm:$0xff]  ;;  %v121_v46 = vld [vmem:[#allocation4 + $0x90] sm:$0xff] }
  0x22   :  { %266 = vmatpush.msra.mxu2 %v137_v30  ;;  %307 = vmatpush.msra.mxu3 %v138_v31  ;;  %v122_v47 = vld [vmem:[#allocation4 + $0x98] sm:$0xff]  ;;  %v115_v48 = vld [vmem:[#allocation4 + $0x60] sm:$0xff]  ;;  %v116_v49 = vld [vmem:[#allocation4 + $0x68] sm:$0xff] }
  0x23   :  { %185 = vmatpush.msra.mxu0 %v131_v32  ;;  %226 = vmatpush.msra.mxu1 %v132_v33  ;;  %v117_v50 = vld [vmem:[#allocation4 + $0x70] sm:$0xff]  ;;  %v118_v51 = vld [vmem:[#allocation4 + $0x78] sm:$0xff]  ;;  %v111_v52 = vld [vmem:[#allocation4 + $0x40] sm:$0xff] }
  0x24   :  { %267 = vmatpush.msra.mxu2 %v133_v34  ;;  %308 = vmatpush.msra.mxu3 %v134_v35  ;;  %v112_v53 = vld [vmem:[#allocation4 + $0x48] sm:$0xff]  ;;  %v113_v54 = vld [vmem:[#allocation4 + $0x50] sm:$0xff]  ;;  %v114_v55 = vld [vmem:[#allocation4 + $0x58] sm:$0xff] }
  0x25   :  { %186 = vmatpush.msra.mxu0 %v127_v36  ;;  %227 = vmatpush.msra.mxu1 %v128_v37  ;;  %v107_v56 = vld [vmem:[#allocation4 + $0x20] sm:$0xff]  ;;  %v108_v57 = vld [vmem:[#allocation4 + $0x28] sm:$0xff]  ;;  %v109_v58 = vld [vmem:[#allocation4 + $0x30] sm:$0xff] }
  0x26   :  { %268 = vmatpush.msra.mxu2 %v129_v38  ;;  %309 = vmatpush.msra.mxu3 %v130_v39  ;;  %v110_v59 = vld [vmem:[#allocation4 + $0x38] sm:$0xff]  ;;  %v103_v60 = vld [vmem:[#allocation4] sm:$0xff]  ;;  %v104_v61 = vld [vmem:[#allocation4 + $0x8] sm:$0xff] }
  0x27   :  { %187 = vmatpush.msra.mxu0 %v123_v40  ;;  %228 = vmatpush.msra.mxu1 %v124_v41  ;;  %v105_v62 = vld [vmem:[#allocation4 + $0x10] sm:$0xff]  ;;  %v106_v63 = vld [vmem:[#allocation4 + $0x18] sm:$0xff]  ;;  %v95_v0 = vld [vmem:[%s6494_s0] sm:$0xff] }
  0x28   :  { %269 = vmatpush.msra.mxu2 %v125_v42  ;;  %310 = vmatpush.msra.mxu3 %v126_v43  ;;  %v4273_v1 = vld [vmem:[#allocation6 + $0x1e0] sm:$0xff]  ;;  %v4275_v2 = vld [vmem:[#allocation6 + $0x1e8] sm:$0xff]  ;;  %v4277_v3 = vld [vmem:[#allocation6 + $0x1f8] sm:$0xff] }
  0x29   :  { %188 = vmatpush.msra.mxu0 %v119_v44  ;;  %229 = vmatpush.msra.mxu1 %v120_v45  ;;  %v4279_v4 = vld [vmem:[#allocation6 + $0x1f0] sm:$0xff]  ;;  %v4281_v5 = vld [vmem:[#allocation6 + $0x1c0] sm:$0xff]  ;;  %v4283_v6 = vld [vmem:[#allocation6 + $0x1c8] sm:$0xff] }
  0x2a   :  { %270 = vmatpush.msra.mxu2 %v121_v46  ;;  %311 = vmatpush.msra.mxu3 %v122_v47  ;;  %v4287_v7 = vld [vmem:[#allocation6 + $0x1d8] sm:$0xff]  ;;  %v4289_v8 = vld [vmem:[#allocation6 + $0x1d0] sm:$0xff]  ;;  %v4292_v9 = vld [vmem:[#allocation6 + $0x1a0] sm:$0xff] }
  0x2b   :  { %189 = vmatpush.msra.mxu0 %v115_v48  ;;  %230 = vmatpush.msra.mxu1 %v116_v49  ;;  %v4294_v10 = vld [vmem:[#allocation6 + $0x1a8] sm:$0xff]  ;;  %v4299_v11 = vld [vmem:[#allocation6 + $0x1b8] sm:$0xff]  ;;  %v4301_v12 = vld [vmem:[#allocation6 + $0x1b0] sm:$0xff] }
  0x2c   :  { %271 = vmatpush.msra.mxu2 %v117_v50  ;;  %312 = vmatpush.msra.mxu3 %v118_v51  ;;  %v96_v13 = vld [vmem:[%s6494_s0 + $0x8] sm:$0xff]  ;;  %v4310_v14 = vld [vmem:[#allocation6 + $0x180] sm:$0xff]  ;;  %v4316_v16 = vld [vmem:[#allocation6 + $0x198] sm:$0xff] }
  0x2d   :  { %190 = vmatpush.msra.mxu0 %v111_v52  ;;  %231 = vmatpush.msra.mxu1 %v112_v53  ;;  %v4312_v15 = vld [vmem:[#allocation6 + $0x188] sm:$0xff]  ;;  %v4318_v17 = vld [vmem:[#allocation6 + $0x190] sm:$0xff]  ;;  %v4320_v18 = vld [vmem:[#allocation6 + $0x160] sm:$0xff] }
  0x2e   :  { %272 = vmatpush.msra.mxu2 %v113_v54  ;;  %313 = vmatpush.msra.mxu3 %v114_v55  ;;  %v4322_v19 = vld [vmem:[#allocation6 + $0x168] sm:$0xff]  ;;  %v4326_v20 = vld [vmem:[#allocation6 + $0x178] sm:$0xff]  ;;  %v4328_v21 = vld [vmem:[#allocation6 + $0x170] sm:$0xff] }
  0x2f   :  { %191 = vmatpush.msra.mxu0 %v107_v56  ;;  %232 = vmatpush.msra.mxu1 %v108_v57  ;;  %v4331_v22 = vld [vmem:[#allocation6 + $0x140] sm:$0xff]  ;;  %v4333_v23 = vld [vmem:[#allocation6 + $0x148] sm:$0xff]  ;;  %v4338_v24 = vld [vmem:[#allocation6 + $0x158] sm:$0xff] }
  0x30   :  { %273 = vmatpush.msra.mxu2 %v109_v58  ;;  %314 = vmatpush.msra.mxu3 %v110_v59  ;;  %v4340_v25 = vld [vmem:[#allocation6 + $0x150] sm:$0xff]  ;;  %v4349_v27 = vld [vmem:[#allocation6 + $0x120] sm:$0xff]  ;;  %v4351_v28 = vld [vmem:[#allocation6 + $0x128] sm:$0xff] }
  0x31   :  { %192 = vmatpush.msra.mxu0 %v103_v60  ;;  %233 = vmatpush.msra.mxu1 %v104_v61  ;;  %v97_v26 = vld [vmem:[%s6494_s0 + $0x10] sm:$0xff]  ;;  %v4355_v29 = vld [vmem:[#allocation6 + $0x138] sm:$0xff]  ;;  %v4359_v31 = vld [vmem:[#allocation6 + $0x100] sm:$0xff] }
  0x32   :  { %274 = vmatpush.msra.mxu2 %v105_v62  ;;  %315 = vmatpush.msra.mxu3 %v106_v63  ;;  %v4357_v30 = vld [vmem:[#allocation6 + $0x130] sm:$0xff]  ;;  %v4361_v32 = vld [vmem:[#allocation6 + $0x108] sm:$0xff]  ;;  %v4365_v33 = vld [vmem:[#allocation6 + $0x118] sm:$0xff] }
  0x33   :  { %193 = vmatmul.f32.vlgmr.msra.gmra.mxu0 %v95_v0  ;;  %234 = vmatmul.f32.vlgmr.msra.gmra.mxu1 %v95_v0  ;;  %v4367_v34 = vld [vmem:[#allocation6 + $0x110] sm:$0xff]  ;;  %v4370_v35 = vld [vmem:[#allocation6 + $0xe0] sm:$0xff]  ;;  %v4372_v36 = vld [vmem:[#allocation6 + $0xe8] sm:$0xff] }
  0x34   :  { %275 = vmatmul.f32.vlgmr.msra.gmra.mxu2 %v95_v0  ;;  %316 = vmatmul.f32.vlgmr.msra.gmra.mxu3 %v95_v0  ;;  %v4377_v37 = vld [vmem:[#allocation6 + $0xf8] sm:$0xff]  ;;  %v4379_v38 = vld [vmem:[#allocation6 + $0xf0] sm:$0xff]  ;;  %v4388_v40 = vld [vmem:[#allocation6 + $0xc0] sm:$0xff] }
  0x35   :  { %441 = vmatpush.msrb.mxu0 %v4273_v1  ;;  %461 = vmatpush.msrb.mxu1 %v4275_v2  ;;  %v98_v39 = vld [vmem:[%s6494_s0 + $0x18] sm:$0xff]  ;;  %v4390_v41 = vld [vmem:[#allocation6 + $0xc8] sm:$0xff]  ;;  %v4396_v43 = vld [vmem:[#allocation6 + $0xd0] sm:$0xff] }
  0x36   :  { %501 = vmatpush.msrb.mxu3 %v4277_v3  ;;  %481 = vmatpush.msrb.mxu2 %v4279_v4  ;;  %v4394_v42 = vld [vmem:[#allocation6 + $0xd8] sm:$0xff]  ;;  %v4398_v44 = vld [vmem:[#allocation6 + $0xa0] sm:$0xff]  ;;  %v4400_v45 = vld [vmem:[#allocation6 + $0xa8] sm:$0xff] }
  0x37   :  { %442 = vmatpush.msrb.mxu0 %v4281_v5  ;;  %462 = vmatpush.msrb.mxu1 %v4283_v6  ;;  %v4404_v46 = vld [vmem:[#allocation6 + $0xb8] sm:$0xff]  ;;  %v4406_v47 = vld [vmem:[#allocation6 + $0xb0] sm:$0xff]  ;;  %v4409_v48 = vld [vmem:[#allocation6 + $0x80] sm:$0xff] }
  0x38   :  { %502 = vmatpush.msrb.mxu3 %v4287_v7  ;;  %482 = vmatpush.msrb.mxu2 %v4289_v8  ;;  %v4411_v49 = vld [vmem:[#allocation6 + $0x88] sm:$0xff]  ;;  %v4416_v50 = vld [vmem:[#allocation6 + $0x98] sm:$0xff]  ;;  %v4418_v51 = vld [vmem:[#allocation6 + $0x90] sm:$0xff] }
  0x39   :  { %443 = vmatpush.msrb.mxu0 %v4292_v9  ;;  %463 = vmatpush.msrb.mxu1 %v4294_v10  ;;  %v99_v52 = vld [vmem:[%s6494_s0 + $0x20] sm:$0xff]  ;;  %v4429_v54 = vld [vmem:[#allocation6 + $0x68] sm:$0xff]  ;;  %v4433_v55 = vld [vmem:[#allocation6 + $0x78] sm:$0xff] }
  0x3a   :  { %503 = vmatpush.msrb.mxu3 %v4299_v11  ;;  %483 = vmatpush.msrb.mxu2 %v4301_v12  ;;  %v4427_v53 = vld [vmem:[#allocation6 + $0x60] sm:$0xff]  ;;  %v4435_v56 = vld [vmem:[#allocation6 + $0x70] sm:$0xff]  ;;  %v4439_v58 = vld [vmem:[#allocation6 + $0x48] sm:$0xff] }
  0x3b   :  { %196 = vmatmul.f32.gmra.mxu0 %v96_v13  ;;  %237 = vmatmul.f32.gmra.mxu1 %v96_v13  ;;  %v4437_v57 = vld [vmem:[#allocation6 + $0x40] sm:$0xff]  ;;  %6698 = vst [vmem:[#allocation14_spill] sm:$0xff] %v4439_v58  ;;  %v4443_v59 = vld [vmem:[#allocation6 + $0x58] sm:$0xff]  ;;  %v4445_v60 = vld [vmem:[#allocation6 + $0x50] sm:$0xff] }
  0x3c   :  { %278 = vmatmul.f32.gmra.mxu2 %v96_v13  ;;  %319 = vmatmul.f32.gmra.mxu3 %v96_v13  ;;  %v4448_v61 = vld [vmem:[#allocation6 + $0x20] sm:$0xff]  ;;  %v4450_v62 = vld [vmem:[#allocation6 + $0x28] sm:$0xff]  ;;  %v4455_v63 = vld [vmem:[#allocation6 + $0x30] sm:$0xff] }
  0x3d   :  { %444 = vmatpush.msrb.mxu0 %v4310_v14  ;;  %464 = vmatpush.msrb.mxu1 %v4312_v15  ;;  %v4457_v0 = vld [vmem:[#allocation6 + $0x38] sm:$0xff]  ;;  %v100_v13 = vld [vmem:[%s6494_s0 + $0x28] sm:$0xff] }
  0x3e   :  { %504 = vmatpush.msrb.mxu3 %v4316_v16  ;;  %484 = vmatpush.msrb.mxu2 %v4318_v17  ;;  %6699 = vst [vmem:[#allocation15_spill] sm:$0xff] %v4457_v0 }
  0x3f   :  { %445 = vmatpush.msrb.mxu0 %v4320_v18  ;;  %465 = vmatpush.msrb.mxu1 %v4322_v19 }
  0x40   :  { %505 = vmatpush.msrb.mxu3 %v4326_v20  ;;  %485 = vmatpush.msrb.mxu2 %v4328_v21 }
  0x41   :  { %446 = vmatpush.msrb.mxu0 %v4331_v22  ;;  %466 = vmatpush.msrb.mxu1 %v4333_v23 }
  0x42   :  { %506 = vmatpush.msrb.mxu3 %v4338_v24  ;;  %486 = vmatpush.msrb.mxu2 %v4340_v25 }
  0x43   :  { %199 = vmatmul.f32.gmra.mxu0 %v97_v26  ;;  %240 = vmatmul.f32.gmra.mxu1 %v97_v26 }
  0x44   :  { %281 = vmatmul.f32.gmra.mxu2 %v97_v26  ;;  %322 = vmatmul.f32.gmra.mxu3 %v97_v26  ;;  %v4466_v26 = vld [vmem:[#allocation6] sm:$0xff] }
  0x45   :  { %447 = vmatpush.msrb.mxu0 %v4349_v27  ;;  %467 = vmatpush.msrb.mxu1 %v4351_v28 }
  0x46   :  { %507 = vmatpush.msrb.mxu3 %v4355_v29  ;;  %487 = vmatpush.msrb.mxu2 %v4357_v30 }
  0x47   :  { %448 = vmatpush.msrb.mxu0 %v4359_v31  ;;  %468 = vmatpush.msrb.mxu1 %v4361_v32 }
  0x48   :  { %508 = vmatpush.msrb.mxu3 %v4365_v33  ;;  %488 = vmatpush.msrb.mxu2 %v4367_v34 }
  0x49   :  { %449 = vmatpush.msrb.mxu0 %v4370_v35  ;;  %469 = vmatpush.msrb.mxu1 %v4372_v36 }
  0x4a   :  { %509 = vmatpush.msrb.mxu3 %v4377_v37  ;;  %489 = vmatpush.msrb.mxu2 %v4379_v38 }
  0x4b   :  { %202 = vmatmul.f32.gmra.mxu0 %v98_v39  ;;  %243 = vmatmul.f32.gmra.mxu1 %v98_v39 }
  0x4c   :  { %284 = vmatmul.f32.gmra.mxu2 %v98_v39  ;;  %325 = vmatmul.f32.gmra.mxu3 %v98_v39  ;;  %v4468_v39 = vld [vmem:[#allocation6 + $0x8] sm:$0xff] }
  0x4d   :  { %450 = vmatpush.msrb.mxu0 %v4388_v40  ;;  %470 = vmatpush.msrb.mxu1 %v4390_v41 }
  0x4e   :  { %510 = vmatpush.msrb.mxu3 %v4394_v42  ;;  %490 = vmatpush.msrb.mxu2 %v4396_v43 }
  0x4f   :  { %451 = vmatpush.msrb.mxu0 %v4398_v44  ;;  %471 = vmatpush.msrb.mxu1 %v4400_v45 }
  0x50   :  { %511 = vmatpush.msrb.mxu3 %v4404_v46  ;;  %491 = vmatpush.msrb.mxu2 %v4406_v47 }
  0x51   :  { %452 = vmatpush.msrb.mxu0 %v4409_v48  ;;  %472 = vmatpush.msrb.mxu1 %v4411_v49 }
  0x52   :  { %512 = vmatpush.msrb.mxu3 %v4416_v50  ;;  %492 = vmatpush.msrb.mxu2 %v4418_v51 }
  0x53   :  { %205 = vmatmul.f32.gmra.mxu0 %v99_v52  ;;  %246 = vmatmul.f32.gmra.mxu1 %v99_v52 }
  0x54   :  { %287 = vmatmul.f32.gmra.mxu2 %v99_v52  ;;  %328 = vmatmul.f32.gmra.mxu3 %v99_v52  ;;  %v4472_v52 = vld [vmem:[#allocation6 + $0x10] sm:$0xff] }
  0x55   :  { %453 = vmatpush.msrb.mxu0 %v4427_v53  ;;  %473 = vmatpush.msrb.mxu1 %v4429_v54 }
  0x56   :  { %513 = vmatpush.msrb.mxu3 %v4433_v55  ;;  %493 = vmatpush.msrb.mxu2 %v4435_v56 }
  0x57   :  { %454 = vmatpush.msrb.mxu0 %v4437_v57  ;;  %474 = vmatpush.msrb.mxu1 %v4439_v58  ;;  %v4474_v58 = vld [vmem:[#allocation6 + $0x18] sm:$0xff] }
  0x58   :  { %514 = vmatpush.msrb.mxu3 %v4443_v59  ;;  %494 = vmatpush.msrb.mxu2 %v4445_v60 }
  0x59   :  { %455 = vmatpush.msrb.mxu0 %v4448_v61  ;;  %475 = vmatpush.msrb.mxu1 %v4450_v62 }
  0x5a   :  { %495 = vmatpush.msrb.mxu2 %v4455_v63  ;;  %515 = vmatpush.msrb.mxu3 %v4457_v0  ;;  %v101_v0 = vld [vmem:[%s6494_s0 + $0x30] sm:$0xff] }
  0x5b   :  { %208 = vmatmul.f32.gmra.mxu0 %v100_v13  ;;  %249 = vmatmul.f32.gmra.mxu1 %v100_v13 }
  0x5c   :  { %290 = vmatmul.f32.gmra.mxu2 %v100_v13  ;;  %331 = vmatmul.f32.gmra.mxu3 %v100_v13  ;;  %v102_v13 = vld [vmem:[%s6494_s0 + $0x38] sm:$0xff] }
  0x5d   :  { %456 = vmatpush.msrb.mxu0 %v4466_v26  ;;  %476 = vmatpush.msrb.mxu1 %v4468_v39 }
  0x5e   :  { %496 = vmatpush.msrb.mxu2 %v4472_v52  ;;  %516 = vmatpush.msrb.mxu3 %v4474_v58 }
  0x5f   :  { %657 = vmatpush.msra.mxu0 %v4273_v1  ;;  %677 = vmatpush.msra.mxu1 %v4275_v2 }
  0x60   :  { %697 = vmatpush.msra.mxu2 %v4279_v4  ;;  %717 = vmatpush.msra.mxu3 %v4277_v3 }
  0x61   :  { %658 = vmatpush.msra.mxu0 %v4281_v5  ;;  %678 = vmatpush.msra.mxu1 %v4283_v6 }
  0x62   :  { %698 = vmatpush.msra.mxu2 %v4289_v8  ;;  %718 = vmatpush.msra.mxu3 %v4287_v7 }
  0x63   :  { %211 = vmatmul.f32.gmra.mxu0 %v101_v0  ;;  %252 = vmatmul.f32.gmra.mxu1 %v101_v0 }
  0x64   :  { %293 = vmatmul.f32.gmra.mxu2 %v101_v0  ;;  %334 = vmatmul.f32.gmra.mxu3 %v101_v0  ;;  %v6508_v0 = vmov 0.0  }
  0x65   :  { %659 = vmatpush.msra.mxu0 %v4292_v9  ;;  %679 = vmatpush.msra.mxu1 %v4294_v10 }
  0x66   :  { %699 = vmatpush.msra.mxu2 %v4301_v12  ;;  %719 = vmatpush.msra.mxu3 %v4299_v11 }
  0x67   :  { %660 = vmatpush.msra.mxu0 %v4310_v14  ;;  %680 = vmatpush.msra.mxu1 %v4312_v15 }
  0x68   :  { %700 = vmatpush.msra.mxu2 %v4318_v17  ;;  %720 = vmatpush.msra.mxu3 %v4316_v16 }
  0x69   :  { %661 = vmatpush.msra.mxu0 %v4320_v18  ;;  %681 = vmatpush.msra.mxu1 %v4322_v19 }
  0x6a   :  { %701 = vmatpush.msra.mxu2 %v4328_v21  ;;  %721 = vmatpush.msra.mxu3 %v4326_v20 }
  0x6b   :  { %214 = vmatmul.f32.gmra.mxu0 %v102_v13  ;;  %255 = vmatmul.f32.gmra.mxu1 %v102_v13 }
  0x6c   :  { %296 = vmatmul.f32.gmra.mxu2 %v102_v13  ;;  %337 = vmatmul.f32.gmra.mxu3 %v102_v13  ;;  %v6700_v13 = vld [vmem:[#allocation14_spill] sm:$0xff] }
  0x6d   :  { %662 = vmatpush.msra.mxu0 %v4331_v22  ;;  %682 = vmatpush.msra.mxu1 %v4333_v23 }
  0x6e   :  { %702 = vmatpush.msra.mxu2 %v4340_v25  ;;  %722 = vmatpush.msra.mxu3 %v4338_v24 }
  0x6f   :  { %663 = vmatpush.msra.mxu0 %v4349_v27  ;;  %683 = vmatpush.msra.mxu1 %v4351_v28 }
  0x70   :  { %703 = vmatpush.msra.mxu2 %v4357_v30  ;;  %723 = vmatpush.msra.mxu3 %v4355_v29 }
  0x71   :  { %664 = vmatpush.msra.mxu0 %v4359_v31  ;;  %684 = vmatpush.msra.mxu1 %v4361_v32 }
  0x72   :  { %704 = vmatpush.msra.mxu2 %v4367_v34  ;;  %724 = vmatpush.msra.mxu3 %v4365_v33 }
  0x73   :  { %457 = vmatmul.f32.vlgmr.msrb.gmra.mxu0 %v6508_v0  ;;  %477 = vmatmul.f32.vlgmr.msrb.gmra.mxu1 %v6508_v0 }
  0x74   :  { %497 = vmatmul.f32.vlgmr.msrb.gmra.mxu2 %v6508_v0  ;;  %517 = vmatmul.f32.vlgmr.msrb.gmra.mxu3 %v6508_v0  ;;  %v6701_v0 = vld [vmem:[#allocation15_spill] sm:$0xff] }
  0x75   :  { %665 = vmatpush.msra.mxu0 %v4370_v35  ;;  %685 = vmatpush.msra.mxu1 %v4372_v36 }
  0x76   :  { %705 = vmatpush.msra.mxu2 %v4379_v38  ;;  %725 = vmatpush.msra.mxu3 %v4377_v37 }
  0x77   :  { %666 = vmatpush.msra.mxu0 %v4388_v40  ;;  %686 = vmatpush.msra.mxu1 %v4390_v41 }
  0x78   :  { %706 = vmatpush.msra.mxu2 %v4396_v43  ;;  %726 = vmatpush.msra.mxu3 %v4394_v42 }
  0x79   :  { %667 = vmatpush.msra.mxu0 %v4398_v44  ;;  %687 = vmatpush.msra.mxu1 %v4400_v45 }
  0x7a   :  { %707 = vmatpush.msra.mxu2 %v4406_v47  ;;  %727 = vmatpush.msra.mxu3 %v4404_v46 }
  0x7b   :  { %668 = vmatpush.msra.mxu0 %v4409_v48  ;;  %688 = vmatpush.msra.mxu1 %v4411_v49 }
  0x7c   :  { %708 = vmatpush.msra.mxu2 %v4418_v51  ;;  %728 = vmatpush.msra.mxu3 %v4416_v50 }
  0x7d   :  { %669 = vmatpush.msra.mxu0 %v4427_v53  ;;  %689 = vmatpush.msra.mxu1 %v4429_v54 }
  0x7e   :  { %709 = vmatpush.msra.mxu2 %v4435_v56  ;;  %729 = vmatpush.msra.mxu3 %v4433_v55 }
  0x7f   :  { %670 = vmatpush.msra.mxu0 %v4437_v57  ;;  %690 = vmatpush.msra.mxu1 %v6700_v13 }
  0x80   :  { %710 = vmatpush.msra.mxu2 %v4445_v60  ;;  %730 = vmatpush.msra.mxu3 %v4443_v59 }
  0x81   :  { %671 = vmatpush.msra.mxu0 %v4448_v61  ;;  %691 = vmatpush.msra.mxu1 %v4450_v62 }
  0x82   :  { %711 = vmatpush.msra.mxu2 %v4455_v63  ;;  %731 = vmatpush.msra.mxu3 %v6701_v0 }
  0x83   :  { %672 = vmatpush.msra.mxu0 %v4466_v26  ;;  %692 = vmatpush.msra.mxu1 %v4468_v39 }
  0x84   :  { %712 = vmatpush.msra.mxu2 %v4472_v52  ;;  %732 = vmatpush.msra.mxu3 %v4474_v58 }
  0x85   :  { %873 = vmatpush.msrb.mxu0 %v4273_v1  ;;  %893 = vmatpush.msrb.mxu1 %v4275_v2 }
  0x86   :  { %913 = vmatpush.msrb.mxu2 %v4279_v4  ;;  %933 = vmatpush.msrb.mxu3 %v4277_v3 }
  0x87   :  { %874 = vmatpush.msrb.mxu0 %v4281_v5  ;;  %894 = vmatpush.msrb.mxu1 %v4283_v6 }
  0x88   :  { %914 = vmatpush.msrb.mxu2 %v4289_v8  ;;  %934 = vmatpush.msrb.mxu3 %v4287_v7 }
  0x89   :  { %875 = vmatpush.msrb.mxu0 %v4292_v9  ;;  %895 = vmatpush.msrb.mxu1 %v4294_v10 }
  0x8a   :  { %915 = vmatpush.msrb.mxu2 %v4301_v12  ;;  %935 = vmatpush.msrb.mxu3 %v4299_v11 }
  0x8b   :  { %876 = vmatpush.msrb.mxu0 %v4310_v14  ;;  %896 = vmatpush.msrb.mxu1 %v4312_v15 }
  0x8c   :  { %916 = vmatpush.msrb.mxu2 %v4318_v17  ;;  %936 = vmatpush.msrb.mxu3 %v4316_v16 }
  0x8d   :  { %877 = vmatpush.msrb.mxu0 %v4320_v18  ;;  %897 = vmatpush.msrb.mxu1 %v4322_v19 }
  0x8e   :  { %917 = vmatpush.msrb.mxu2 %v4328_v21  ;;  %937 = vmatpush.msrb.mxu3 %v4326_v20 }
  0x8f   :  { %878 = vmatpush.msrb.mxu0 %v4331_v22  ;;  %898 = vmatpush.msrb.mxu1 %v4333_v23 }
  0x90   :  { %918 = vmatpush.msrb.mxu2 %v4340_v25  ;;  %938 = vmatpush.msrb.mxu3 %v4338_v24 }
  0x91   :  { %879 = vmatpush.msrb.mxu0 %v4349_v27  ;;  %899 = vmatpush.msrb.mxu1 %v4351_v28 }
  0x92   :  { %919 = vmatpush.msrb.mxu2 %v4357_v30  ;;  %939 = vmatpush.msrb.mxu3 %v4355_v29  ;;  %v167_v30 = vld [vmem:[%s6497_s3] sm:$0xf] }
  0x93   :  { %880 = vmatpush.msrb.mxu0 %v4359_v31  ;;  %900 = vmatpush.msrb.mxu1 %v4361_v32 }
  0x94   :  { %920 = vmatpush.msrb.mxu2 %v4367_v34  ;;  %940 = vmatpush.msrb.mxu3 %v4365_v33  ;;  %v4671_v33 = vperm.slane %v167_v30, 0  ;;  %v4673_v34 = vperm.slane %v167_v30, 1 }
  0x95   :  { %881 = vmatpush.msrb.mxu0 %v4370_v35  ;;  %901 = vmatpush.msrb.mxu1 %v4372_v36 }
  0x96   :  { %921 = vmatpush.msrb.mxu2 %v4379_v38  ;;  %941 = vmatpush.msrb.mxu3 %v4377_v37  ;;  %6719 = vst [vmem:[#allocation31_spill] sm:$0xff] %v4671_v33 }
  0x97   :  { %882 = vmatpush.msrb.mxu0 %v4388_v40  ;;  %902 = vmatpush.msrb.mxu1 %v4390_v41  ;;  %6720 = vst [vmem:[#allocation32_spill] sm:$0xff] %v4673_v34 }
  0x98   :  { %922 = vmatpush.msrb.mxu2 %v4396_v43  ;;  %942 = vmatpush.msrb.mxu3 %v4394_v42 }
  0x99   :  { %883 = vmatpush.msrb.mxu0 %v4398_v44  ;;  %903 = vmatpush.msrb.mxu1 %v4400_v45  ;;  %v4681_v44 = vperm.slane %v167_v30, 3 }
  0x9a   :  { %923 = vmatpush.msrb.mxu2 %v4406_v47  ;;  %943 = vmatpush.msrb.mxu3 %v4404_v46 }
  0x9b   :  { %884 = vmatpush.msrb.mxu0 %v4409_v48  ;;  %904 = vmatpush.msrb.mxu1 %v4411_v49  ;;  %6723 = vst [vmem:[#allocation35_spill] sm:$0xff] %v4681_v44 }
  0x9c   :  { %924 = vmatpush.msrb.mxu2 %v4418_v51  ;;  %944 = vmatpush.msrb.mxu3 %v4416_v50 }
  0x9d   :  { %885 = vmatpush.msrb.mxu0 %v4427_v53  ;;  %905 = vmatpush.msrb.mxu1 %v4429_v54 }
  0x9e   :  { %925 = vmatpush.msrb.mxu2 %v4435_v56  ;;  %945 = vmatpush.msrb.mxu3 %v4433_v55 }
  0x9f   :  { %886 = vmatpush.msrb.mxu0 %v4437_v57  ;;  %906 = vmatpush.msrb.mxu1 %v6700_v13  ;;  %v4686_v57 = vperm.slane %v167_v30, 2 }
  0xa0   :  { %926 = vmatpush.msrb.mxu2 %v4445_v60  ;;  %946 = vmatpush.msrb.mxu3 %v4443_v59 }
  0xa1   :  { %887 = vmatpush.msrb.mxu0 %v4448_v61  ;;  %907 = vmatpush.msrb.mxu1 %v4450_v62  ;;  %6725 = vst [vmem:[#allocation37_spill] sm:$0xff] %v4686_v57 }
  0xa2   :  { %927 = vmatpush.msrb.mxu2 %v4455_v63  ;;  %947 = vmatpush.msrb.mxu3 %v6701_v0 }
  0xa3   :  { %888 = vmatpush.msrb.mxu0 %v4466_v26  ;;  %908 = vmatpush.msrb.mxu1 %v4468_v39 }
  0xa4   :  { %928 = vmatpush.msrb.mxu2 %v4472_v52  ;;  %948 = vmatpush.msrb.mxu3 %v4474_v58 }
  0xb0   :  { %v194_v1 = vpop.f32.mrf.mxu0  ;;  %v235_v2 = vpop.f32.mrf.mxu1 }
  0xb1   :  { %v195_v36 = vadd.f32 %v194_v1, %v4671_v33  ;;  %v236_v37 = vadd.f32 %v235_v2, %v4673_v34 }
  0xb7   :  { %v276_v3 = vpop.f32.mrf.mxu2  ;;  %v317_v4 = vpop.f32.mrf.mxu3 }
  0xb8   :  { %v4618_v5 = vpop.f32.mrf.mxu0  ;;  %v4620_v6 = vpop.f32.mrf.mxu1  ;;  %v318_v47 = vadd.f32 %v317_v4, %v4681_v44  ;;  %v277_v60 = vadd.f32 %v276_v3, %v4686_v57 }
  0xbf   :  { %v4622_v7 = vpop.f32.mrf.mxu2  ;;  %v4624_v8 = vpop.f32.mrf.mxu3 }
  0xc0   :  { %v4626_v9 = vpop.f32.mrf.mxu0  ;;  %v4628_v10 = vpop.f32.mrf.mxu1 }
  0xc7   :  { %v4630_v11 = vpop.f32.mrf.mxu2  ;;  %v4632_v12 = vpop.f32.mrf.mxu3 }
  0xc8   :  { %v4634_v14 = vpop.f32.mrf.mxu0  ;;  %v4636_v15 = vpop.f32.mrf.mxu1 }
  0xc9   :  { %6702 = vst [vmem:[#allocation14_spill] sm:$0xff] %v4634_v14 }
  0xca   :  { %6703 = vst [vmem:[#allocation15_spill] sm:$0xff] %v4636_v15 }
  0xcf   :  { %v4638_v16 = vpop.f32.mrf.mxu2  ;;  %v4640_v17 = vpop.f32.mrf.mxu3 }
  0xd0   :  { %6704 = vst [vmem:[#allocation16_spill] sm:$0xff] %v4638_v16  ;;  %v4642_v18 = vpop.f32.mrf.mxu0  ;;  %v4644_v19 = vpop.f32.mrf.mxu1  ;;  %v4870_v16 = vld [vmem:[#allocation6 + $0x70] sm:$0xff] }
  0xd1   :  { %6705 = vst [vmem:[#allocation17_spill] sm:$0xff] %v4640_v17  ;;  %v4874_v17 = vld [vmem:[#allocation6 + $0x78] sm:$0xff] }
  0xd2   :  { %6706 = vst [vmem:[#allocation18_spill] sm:$0xff] %v4642_v18  ;;  %v4868_v18 = vld [vmem:[#allocation6 + $0x68] sm:$0xff] }
  0xd3   :  { %6707 = vst [vmem:[#allocation19_spill] sm:$0xff] %v4644_v19  ;;  %v4866_v19 = vld [vmem:[#allocation6 + $0x60] sm:$0xff] }
  0xd4   :  { %6740 = vst [vmem:[#allocation52_spill] sm:$0xff] %v4868_v18 }
  0xd5   :  { %6741 = vst [vmem:[#allocation53_spill] sm:$0xff] %v4870_v16 }
  0xd6   :  { %6742 = vst [vmem:[#allocation54_spill] sm:$0xff] %v4874_v17 }
  0xd7   :  { %v4646_v20 = vpop.f32.mrf.mxu3  ;;  %v4652_v23 = vpop.f32.mrf.mxu2 }
  0xd8   :  { %6708 = vst [vmem:[#allocation20_spill] sm:$0xff] %v4646_v20  ;;  %v4648_v21 = vpop.f32.mrf.mxu0  ;;  %v4650_v22 = vpop.f32.mrf.mxu1 }
  0xd9   :  { %6709 = vst [vmem:[#allocation21_spill] sm:$0xff] %v4648_v21  ;;  %v4844_v21 = vld [vmem:[#allocation6 + $0xb0] sm:$0xff] }
  0xda   :  { %6710 = vst [vmem:[#allocation22_spill] sm:$0xff] %v4650_v22  ;;  %v4842_v22 = vld [vmem:[#allocation6 + $0xa8] sm:$0xff] }
  0xdb   :  { %6711 = vst [vmem:[#allocation23_spill] sm:$0xff] %v4652_v23 }
  0xdf   :  { %v4654_v24 = vpop.f32.mrf.mxu3  ;;  %v4660_v28 = vpop.f32.mrf.mxu2 }
  0xe0   :  { %6712 = vst [vmem:[#allocation24_spill] sm:$0xff] %v4654_v24  ;;  %v4656_v25 = vpop.f32.mrf.mxu0  ;;  %v4658_v27 = vpop.f32.mrf.mxu1  ;;  %v4840_v24 = vld [vmem:[#allocation6 + $0xa0] sm:$0xff] }
  0xe1   :  { %6713 = vst [vmem:[#allocation25_spill] sm:$0xff] %v4656_v25 }
  0xe2   :  { %6714 = vst [vmem:[#allocation26_spill] sm:$0xff] %v4658_v27  ;;  %v4830_v27 = vld [vmem:[#allocation6 + $0xc8] sm:$0xff] }
  0xe3   :  { %6715 = vst [vmem:[#allocation27_spill] sm:$0xff] %v4660_v28  ;;  %v4836_v28 = vld [vmem:[#allocation6 + $0xd8] sm:$0xff] }
  0xe7   :  { %v4662_v29 = vpop.f32.mrf.mxu3  ;;  %v4675_v35 = vpop.f32.mrf.mxu2 }
  0xe8   :  { %6716 = vst [vmem:[#allocation28_spill] sm:$0xff] %v4662_v29  ;;  %v4667_v31 = vpop.f32.mrf.mxu0  ;;  %v4669_v32 = vpop.f32.mrf.mxu1  ;;  %v4828_v29 = vld [vmem:[#allocation6 + $0xc0] sm:$0xff] }
  0xe9   :  { %6717 = vst [vmem:[#allocation29_spill] sm:$0xff] %v4667_v31  ;;  %v242_v31 = vadd.f32 %v4628_v10, %v4673_v34 }
  0xea   :  { %6718 = vst [vmem:[#allocation30_spill] sm:$0xff] %v4669_v32  ;;  %v201_v32 = vadd.f32 %v4626_v9, %v4671_v33  ;;  %v4832_v9 = vld [vmem:[#allocation6 + $0xd0] sm:$0xff] }
  0xeb   :  { %6721 = vst [vmem:[#allocation33_spill] sm:$0xff] %v4675_v35 }
  0xef   :  { %v4679_v38 = vpop.f32.mrf.mxu3  ;;  %v4684_v48 = vpop.f32.mrf.mxu2 }
  0xf0   :  { %6722 = vst [vmem:[#allocation34_spill] sm:$0xff] %v4679_v38  ;;  %v458_v40 = vpop.f32.mrf.mxu0  ;;  %v478_v41 = vpop.f32.mrf.mxu1  ;;  %v4816_v38 = vld [vmem:[#allocation6 + $0xf0] sm:$0xff] }
  0xf1   :  { %v521_v42 = vadd.f32 %v458_v40, %v195_v36  ;;  %v522_v43 = vadd.f32 %v478_v41, %v236_v37  ;;  %6724 = vst [vmem:[#allocation36_spill] sm:$0xff] %v4684_v48  ;;  %v4814_v48 = vld [vmem:[#allocation6 + $0xe8] sm:$0xff] }
  0xf3   :  { %v3718_v45 = vmul.f32 -1.442695, %v521_v42  ;;  %v3719_v46 = vmul.f32 -1.442695, %v522_v43 }
  0xf5   :  { %3775 = vpow2.f32 %v3718_v45 }
  0xf6   :  { %3777 = vpow2.f32 %v3719_v46 }
  0xf7   :  { %v518_v49 = vpop.f32.mrf.mxu3  ;;  %v498_v58 = vpop.f32.mrf.mxu2 }
  0xf8   :  { %v524_v50 = vadd.f32 %v518_v49, %v318_v47  ;;  %v523_v63 = vadd.f32 %v498_v58, %v277_v60 }
  0xfa   :  { %v3720_v51 = vmul.f32 -1.442695, %v524_v50 }
  0xfb   :  { %v3776_v53 = vpop.eup %3775 }
  0xfc   :  { %v3778_v54 = vpop.eup %3777  ;;  %v528_v55 = vadd.f32 1.0, %v3776_v53  ;;  %3779 = vpow2.f32 %v3720_v51 }
  0xfd   :  { %v547_v56 = vadd.f32 1.0, %v3778_v54 }
  0xfe   :  { %3781 = vrcp.f32 %v528_v55  ;;  %v540_v1 = vand.u32 2147483648, %v528_v55  ;;  %v538_v30 = vand.u32 2147483647, %v528_v55  ;;  %vm534_vm2 = vweird.f32 %v528_v55 }
  0xff   :  { %3783 = vrcp.f32 %v547_v56  ;;  %v559_v2 = vand.u32 2147483648, %v547_v56  ;;  %v557_v37 = vand.u32 2147483647, %v547_v56  ;;  %vm553_vm3 = vweird.f32 %v547_v56 }
 0x100   :  { %v541_v41 = vor.u32 1.1754944e-38, %v540_v1  ;;  %vm539_vm5 = vcmp.eq.f32.partialorder %v538_v30, 8.507059e+37 }
 0x101   :  { %v560_v45 = vor.u32 1.1754944e-38, %v559_v2  ;;  %vm558_vm7 = vcmp.eq.f32.partialorder %v557_v37, 8.507059e+37 }
 0x102   :  { %v3780_v59 = vpop.eup %3779 }
 0x103   :  { %v567_v61 = vadd.f32 1.0, %v3780_v59 }
 0x104   :  { %v3782_v62 = vpop.eup %3781 }
 0x105   :  { %v3784_v26 = vpop.eup %3783  ;;  %v530_v39 = vmul.f32 %v3782_v62, %v528_v55  ;;  %3785 = vrcp.f32 %v567_v61  ;;  %vm535_vm0 = vweird.f32 %v3782_v62  ;;  %vm573_vm9 = vweird.f32 %v567_v61 }
 0x106   :  { %v549_v52 = vmul.f32 %v3784_v26, %v547_v56  ;;  %3787 = vtanh.f32 %v523_v63  ;;  %vm554_vm1 = vweird.f32 %v3784_v26  ;;  %vm536_vm4 = vmor %vm534_vm2, %vm535_vm0  ;;  %v579_v56 = vand.u32 2147483648, %v567_v61 }
 0x107   :  { %v531_v0 = vsub.f32 1.0, %v530_v39  ;;  %vm555_vm6 = vmor %vm553_vm3, %vm554_vm1 }
 0x108   :  { %v550_v13 = vsub.f32 1.0, %v549_v52  ;;  %v580_v39 = vor.u32 1.1754944e-38, %v579_v56 }
 0x109   :  { %v532_v4 = vmul.f32 %v3782_v62, %v531_v0 }
 0x10a   :  { %v551_v36 = vmul.f32 %v3784_v26, %v550_v13  ;;  %v198_v13 = vadd.f32 %v4618_v5, %v4671_v33  ;;  %v4894_v33 = vld [vmem:[#allocation6 + $0x30] sm:$0xff] }
 0x10b   :  { %v3786_v40 = vpop.eup %3785  ;;  %v533_v3 = vadd.f32 %v3782_v62, %v532_v4 }
 0x10c   :  { %v552_v42 = vadd.f32 %v3784_v26, %v551_v36  ;;  %v569_v43 = vmul.f32 %v3786_v40, %v567_v61  ;;  %v3788_v47 = vpop.eup %3787  ;;  %vm574_vm8 = vweird.f32 %v3786_v40 }
 0x10d   :  { %v537_v46 = vsel %vm536_vm4, %v3782_v62, %v533_v3  ;;  %v577_v62 = vand.u32 2147483647, %v567_v61  ;;  %vm575_vm10 = vmor %vm573_vm9, %vm574_vm8  ;;  %v239_v61 = vadd.f32 %v4620_v6, %v4673_v34  ;;  %v4886_v34 = vld [vmem:[#allocation6 + $0x58] sm:$0xff] }
 0x10e   :  { %v542_v49 = vsel %vm539_vm5, %v541_v41, %v537_v46  ;;  %v556_v50 = vsel %vm555_vm6, %v3784_v26, %v552_v42  ;;  %v570_v51 = vsub.f32 1.0, %v569_v43  ;;  %6746 = vst [vmem:[#allocation58_spill] sm:$0xff] %v4886_v34 }
 0x10f   :  { %v561_v53 = vsel %vm558_vm7, %v560_v45, %v556_v50  ;;  %v584_v54 = vmul.f32 %v3788_v47, %v542_v49  ;;  %vm578_vm11 = vcmp.eq.f32.partialorder %v577_v62, 8.507059e+37  ;;  %v280_v49 = vadd.f32 %v4622_v7, %v4686_v57 }
 0x110   :  { %v583_v58 = vmul.f32 0.0, %v561_v53  ;;  %v571_v59 = vmul.f32 %v3786_v40, %v570_v51 }
 0x112   :  { %v4689_v60 = vadd.f32 %v584_v54, %v583_v58  ;;  %v572_v55 = vadd.f32 %v3786_v40, %v571_v59 }
 0x114   :  { %3789 = vtanh.f32 %v4689_v60  ;;  %v576_v63 = vsel %vm575_vm10, %v3786_v40, %v572_v55  ;;  %v321_v40 = vadd.f32 %v4624_v8, %v4681_v44 }
 0x115   :  { %v581_v52 = vsel %vm578_vm11, %v580_v39, %v576_v63 }
 0x11a   :  { %v3790_v26 = vpop.eup %3789 }
 0x11b   :  { %v4692_v0 = vmul.f32 %v3790_v26, %v581_v52 }
 0x11d   :  { %6726 = vst [vmem:[#allocation38_spill] sm:$0xff] %v4692_v0  ;;  %673 = vmatmul.f32.vlgmr.msra.gmra.mxu0 %v4692_v0  ;;  %693 = vmatmul.f32.vlgmr.msra.gmra.mxu1 %v4692_v0 }
 0x11e   :  { %713 = vmatmul.f32.vlgmr.msra.gmra.mxu2 %v4692_v0  ;;  %733 = vmatmul.f32.vlgmr.msra.gmra.mxu3 %v4692_v0 }
 0x19a   :  { %v674_v1 = vpop.f32.mrf.mxu0  ;;  %v694_v2 = vpop.f32.mrf.mxu1 }
 0x19b   :  { %v737_v4 = vadd.f32 %v674_v1, %v198_v13  ;;  %v738_v30 = vadd.f32 %v694_v2, %v239_v61 }
 0x19d   :  { %v3721_v36 = vmul.f32 -1.442695, %v737_v4  ;;  %v3722_v37 = vmul.f32 -1.442695, %v738_v30 }
 0x19f   :  { %3791 = vpow2.f32 %v3721_v36 }
 0x1a0   :  { %3793 = vpow2.f32 %v3722_v37 }
 0x1a1   :  { %v734_v3 = vpop.f32.mrf.mxu3  ;;  %v714_v6 = vpop.f32.mrf.mxu2 }
 0x1a2   :  { %v740_v41 = vadd.f32 %v734_v3, %v321_v40  ;;  %v739_v53 = vadd.f32 %v714_v6, %v280_v49 }
 0x1a4   :  { %v3723_v42 = vmul.f32 -1.442695, %v740_v41 }
 0x1a5   :  { %v3792_v43 = vpop.eup %3791 }
 0x1a6   :  { %v3794_v45 = vpop.eup %3793  ;;  %v744_v5 = vadd.f32 1.0, %v3792_v43  ;;  %3795 = vpow2.f32 %v3723_v42 }
 0x1a7   :  { %v763_v46 = vadd.f32 1.0, %v3794_v45 }
 0x1a8   :  { %3797 = vrcp.f32 %v744_v5  ;;  %v756_v56 = vand.u32 2147483648, %v744_v5  ;;  %v754_v39 = vand.u32 2147483647, %v744_v5  ;;  %vm750_vm14 = vweird.f32 %v744_v5 }
 0x1a9   :  { %3799 = vrcp.f32 %v763_v46  ;;  %v775_v62 = vand.u32 2147483648, %v763_v46  ;;  %v773_v52 = vand.u32 2147483647, %v763_v46  ;;  %vm769_vm15 = vweird.f32 %v763_v46 }
 0x1aa   :  { %v757_v61 = vor.u32 1.1754944e-38, %v756_v56  ;;  %vm755_vm2 = vcmp.eq.f32.partialorder %v754_v39, 8.507059e+37  ;;  %v4730_v56 = vld [vmem:[#allocation6 + $0x1c8] sm:$0xff]  ;;  %v4740_v39 = vld [vmem:[#allocation6 + $0x1a0] sm:$0xff] }
 0x1ab   :  { %v776_v4 = vor.u32 1.1754944e-38, %v775_v62  ;;  %vm774_vm3 = vcmp.eq.f32.partialorder %v773_v52, 8.507059e+37  ;;  %6732 = vst [vmem:[#allocation44_spill] sm:$0xff] %v4730_v56  ;;  %v4732_v62 = vld [vmem:[#allocation6 + $0x1d0] sm:$0xff] }
 0x1ac   :  { %v3796_v47 = vpop.eup %3795  ;;  %v4744_v52 = vld [vmem:[#allocation6 + $0x1b0] sm:$0xff] }
 0x1ad   :  { %v783_v50 = vadd.f32 1.0, %v3796_v47 }
 0x1ae   :  { %v3798_v51 = vpop.eup %3797 }
 0x1af   :  { %v3800_v8 = vpop.eup %3799  ;;  %v746_v54 = vmul.f32 %v3798_v51, %v744_v5  ;;  %3801 = vrcp.f32 %v783_v50  ;;  %vm751_vm12 = vweird.f32 %v3798_v51  ;;  %v795_v6 = vand.u32 2147483648, %v783_v50 }
 0x1b0   :  { %v765_v58 = vmul.f32 %v3800_v8, %v763_v46  ;;  %3803 = vtanh.f32 %v739_v53  ;;  %vm770_vm13 = vweird.f32 %v3800_v8  ;;  %vm752_vm0 = vmor %vm750_vm14, %vm751_vm12  ;;  %vm789_vm5 = vweird.f32 %v783_v50 }
 0x1b1   :  { %v747_v59 = vsub.f32 1.0, %v746_v54  ;;  %vm771_vm1 = vmor %vm769_vm15, %vm770_vm13  ;;  %v793_v47 = vand.u32 2147483647, %v783_v50 }
 0x1b2   :  { %v766_v55 = vsub.f32 1.0, %v765_v58  ;;  %v4718_v58 = vld [vmem:[#allocation6 + $0x1e8] sm:$0xff] }
 0x1b3   :  { %v748_v63 = vmul.f32 %v3798_v51, %v747_v59  ;;  %vm794_vm7 = vcmp.eq.f32.partialorder %v793_v47, 8.507059e+37  ;;  %1109 = vmatpush.msra.mxu1 %v4718_v58  ;;  %v4724_v59 = vld [vmem:[#allocation6 + $0x1f8] sm:$0xff]  ;;  %v4800_v47 = vld [vmem:[#allocation6 + $0x100] sm:$0xff] }
 0x1b4   :  { %v767_v26 = vmul.f32 %v3800_v8, %v766_v55  ;;  %6730 = vst [vmem:[#allocation42_spill] sm:$0xff] %v4724_v59  ;;  %1149 = vmatpush.msra.mxu3 %v4724_v59  ;;  %v4728_v55 = vld [vmem:[#allocation6 + $0x1c0] sm:$0xff] }
 0x1b5   :  { %v3802_v13 = vpop.eup %3801  ;;  %v749_v7 = vadd.f32 %v3798_v51, %v748_v63  ;;  %6731 = vst [vmem:[#allocation43_spill] sm:$0xff] %v4728_v55  ;;  %1110 = vmatpush.msra.mxu1 %v4730_v56  ;;  %v4736_v63 = vld [vmem:[#allocation6 + $0x1d8] sm:$0xff] }
 0x1b6   :  { %v768_v1 = vadd.f32 %v3800_v8, %v767_v26  ;;  %v785_v2 = vmul.f32 %v3802_v13, %v783_v50  ;;  %v3804_v36 = vpop.eup %3803  ;;  %vm790_vm4 = vweird.f32 %v3802_v13  ;;  %v4720_v50 = vld [vmem:[#allocation6 + $0x1f0] sm:$0xff]  ;;  %1150 = vmatpush.msra.mxu3 %v4736_v63  ;;  %v4742_v26 = vld [vmem:[#allocation6 + $0x1a8] sm:$0xff] }
 0x1b7   :  { %v753_v30 = vsel %vm752_vm0, %v3798_v51, %v749_v7  ;;  %vm791_vm6 = vmor %vm789_vm5, %vm790_vm4  ;;  %v796_v51 = vor.u32 1.1754944e-38, %v795_v6  ;;  %6729 = vst [vmem:[#allocation41_spill] sm:$0xff] %v4720_v50  ;;  %1129 = vmatpush.msra.mxu2 %v4720_v50  ;;  %1111 = vmatpush.msra.mxu1 %v4742_v26  ;;  %v4752_v7 = vld [vmem:[#allocation6 + $0x180] sm:$0xff]  ;;  %v4796_v6 = vld [vmem:[#allocation6 + $0x138] sm:$0xff] }
 0x1b8   :  { %v758_v37 = vsel %vm755_vm2, %v757_v61, %v753_v30  ;;  %v772_v40 = vsel %vm771_vm1, %v3800_v8, %v768_v1  ;;  %v786_v3 = vsub.f32 1.0, %v785_v2  ;;  %v4754_v61 = vld [vmem:[#allocation6 + $0x188] sm:$0xff]  ;;  %v4756_v1 = vld [vmem:[#allocation6 + $0x190] sm:$0xff]  ;;  %v4760_v2 = vld [vmem:[#allocation6 + $0x198] sm:$0xff]  ;;  %6739 = vst [vmem:[#allocation51_spill] sm:$0xff] %v4796_v6 }
 0x1b9   :  { %v777_v41 = vsel %vm774_vm3, %v776_v4, %v772_v40  ;;  %v800_v42 = vmul.f32 %v3804_v36, %v758_v37  ;;  %1130 = vmatpush.msra.mxu2 %v4732_v62  ;;  %6733 = vst [vmem:[#allocation45_spill] sm:$0xff] %v4754_v61  ;;  %1112 = vmatpush.msra.mxu1 %v4754_v61  ;;  %v4764_v4 = vld [vmem:[#allocation6 + $0x160] sm:$0xff]  ;;  %v4766_v30 = vld [vmem:[#allocation6 + $0x168] sm:$0xff]  ;;  %v4768_v36 = vld [vmem:[#allocation6 + $0x170] sm:$0xff] }
 0x1ba   :  { %v799_v43 = vmul.f32 %v777_v41, %v4689_v60  ;;  %v787_v45 = vmul.f32 %v3802_v13, %v786_v3  ;;  %v4716_v60 = vld [vmem:[#allocation6 + $0x1e0] sm:$0xff]  ;;  %6734 = vst [vmem:[#allocation46_spill] sm:$0xff] %v4756_v1  ;;  %v4772_v37 = vld [vmem:[#allocation6 + $0x178] sm:$0xff]  ;;  %v4778_v3 = vld [vmem:[#allocation6 + $0x148] sm:$0xff] }
 0x1bb   :  { %6728 = vst [vmem:[#allocation40_spill] sm:$0xff] %v4716_v60  ;;  %1089 = vmatpush.msra.mxu0 %v4716_v60  ;;  %1131 = vmatpush.msra.mxu2 %v4744_v52  ;;  %v4776_v40 = vld [vmem:[#allocation6 + $0x140] sm:$0xff]  ;;  %v4780_v41 = vld [vmem:[#allocation6 + $0x150] sm:$0xff] }
 0x1bc   :  { %v4707_v5 = vadd.f32 %v800_v42, %v799_v43  ;;  %v788_v46 = vadd.f32 %v3802_v13, %v787_v45  ;;  %1113 = vmatpush.msra.mxu1 %v4766_v30  ;;  %6735 = vst [vmem:[#allocation47_spill] sm:$0xff] %v4772_v37  ;;  %v4784_v42 = vld [vmem:[#allocation6 + $0x158] sm:$0xff]  ;;  %v4788_v43 = vld [vmem:[#allocation6 + $0x120] sm:$0xff]  ;;  %v4790_v45 = vld [vmem:[#allocation6 + $0x128] sm:$0xff] }
 0x1bd   :  { %1090 = vmatpush.msra.mxu0 %v4728_v55  ;;  %1132 = vmatpush.msra.mxu2 %v4756_v1  ;;  %6736 = vst [vmem:[#allocation48_spill] sm:$0xff] %v4780_v41 }
 0x1be   :  { %3805 = vtanh.f32 %v4707_v5  ;;  %v792_v49 = vsel %vm791_vm6, %v3802_v13, %v788_v46  ;;  %v4748_v13 = vld [vmem:[#allocation6 + $0x1b8] sm:$0xff]  ;;  %1114 = vmatpush.msra.mxu1 %v4778_v3  ;;  %6737 = vst [vmem:[#allocation49_spill] sm:$0xff] %v4790_v45  ;;  %v4792_v46 = vld [vmem:[#allocation6 + $0x130] sm:$0xff] }
 0x1bf   :  { %v797_v8 = vsel %vm794_vm7, %v796_v51, %v792_v49  ;;  %1091 = vmatpush.msra.mxu0 %v4740_v39  ;;  %1151 = vmatpush.msra.mxu3 %v4748_v13  ;;  %6738 = vst [vmem:[#allocation50_spill] sm:$0xff] %v4792_v46  ;;  %v4802_v49 = vld [vmem:[#allocation6 + $0x108] sm:$0xff]  ;;  %v4804_v51 = vld [vmem:[#allocation6 + $0x110] sm:$0xff] }
 0x1c0   :  { %1133 = vmatpush.msra.mxu2 %v4768_v36  ;;  %1115 = vmatpush.msra.mxu1 %v4790_v45 }
 0x1c1   :  { %1092 = vmatpush.msra.mxu0 %v4752_v7  ;;  %1152 = vmatpush.msra.mxu3 %v4760_v2 }
 0x1c2   :  { %1134 = vmatpush.msra.mxu2 %v4780_v41  ;;  %1116 = vmatpush.msra.mxu1 %v4802_v49 }
 0x1c3   :  { %1093 = vmatpush.msra.mxu0 %v4764_v4  ;;  %1153 = vmatpush.msra.mxu3 %v4772_v37 }
 0x1c4   :  { %v3806_v53 = vpop.eup %3805  ;;  %1135 = vmatpush.msra.mxu2 %v4792_v46  ;;  %1117 = vmatpush.msra.mxu1 %v4814_v48 }
 0x1c5   :  { %v4710_v54 = vmul.f32 %v3806_v53, %v797_v8  ;;  %1094 = vmatpush.msra.mxu0 %v4776_v40  ;;  %1154 = vmatpush.msra.mxu3 %v4784_v42  ;;  %v4808_v53 = vld [vmem:[#allocation6 + $0x118] sm:$0xff]  ;;  %v4812_v8 = vld [vmem:[#allocation6 + $0xe0] sm:$0xff] }
 0x1c6   :  { %1136 = vmatpush.msra.mxu2 %v4804_v51  ;;  %1118 = vmatpush.msra.mxu1 %v4830_v27 }
 0x1c7   :  { %6727 = vst [vmem:[#allocation39_spill] sm:$0xff] %v4710_v54  ;;  %889 = vmatmul.f32.vlgmr.msrb.gmra.mxu0 %v4710_v54  ;;  %909 = vmatmul.f32.vlgmr.msrb.gmra.mxu1 %v4710_v54 }
 0x1c8   :  { %929 = vmatmul.f32.vlgmr.msrb.gmra.mxu2 %v4710_v54  ;;  %949 = vmatmul.f32.vlgmr.msrb.gmra.mxu3 %v4710_v54  ;;  %v4824_v54 = vld [vmem:[#allocation6 + $0xf8] sm:$0xff] }
 0x1c9   :  { %1095 = vmatpush.msra.mxu0 %v4788_v43  ;;  %1155 = vmatpush.msra.mxu3 %v4796_v6 }
 0x1ca   :  { %1137 = vmatpush.msra.mxu2 %v4816_v38  ;;  %1119 = vmatpush.msra.mxu1 %v4842_v22 }
 0x1cb   :  { %1096 = vmatpush.msra.mxu0 %v4800_v47  ;;  %1156 = vmatpush.msra.mxu3 %v4808_v53 }
 0x1cc   :  { %1138 = vmatpush.msra.mxu2 %v4832_v9 }
 0x1cd   :  { %1097 = vmatpush.msra.mxu0 %v4812_v8  ;;  %1157 = vmatpush.msra.mxu3 %v4824_v54 }
 0x1ce   :  { %1139 = vmatpush.msra.mxu2 %v4844_v21 }
 0x1cf   :  { %1098 = vmatpush.msra.mxu0 %v4828_v29  ;;  %1158 = vmatpush.msra.mxu3 %v4836_v28 }
 0x1d1   :  { %1099 = vmatpush.msra.mxu0 %v4840_v24 }
 0x244   :  { %v890_v0 = vpop.f32.mrf.mxu0  ;;  %v910_v35 = vpop.f32.mrf.mxu1 }
 0x245   :  { %v953_v25 = vadd.f32 %v890_v0, %v201_v32  ;;  %v954_v10 = vadd.f32 %v910_v35, %v242_v31  ;;  %v4848_v31 = vld [vmem:[#allocation6 + $0xb8] sm:$0xff]  ;;  %v4852_v32 = vld [vmem:[#allocation6 + $0x80] sm:$0xff]  ;;  %v4854_v35 = vld [vmem:[#allocation6 + $0x88] sm:$0xff] }
 0x246   :  { %1159 = vmatpush.msra.mxu3 %v4848_v31  ;;  %v4856_v0 = vld [vmem:[#allocation6 + $0x90] sm:$0xff]  ;;  %1100 = vmatpush.msra.mxu0 %v4852_v32 }
 0x247   :  { %v3724_v23 = vmul.f32 -1.442695, %v953_v25  ;;  %v3725_v20 = vmul.f32 -1.442695, %v954_v10  ;;  %1120 = vmatpush.msra.mxu1 %v4854_v35  ;;  %v4860_v25 = vld [vmem:[#allocation6 + $0x98] sm:$0xff]  ;;  %v324_v10 = vadd.f32 %v4632_v12, %v4681_v44  ;;  %1140 = vmatpush.msra.mxu2 %v4856_v0  ;;  %v4878_v12 = vld [vmem:[#allocation6 + $0x40] sm:$0xff] }
 0x248   :  { %1160 = vmatpush.msra.mxu3 %v4860_v25  ;;  %1101 = vmatpush.msra.mxu0 %v4866_v19  ;;  %6743 = vst [vmem:[#allocation55_spill] sm:$0xff] %v4878_v12  ;;  %v4882_v44 = vld [vmem:[#allocation6 + $0x50] sm:$0xff] }
 0x249   :  { %3807 = vpow2.f32 %v3724_v23  ;;  %1121 = vmatpush.msra.mxu1 %v4868_v18  ;;  %1141 = vmatpush.msra.mxu2 %v4870_v16  ;;  %6745 = vst [vmem:[#allocation57_spill] sm:$0xff] %v4882_v44  ;;  %v4910_v18 = vld [vmem:[#allocation6 + $0x18] sm:$0xff] }
 0x24a   :  { %3809 = vpow2.f32 %v3725_v20  ;;  %1161 = vmatpush.msra.mxu3 %v4874_v17  ;;  %v4880_v20 = vld [vmem:[#allocation6 + $0x48] sm:$0xff]  ;;  %1102 = vmatpush.msra.mxu0 %v4878_v12  ;;  %v4898_v12 = vld [vmem:[#allocation6 + $0x38] sm:$0xff] }
 0x24b   :  { %v950_v23 = vpop.f32.mrf.mxu3  ;;  %6744 = vst [vmem:[#allocation56_spill] sm:$0xff] %v4880_v20  ;;  %1122 = vmatpush.msra.mxu1 %v4880_v20  ;;  %1142 = vmatpush.msra.mxu2 %v4882_v44  ;;  %v4900_v20 = vld [vmem:[#allocation6] sm:$0xff] }
 0x24c   :  { %v956_v15 = vadd.f32 %v950_v23, %v324_v10  ;;  %1162 = vmatpush.msra.mxu3 %v4886_v34  ;;  %v4890_v10 = vld [vmem:[#allocation6 + $0x20] sm:$0xff]  ;;  %v4892_v23 = vld [vmem:[#allocation6 + $0x28] sm:$0xff]  ;;  %v4908_v34 = vld [vmem:[#allocation6 + $0x10] sm:$0xff] }
 0x24d   :  { %6747 = vst [vmem:[#allocation59_spill] sm:$0xff] %v4890_v10  ;;  %1103 = vmatpush.msra.mxu0 %v4890_v10  ;;  %1123 = vmatpush.msra.mxu1 %v4892_v23 }
 0x24e   :  { %v3726_v14 = vmul.f32 -1.442695, %v956_v15  ;;  %v4902_v15 = vld [vmem:[#allocation6 + $0x8] sm:$0xff]  ;;  %1143 = vmatpush.msra.mxu2 %v4894_v33  ;;  %1163 = vmatpush.msra.mxu3 %v4898_v12 }
 0x24f   :  { %v3808_v17 = vpop.eup %3807  ;;  %1104 = vmatpush.msra.mxu0 %v4900_v20  ;;  %1124 = vmatpush.msra.mxu1 %v4902_v15 }
 0x250   :  { %v3810_v44 = vpop.eup %3809  ;;  %v4904_v16 = vadd.f32 1.0, %v3808_v17  ;;  %3811 = vpow2.f32 %v3726_v14  ;;  %1144 = vmatpush.msra.mxu2 %v4908_v34  ;;  %1164 = vmatpush.msra.mxu3 %v4910_v18  ;;  %v930_v14 = vpop.f32.mrf.mxu2 }
 0x251   :  { %v4912_v10 = vadd.f32 1.0, %v3810_v44  ;;  %1305 = vmatpush.msrb.mxu0 %v4716_v60  ;;  %1325 = vmatpush.msrb.mxu1 %v4718_v58  ;;  %v283_v44 = vadd.f32 %v4630_v11, %v4686_v57 }
 0x252   :  { %3813 = vrcp.f32 %v4904_v16  ;;  %1345 = vmatpush.msrb.mxu2 %v4720_v50  ;;  %1365 = vmatpush.msrb.mxu3 %v4724_v59  ;;  %vm966_vm10 = vweird.f32 %v4904_v16 }
 0x253   :  { %3815 = vrcp.f32 %v4912_v10  ;;  %1306 = vmatpush.msrb.mxu0 %v4728_v55  ;;  %1326 = vmatpush.msrb.mxu1 %v4730_v56  ;;  %v955_v50 = vadd.f32 %v930_v14, %v283_v44  ;;  %v972_v44 = vand.u32 2147483648, %v4904_v16  ;;  %v991_v57 = vand.u32 2147483648, %v4912_v10 }
 0x254   :  { %1346 = vmatpush.msrb.mxu2 %v4732_v62  ;;  %1366 = vmatpush.msrb.mxu3 %v4736_v63  ;;  %vm985_vm11 = vweird.f32 %v4912_v10 }
 0x255   :  { %1307 = vmatpush.msrb.mxu0 %v4740_v39  ;;  %1327 = vmatpush.msrb.mxu1 %v4742_v26 }
 0x256   :  { %v3812_v17 = vpop.eup %3811  ;;  %1347 = vmatpush.msrb.mxu2 %v4744_v52  ;;  %1367 = vmatpush.msrb.mxu3 %v4748_v13 }
 0x257   :  { %v4930_v60 = vadd.f32 1.0, %v3812_v17  ;;  %1308 = vmatpush.msrb.mxu0 %v4752_v7  ;;  %1328 = vmatpush.msrb.mxu1 %v4754_v61 }
 0x258   :  { %v3814_v59 = vpop.eup %3813  ;;  %1348 = vmatpush.msrb.mxu2 %v4756_v1  ;;  %1368 = vmatpush.msrb.mxu3 %v4760_v2  ;;  %v970_v1 = vand.u32 2147483647, %v4904_v16 }
 0x259   :  { %v3816_v56 = vpop.eup %3815  ;;  %v962_v55 = vmul.f32 %v3814_v59, %v4904_v16  ;;  %3817 = vrcp.f32 %v4930_v60  ;;  %1309 = vmatpush.msrb.mxu0 %v4764_v4  ;;  %1329 = vmatpush.msrb.mxu1 %v4766_v30  ;;  %vm967_vm8 = vweird.f32 %v3814_v59  ;;  %v992_v16 = vor.u32 1.1754944e-38, %v991_v57 }
 0x25a   :  { %v981_v11 = vmul.f32 %v3816_v56, %v4912_v10  ;;  %3819 = vtanh.f32 %v955_v50  ;;  %1349 = vmatpush.msrb.mxu2 %v4768_v36  ;;  %1369 = vmatpush.msrb.mxu3 %v4772_v37  ;;  %vm986_vm9 = vweird.f32 %v3816_v56  ;;  %vm968_vm12 = vmor %vm966_vm10, %vm967_vm8  ;;  %vm971_vm14 = vcmp.eq.f32.partialorder %v970_v1, 8.507059e+37 }
 0x25b   :  { %v963_v14 = vsub.f32 1.0, %v962_v55  ;;  %1310 = vmatpush.msrb.mxu0 %v4776_v40  ;;  %1330 = vmatpush.msrb.mxu1 %v4778_v3  ;;  %vm987_vm13 = vmor %vm985_vm11, %vm986_vm9  ;;  %vm1005_vm1 = vweird.f32 %v4930_v60 }
 0x25c   :  { %v982_v17 = vsub.f32 1.0, %v981_v11  ;;  %v989_v11 = vand.u32 2147483647, %v4912_v10  ;;  %1350 = vmatpush.msrb.mxu2 %v4780_v41  ;;  %1370 = vmatpush.msrb.mxu3 %v4784_v42 }
 0x25d   :  { %v964_v61 = vmul.f32 %v3814_v59, %v963_v14  ;;  %1311 = vmatpush.msrb.mxu0 %v4788_v43  ;;  %1331 = vmatpush.msrb.mxu1 %v4790_v45  ;;  %v973_v14 = vor.u32 1.1754944e-38, %v972_v44 }
 0x25e   :  { %v983_v55 = vmul.f32 %v3816_v56, %v982_v17  ;;  %1351 = vmatpush.msrb.mxu2 %v4792_v46  ;;  %1371 = vmatpush.msrb.mxu3 %v4796_v6  ;;  %vm990_vm15 = vcmp.eq.f32.partialorder %v989_v11, 8.507059e+37  ;;  %v6750_v11 = vld [vmem:[#allocation54_spill] sm:$0xff] }
 0x25f   :  { %v4955_v50 = vpop.eup %3817  ;;  %v965_v37 = vadd.f32 %v3814_v59, %v964_v61  ;;  %1312 = vmatpush.msrb.mxu0 %v4800_v47  ;;  %1332 = vmatpush.msrb.mxu1 %v4802_v49 }
 0x260   :  { %v984_v17 = vadd.f32 %v3816_v56, %v983_v55  ;;  %v1001_v41 = vmul.f32 %v4955_v50, %v4930_v60  ;;  %v3820_v10 = vpop.eup %3819  ;;  %1352 = vmatpush.msrb.mxu2 %v4804_v51  ;;  %1372 = vmatpush.msrb.mxu3 %v4808_v53  ;;  %vm1006_vm0 = vweird.f32 %v4955_v50 }
 0x261   :  { %v969_v61 = vsel %vm968_vm12, %v3814_v59, %v965_v37  ;;  %1313 = vmatpush.msrb.mxu0 %v4812_v8  ;;  %1333 = vmatpush.msrb.mxu1 %v4814_v48  ;;  %v1009_v37 = vand.u32 2147483647, %v4930_v60  ;;  %vm1007_vm2 = vmor %vm1005_vm1, %vm1006_vm0 }
 0x262   :  { %v974_v45 = vsel %vm971_vm14, %v973_v14, %v969_v61  ;;  %v988_v44 = vsel %vm987_vm13, %v3816_v56, %v984_v17  ;;  %v1002_v55 = vsub.f32 1.0, %v1001_v41  ;;  %1353 = vmatpush.msrb.mxu2 %v4816_v38  ;;  %1373 = vmatpush.msrb.mxu3 %v4824_v54  ;;  %v6752_v14 = vld [vmem:[#allocation56_spill] sm:$0xff]  ;;  %v6753_v61 = vld [vmem:[#allocation57_spill] sm:$0xff] }
 0x263   :  { %v993_v46 = vsel %vm990_vm15, %v992_v16, %v988_v44  ;;  %v1016_v6 = vmul.f32 %v3820_v10, %v974_v45  ;;  %1314 = vmatpush.msrb.mxu0 %v4828_v29  ;;  %1334 = vmatpush.msrb.mxu1 %v4830_v27  ;;  %v6748_v45 = vld [vmem:[#allocation52_spill] sm:$0xff]  ;;  %vm1010_vm3 = vcmp.eq.f32.partialorder %v1009_v37, 8.507059e+37  ;;  %v6754_v10 = vld [vmem:[#allocation58_spill] sm:$0xff]  ;;  %v6756_v44 = vld [vmem:[#allocation59_spill] sm:$0xff] }
 0x264   :  { %v1015_v57 = vmul.f32 %v993_v46, %v4707_v5  ;;  %v1003_v59 = vmul.f32 %v4955_v50, %v1002_v55  ;;  %1354 = vmatpush.msrb.mxu2 %v4832_v9  ;;  %1374 = vmatpush.msrb.mxu3 %v4836_v28  ;;  %v1011_v5 = vand.u32 2147483648, %v4930_v60  ;;  %v6751_v60 = vld [vmem:[#allocation55_spill] sm:$0xff]  ;;  %v6757_v55 = vld [vmem:[#allocation40_spill] sm:$0xff]  ;;  %v6763_v37 = vld [vmem:[#allocation46_spill] sm:$0xff] }
 0x265   :  { %1315 = vmatpush.msrb.mxu0 %v4840_v24  ;;  %1335 = vmatpush.msrb.mxu1 %v4842_v22 }
 0x266   :  { %v4979_v56 = vadd.f32 %v1016_v6, %v1015_v57  ;;  %v1004_v1 = vadd.f32 %v4955_v50, %v1003_v59  ;;  %1355 = vmatpush.msrb.mxu2 %v4844_v21  ;;  %1375 = vmatpush.msrb.mxu3 %v4848_v31  ;;  %v1012_v46 = vor.u32 1.1754944e-38, %v1011_v5  ;;  %v6749_v6 = vld [vmem:[#allocation53_spill] sm:$0xff]  ;;  %v6759_v59 = vld [vmem:[#allocation42_spill] sm:$0xff]  ;;  %v6761_v5 = vld [vmem:[#allocation44_spill] sm:$0xff] }
 0x267   :  { %1316 = vmatpush.msrb.mxu0 %v4852_v32  ;;  %1336 = vmatpush.msrb.mxu1 %v4854_v35  ;;  %v6758_v57 = vld [vmem:[#allocation41_spill] sm:$0xff] }
 0x268   :  { %3821 = vtanh.f32 %v4979_v56  ;;  %1356 = vmatpush.msrb.mxu2 %v4856_v0  ;;  %1376 = vmatpush.msrb.mxu3 %v4860_v25  ;;  %v1008_v41 = vsel %vm1007_vm2, %v4955_v50, %v1004_v1  ;;  %v6760_v1 = vld [vmem:[#allocation43_spill] sm:$0xff] }
 0x269   :  { %1317 = vmatpush.msrb.mxu0 %v4866_v19  ;;  %1337 = vmatpush.msrb.mxu1 %v6748_v45  ;;  %v1013_v16 = vsel %vm1010_vm3, %v1012_v46, %v1008_v41 }
 0x26a   :  { %1357 = vmatpush.msrb.mxu2 %v6749_v6  ;;  %1377 = vmatpush.msrb.mxu3 %v6750_v11 }
 0x26b   :  { %1318 = vmatpush.msrb.mxu0 %v6751_v60  ;;  %1338 = vmatpush.msrb.mxu1 %v6752_v14 }
 0x26c   :  { %1358 = vmatpush.msrb.mxu2 %v6753_v61  ;;  %1378 = vmatpush.msrb.mxu3 %v6754_v10 }
 0x26d   :  { %1319 = vmatpush.msrb.mxu0 %v6756_v44  ;;  %1339 = vmatpush.msrb.mxu1 %v4892_v23 }
 0x26e   :  { %v3822_v17 = vpop.eup %3821  ;;  %1359 = vmatpush.msrb.mxu2 %v4894_v33  ;;  %1379 = vmatpush.msrb.mxu3 %v4898_v12 }
 0x26f   :  { %v5006_v50 = vmul.f32 %v3822_v17, %v1013_v16  ;;  %1320 = vmatpush.msrb.mxu0 %v4900_v20  ;;  %1340 = vmatpush.msrb.mxu1 %v4902_v15 }
 0x270   :  { %1360 = vmatpush.msrb.mxu2 %v4908_v34  ;;  %1380 = vmatpush.msrb.mxu3 %v4910_v18 }
 0x271   :  { %6755 = vst [vmem:[#allocation52_spill] sm:$0xff] %v5006_v50  ;;  %1105 = vmatmul.f32.vlgmr.msra.gmra.mxu0 %v5006_v50  ;;  %1125 = vmatmul.f32.vlgmr.msra.gmra.mxu1 %v5006_v50 }
 0x272   :  { %1145 = vmatmul.f32.vlgmr.msra.gmra.mxu2 %v5006_v50  ;;  %1165 = vmatmul.f32.vlgmr.msra.gmra.mxu3 %v5006_v50  ;;  %v5290_v50 = vld [vmem:[#allocation6 + $0x58] sm:$0xff] }
 0x273   :  { %1521 = vmatpush.msra.mxu0 %v6757_v55  ;;  %1541 = vmatpush.msra.mxu1 %v4718_v58  ;;  %v6762_v58 = vld [vmem:[#allocation45_spill] sm:$0xff]  ;;  %6791 = vst [vmem:[#allocation40_spill] sm:$0xff] %v5290_v50 }
 0x274   :  { %1561 = vmatpush.msra.mxu2 %v6758_v57  ;;  %1581 = vmatpush.msra.mxu3 %v6759_v59 }
 0x275   :  { %1522 = vmatpush.msra.mxu0 %v6760_v1  ;;  %1542 = vmatpush.msra.mxu1 %v6761_v5 }
 0x276   :  { %1562 = vmatpush.msra.mxu2 %v4732_v62  ;;  %1582 = vmatpush.msra.mxu3 %v4736_v63  ;;  %v6764_v62 = vld [vmem:[#allocation47_spill] sm:$0xff]  ;;  %v6765_v63 = vld [vmem:[#allocation48_spill] sm:$0xff] }
 0x277   :  { %1523 = vmatpush.msra.mxu0 %v4740_v39  ;;  %1543 = vmatpush.msra.mxu1 %v4742_v26  ;;  %v6766_v39 = vld [vmem:[#allocation49_spill] sm:$0xff]  ;;  %v6767_v26 = vld [vmem:[#allocation50_spill] sm:$0xff] }
 0x278   :  { %1563 = vmatpush.msra.mxu2 %v4744_v52  ;;  %1583 = vmatpush.msra.mxu3 %v4748_v13  ;;  %v6768_v52 = vld [vmem:[#allocation51_spill] sm:$0xff] }
 0x279   :  { %1524 = vmatpush.msra.mxu0 %v4752_v7  ;;  %1544 = vmatpush.msra.mxu1 %v6762_v58  ;;  %v6773_v7 = vld [vmem:[#allocation35_spill] sm:$0xff] }
 0x27a   :  { %1564 = vmatpush.msra.mxu2 %v6763_v37  ;;  %1584 = vmatpush.msra.mxu3 %v4760_v2  ;;  %v6774_v2 = vld [vmem:[#allocation17_spill] sm:$0xff] }
 0x27b   :  { %1525 = vmatpush.msra.mxu0 %v4764_v4  ;;  %1545 = vmatpush.msra.mxu1 %v4766_v30  ;;  %v327_v4 = vadd.f32 %v6774_v2, %v6773_v7 }
 0x27c   :  { %1565 = vmatpush.msra.mxu2 %v4768_v36  ;;  %1585 = vmatpush.msra.mxu3 %v6764_v62 }
 0x27d   :  { %1526 = vmatpush.msra.mxu0 %v4776_v40  ;;  %1546 = vmatpush.msra.mxu1 %v4778_v3 }
 0x27e   :  { %1566 = vmatpush.msra.mxu2 %v6765_v63  ;;  %1586 = vmatpush.msra.mxu3 %v4784_v42 }
 0x27f   :  { %1527 = vmatpush.msra.mxu0 %v4788_v43  ;;  %1547 = vmatpush.msra.mxu1 %v6766_v39 }
 0x280   :  { %1567 = vmatpush.msra.mxu2 %v6767_v26  ;;  %1587 = vmatpush.msra.mxu3 %v6768_v52 }
 0x281   :  { %1528 = vmatpush.msra.mxu0 %v4800_v47  ;;  %1548 = vmatpush.msra.mxu1 %v4802_v49  ;;  %v6775_v49 = vld [vmem:[#allocation37_spill] sm:$0xff] }
 0x282   :  { %1568 = vmatpush.msra.mxu2 %v4804_v51  ;;  %1588 = vmatpush.msra.mxu3 %v4808_v53  ;;  %v6776_v51 = vld [vmem:[#allocation16_spill] sm:$0xff] }
 0x283   :  { %1529 = vmatpush.msra.mxu0 %v4812_v8  ;;  %1549 = vmatpush.msra.mxu1 %v4814_v48  ;;  %v286_v53 = vadd.f32 %v6776_v51, %v6775_v49 }
 0x284   :  { %1569 = vmatpush.msra.mxu2 %v4816_v38  ;;  %1589 = vmatpush.msra.mxu3 %v4824_v54 }
 0x285   :  { %1530 = vmatpush.msra.mxu0 %v4828_v29  ;;  %1550 = vmatpush.msra.mxu1 %v4830_v27  ;;  %v6772_v27 = vld [vmem:[#allocation15_spill] sm:$0xff] }
 0x286   :  { %1570 = vmatpush.msra.mxu2 %v4832_v9  ;;  %1590 = vmatpush.msra.mxu3 %v4836_v28 }
 0x287   :  { %1531 = vmatpush.msra.mxu0 %v4840_v24  ;;  %1551 = vmatpush.msra.mxu1 %v4842_v22  ;;  %v6771_v24 = vld [vmem:[#allocation32_spill] sm:$0xff] }
 0x288   :  { %1571 = vmatpush.msra.mxu2 %v4844_v21  ;;  %1591 = vmatpush.msra.mxu3 %v4848_v31  ;;  %v6770_v21 = vld [vmem:[#allocation14_spill] sm:$0xff]  ;;  %v245_v28 = vadd.f32 %v6772_v27, %v6771_v24 }
 0x289   :  { %1532 = vmatpush.msra.mxu0 %v4852_v32  ;;  %1552 = vmatpush.msra.mxu1 %v4854_v35 }
 0x28a   :  { %1572 = vmatpush.msra.mxu2 %v4856_v0  ;;  %1592 = vmatpush.msra.mxu3 %v4860_v25 }
 0x28b   :  { %1533 = vmatpush.msra.mxu0 %v4866_v19  ;;  %1553 = vmatpush.msra.mxu1 %v6748_v45  ;;  %v6769_v19 = vld [vmem:[#allocation31_spill] sm:$0xff] }
 0x28c   :  { %1573 = vmatpush.msra.mxu2 %v6749_v6  ;;  %1593 = vmatpush.msra.mxu3 %v6750_v11  ;;  %v204_v22 = vadd.f32 %v6770_v21, %v6769_v19 }
 0x28d   :  { %1534 = vmatpush.msra.mxu0 %v6751_v60  ;;  %1554 = vmatpush.msra.mxu1 %v6752_v14 }
 0x28e   :  { %1574 = vmatpush.msra.mxu2 %v6753_v61  ;;  %1594 = vmatpush.msra.mxu3 %v6754_v10 }
 0x28f   :  { %1535 = vmatpush.msra.mxu0 %v6756_v44  ;;  %1555 = vmatpush.msra.mxu1 %v4892_v23 }
 0x290   :  { %1575 = vmatpush.msra.mxu2 %v4894_v33  ;;  %1595 = vmatpush.msra.mxu3 %v4898_v12 }
 0x291   :  { %1536 = vmatpush.msra.mxu0 %v4900_v20  ;;  %1556 = vmatpush.msra.mxu1 %v4902_v15 }
 0x292   :  { %1576 = vmatpush.msra.mxu2 %v4908_v34  ;;  %1596 = vmatpush.msra.mxu3 %v4910_v18 }
 0x2ee   :  { %v1106_v29 = vpop.f32.mrf.mxu0  ;;  %v1126_v38 = vpop.f32.mrf.mxu1 }
 0x2ef   :  { %v1169_v48 = vadd.f32 %v1106_v29, %v204_v22  ;;  %v1170_v33 = vadd.f32 %v1126_v38, %v245_v28  ;;  %v6779_v29 = vld [vmem:[#allocation19_spill] sm:$0xff] }
 0x2f0   :  { %v248_v38 = vadd.f32 %v6779_v29, %v6771_v24 }
 0x2f1   :  { %v3727_v54 = vmul.f32 -1.442695, %v1169_v48  ;;  %v3728_v13 = vmul.f32 -1.442695, %v1170_v33 }
 0x2f3   :  { %3823 = vpow2.f32 %v3727_v54 }
 0x2f4   :  { %3825 = vpow2.f32 %v3728_v13 }
 0x2f5   :  { %v1166_v34 = vpop.f32.mrf.mxu3  ;;  %v1146_v43 = vpop.f32.mrf.mxu2 }
 0x2f6   :  { %v1172_v30 = vadd.f32 %v1166_v34, %v327_v4  ;;  %v1171_v31 = vadd.f32 %v1146_v43, %v286_v53  ;;  %v6780_v34 = vld [vmem:[#allocation20_spill] sm:$0xff] }
 0x2f8   :  { %v3729_v18 = vmul.f32 -1.442695, %v1172_v30  ;;  %v330_v30 = vadd.f32 %v6780_v34, %v6773_v7  ;;  %v5140_v34 = vld [vmem:[#allocation6 + $0x1d8] sm:$0xff] }
 0x2f9   :  { %v3824_v36 = vpop.eup %3823 }
 0x2fa   :  { %v3826_v40 = vpop.eup %3825  ;;  %v1176_v3 = vadd.f32 1.0, %v3824_v36  ;;  %3827 = vpow2.f32 %v3729_v18 }
 0x2fb   :  { %v1195_v42 = vadd.f32 1.0, %v3826_v40 }
 0x2fc   :  { %3829 = vrcp.f32 %v1176_v3  ;;  %v1188_v20 = vand.u32 2147483648, %v1176_v3  ;;  %v1186_v41 = vand.u32 2147483647, %v1176_v3  ;;  %vm1182_vm6 = vweird.f32 %v1176_v3 }
 0x2fd   :  { %3831 = vrcp.f32 %v1195_v42  ;;  %v1207_v23 = vand.u32 2147483648, %v1195_v42  ;;  %v1205_v46 = vand.u32 2147483647, %v1195_v42  ;;  %vm1201_vm7 = vweird.f32 %v1195_v42 }
 0x2fe   :  { %v1189_v60 = vor.u32 1.1754944e-38, %v1188_v20  ;;  %vm1187_vm10 = vcmp.eq.f32.partialorder %v1186_v41, 8.507059e+37 }
 0x2ff   :  { %v1208_v16 = vor.u32 1.1754944e-38, %v1207_v23  ;;  %vm1206_vm11 = vcmp.eq.f32.partialorder %v1205_v46, 8.507059e+37 }
 0x300   :  { %v3828_v47 = vpop.eup %3827 }
 0x301   :  { %v1215_v8 = vadd.f32 1.0, %v3828_v47 }
 0x302   :  { %v3830_v9 = vpop.eup %3829 }
 0x303   :  { %v3832_v32 = vpop.eup %3831  ;;  %v1178_v35 = vmul.f32 %v3830_v9, %v1176_v3  ;;  %3833 = vrcp.f32 %v1215_v8  ;;  %vm1183_vm4 = vweird.f32 %v3830_v9  ;;  %v1227_v63 = vand.u32 2147483648, %v1215_v8 }
 0x304   :  { %v1197_v0 = vmul.f32 %v3832_v32, %v1195_v42  ;;  %3835 = vtanh.f32 %v1171_v31  ;;  %vm1202_vm5 = vweird.f32 %v3832_v32  ;;  %vm1184_vm8 = vmor %vm1182_vm6, %vm1183_vm4  ;;  %vm1221_vm13 = vweird.f32 %v1215_v8 }
 0x305   :  { %v1179_v25 = vsub.f32 1.0, %v1178_v35  ;;  %vm1203_vm9 = vmor %vm1201_vm7, %vm1202_vm5  ;;  %v1225_v39 = vand.u32 2147483647, %v1215_v8  ;;  %v1228_v52 = vor.u32 1.1754944e-38, %v1227_v63 }
 0x306   :  { %v1198_v12 = vsub.f32 1.0, %v1197_v0 }
 0x307   :  { %v1180_v15 = vmul.f32 %v3830_v9, %v1179_v25  ;;  %vm1226_vm15 = vcmp.eq.f32.partialorder %v1225_v39, 8.507059e+37 }
 0x308   :  { %v1199_v45 = vmul.f32 %v3832_v32, %v1198_v12 }
 0x309   :  { %v3834_v6 = vpop.eup %3833  ;;  %v1181_v11 = vadd.f32 %v3830_v9, %v1180_v15 }
 0x30a   :  { %v1200_v14 = vadd.f32 %v3832_v32, %v1199_v45  ;;  %v1217_v17 = vmul.f32 %v3834_v6, %v1215_v8  ;;  %v3836_v10 = vpop.eup %3835  ;;  %vm1222_vm12 = vweird.f32 %v3834_v6  ;;  %v6781_v8 = vld [vmem:[#allocation23_spill] sm:$0xff] }
 0x30b   :  { %v1185_v61 = vsel %vm1184_vm8, %v3830_v9, %v1181_v11  ;;  %vm1223_vm14 = vmor %vm1221_vm13, %vm1222_vm12  ;;  %v289_v9 = vadd.f32 %v6781_v8, %v6775_v49  ;;  %v5172_v8 = vld [vmem:[#allocation6 + $0x170] sm:$0xff] }
 0x30c   :  { %v1190_v44 = vsel %vm1187_vm10, %v1189_v60, %v1185_v61  ;;  %v1204_v55 = vsel %vm1203_vm9, %v3832_v32, %v1200_v14  ;;  %v1218_v57 = vsub.f32 1.0, %v1217_v17 }
 0x30d   :  { %v1209_v59 = vsel %vm1206_vm11, %v1208_v16, %v1204_v55  ;;  %v1232_v1 = vmul.f32 %v3836_v10, %v1190_v44 }
 0x30e   :  { %v1231_v5 = vmul.f32 %v1209_v59, %v4979_v56  ;;  %v1219_v58 = vmul.f32 %v3834_v6, %v1218_v57  ;;  %v6778_v56 = vld [vmem:[#allocation18_spill] sm:$0xff] }
 0x30f   :  { %v207_v28 = vadd.f32 %v6778_v56, %v6769_v19 }
 0x310   :  { %v5093_v37 = vadd.f32 %v1232_v1, %v1231_v5  ;;  %v1220_v62 = vadd.f32 %v3834_v6, %v1219_v58 }
 0x312   :  { %3837 = vtanh.f32 %v5093_v37  ;;  %v1224_v26 = vsel %vm1223_vm14, %v3834_v6, %v1220_v62 }
 0x313   :  { %v1229_v22 = vsel %vm1226_vm15, %v1228_v52, %v1224_v26 }
 0x318   :  { %v3838_v21 = vpop.eup %3837 }
 0x319   :  { %v5096_v27 = vmul.f32 %v3838_v21, %v1229_v22 }
 0x31b   :  { %6777 = vst [vmem:[#allocation53_spill] sm:$0xff] %v5096_v27  ;;  %1321 = vmatmul.f32.vlgmr.msrb.gmra.mxu0 %v5096_v27  ;;  %1341 = vmatmul.f32.vlgmr.msrb.gmra.mxu1 %v5096_v27 }
 0x31c   :  { %1361 = vmatmul.f32.vlgmr.msrb.gmra.mxu2 %v5096_v27  ;;  %1381 = vmatmul.f32.vlgmr.msrb.gmra.mxu3 %v5096_v27  ;;  %v5286_v27 = vld [vmem:[#allocation6 + $0x50] sm:$0xff] }
 0x31d   :  { %6790 = vst [vmem:[#allocation59_spill] sm:$0xff] %v5286_v27 }
 0x398   :  { %v1322_v48 = vpop.f32.mrf.mxu0  ;;  %v1342_v33 = vpop.f32.mrf.mxu1 }
 0x399   :  { %v1385_v54 = vadd.f32 %v1322_v48, %v207_v28  ;;  %v1386_v13 = vadd.f32 %v1342_v33, %v248_v38  ;;  %v5122_v48 = vld [vmem:[#allocation6 + $0x1e8] sm:$0xff]  ;;  %v5124_v33 = vld [vmem:[#allocation6 + $0x1f0] sm:$0xff] }
 0x39a   :  { %1757 = vmatpush.msrb.mxu1 %v5122_v48  ;;  %1777 = vmatpush.msrb.mxu2 %v5124_v33 }
 0x39b   :  { %v3730_v2 = vmul.f32 -1.442695, %v1385_v54  ;;  %v3731_v4 = vmul.f32 -1.442695, %v1386_v13  ;;  %v5128_v54 = vld [vmem:[#allocation6 + $0x1f8] sm:$0xff]  ;;  %v5132_v13 = vld [vmem:[#allocation6 + $0x1c0] sm:$0xff] }
 0x39c   :  { %1797 = vmatpush.msrb.mxu3 %v5128_v54 }
 0x39d   :  { %3839 = vpow2.f32 %v3730_v2  ;;  %v5134_v2 = vld [vmem:[#allocation6 + $0x1c8] sm:$0xff] }
 0x39e   :  { %3841 = vpow2.f32 %v3731_v4  ;;  %v5136_v4 = vld [vmem:[#allocation6 + $0x1d0] sm:$0xff]  ;;  %1758 = vmatpush.msrb.mxu1 %v5134_v2  ;;  %1798 = vmatpush.msrb.mxu3 %v5140_v34 }
 0x39f   :  { %v1382_v18 = vpop.f32.mrf.mxu3  ;;  %v1362_v51 = vpop.f32.mrf.mxu2  ;;  %1778 = vmatpush.msrb.mxu2 %v5136_v4 }
 0x3a0   :  { %v1388_v36 = vadd.f32 %v1382_v18, %v330_v30  ;;  %v1387_v35 = vadd.f32 %v1362_v51, %v289_v9  ;;  %v5144_v30 = vld [vmem:[#allocation6 + $0x1a0] sm:$0xff]  ;;  %v5146_v18 = vld [vmem:[#allocation6 + $0x1a8] sm:$0xff]  ;;  %v5176_v9 = vld [vmem:[#allocation6 + $0x178] sm:$0xff] }
 0x3a1   :  { %1759 = vmatpush.msrb.mxu1 %v5146_v18  ;;  %v5168_v51 = vld [vmem:[#allocation6 + $0x160] sm:$0xff] }
 0x3a2   :  { %v3732_v40 = vmul.f32 -1.442695, %v1388_v36  ;;  %v5148_v36 = vld [vmem:[#allocation6 + $0x1b0] sm:$0xff] }
 0x3a3   :  { %v3840_v3 = vpop.eup %3839  ;;  %1779 = vmatpush.msrb.mxu2 %v5148_v36 }
 0x3a4   :  { %v3842_v42 = vpop.eup %3841  ;;  %v1392_v43 = vadd.f32 1.0, %v3840_v3  ;;  %3843 = vpow2.f32 %v3732_v40  ;;  %v5152_v40 = vld [vmem:[#allocation6 + $0x1b8] sm:$0xff]  ;;  %v5156_v3 = vld [vmem:[#allocation6 + $0x180] sm:$0xff] }
 0x3a5   :  { %v1411_v47 = vadd.f32 1.0, %v3842_v42  ;;  %1799 = vmatpush.msrb.mxu3 %v5152_v40  ;;  %v5158_v42 = vld [vmem:[#allocation6 + $0x188] sm:$0xff] }
 0x3a6   :  { %3845 = vrcp.f32 %v1392_v43  ;;  %v1404_v15 = vand.u32 2147483648, %v1392_v43  ;;  %v1402_v46 = vand.u32 2147483647, %v1392_v43  ;;  %vm1398_vm2 = vweird.f32 %v1392_v43  ;;  %1760 = vmatpush.msrb.mxu1 %v5158_v42 }
 0x3a7   :  { %3847 = vrcp.f32 %v1411_v47  ;;  %v1423_v41 = vand.u32 2147483648, %v1411_v47  ;;  %v1421_v11 = vand.u32 2147483647, %v1411_v47  ;;  %vm1417_vm3 = vweird.f32 %v1411_v47 }
 0x3a8   :  { %v1405_v17 = vor.u32 1.1754944e-38, %v1404_v15  ;;  %vm1403_vm6 = vcmp.eq.f32.partialorder %v1402_v46, 8.507059e+37  ;;  %v5204_v15 = vld [vmem:[#allocation6 + $0x100] sm:$0xff]  ;;  %v5212_v46 = vld [vmem:[#allocation6 + $0x118] sm:$0xff] }
 0x3a9   :  { %v1424_v10 = vor.u32 1.1754944e-38, %v1423_v41  ;;  %vm1422_vm7 = vcmp.eq.f32.partialorder %v1421_v11, 8.507059e+37  ;;  %v5206_v41 = vld [vmem:[#allocation6 + $0x108] sm:$0xff] }
 0x3aa   :  { %v3844_v53 = vpop.eup %3843  ;;  %v5218_v11 = vld [vmem:[#allocation6 + $0xe8] sm:$0xff] }
 0x3ab   :  { %v1431_v31 = vadd.f32 1.0, %v3844_v53  ;;  %v5170_v53 = vld [vmem:[#allocation6 + $0x168] sm:$0xff] }
 0x3ac   :  { %v3846_v32 = vpop.eup %3845  ;;  %1761 = vmatpush.msrb.mxu1 %v5170_v53 }
 0x3ad   :  { %v3848_v0 = vpop.eup %3847  ;;  %v1394_v25 = vmul.f32 %v3846_v32, %v1392_v43  ;;  %3849 = vrcp.f32 %v1431_v31  ;;  %vm1399_vm0 = vweird.f32 %v3846_v32  ;;  %v1443_v52 = vand.u32 2147483648, %v1431_v31  ;;  %v5160_v43 = vld [vmem:[#allocation6 + $0x190] sm:$0xff] }
 0x3ae   :  { %v1413_v12 = vmul.f32 %v3848_v0, %v1411_v47  ;;  %3851 = vtanh.f32 %v1387_v35  ;;  %vm1418_vm1 = vweird.f32 %v3848_v0  ;;  %vm1400_vm4 = vmor %vm1398_vm2, %vm1399_vm0  ;;  %vm1437_vm9 = vweird.f32 %v1431_v31  ;;  %v5164_v47 = vld [vmem:[#allocation6 + $0x198] sm:$0xff]  ;;  %1780 = vmatpush.msrb.mxu2 %v5160_v43  ;;  %v5184_v35 = vld [vmem:[#allocation6 + $0x150] sm:$0xff] }
 0x3af   :  { %v1395_v20 = vsub.f32 1.0, %v1394_v25  ;;  %vm1419_vm5 = vmor %vm1417_vm3, %vm1418_vm1  ;;  %v1441_v21 = vand.u32 2147483647, %v1431_v31  ;;  %v1444_v56 = vor.u32 1.1754944e-38, %v1443_v52  ;;  %1800 = vmatpush.msrb.mxu3 %v5164_v47  ;;  %v5192_v25 = vld [vmem:[#allocation6 + $0x120] sm:$0xff]  ;;  %v5248_v52 = vld [vmem:[#allocation6 + $0xb0] sm:$0xff] }
 0x3b0   :  { %v1414_v23 = vsub.f32 1.0, %v1413_v12  ;;  %1781 = vmatpush.msrb.mxu2 %v5172_v8  ;;  %v5194_v12 = vld [vmem:[#allocation6 + $0x128] sm:$0xff] }
 0x3b1   :  { %v1396_v45 = vmul.f32 %v3846_v32, %v1395_v20  ;;  %vm1442_vm11 = vcmp.eq.f32.partialorder %v1441_v21, 8.507059e+37  ;;  %1801 = vmatpush.msrb.mxu3 %v5176_v9  ;;  %v5196_v20 = vld [vmem:[#allocation6 + $0x130] sm:$0xff] }
 0x3b2   :  { %v1415_v6 = vmul.f32 %v3848_v0, %v1414_v23  ;;  %1782 = vmatpush.msrb.mxu2 %v5184_v35  ;;  %v5200_v23 = vld [vmem:[#allocation6 + $0x138] sm:$0xff] }
 0x3b3   :  { %v3850_v60 = vpop.eup %3849  ;;  %v1397_v14 = vadd.f32 %v3846_v32, %v1396_v45  ;;  %v5208_v45 = vld [vmem:[#allocation6 + $0x110] sm:$0xff] }
 0x3b4   :  { %v1416_v16 = vadd.f32 %v3848_v0, %v1415_v6  ;;  %v1433_v61 = vmul.f32 %v3850_v60, %v1431_v31  ;;  %v3852_v55 = vpop.eup %3851  ;;  %vm1438_vm8 = vweird.f32 %v3850_v60  ;;  %v5180_v31 = vld [vmem:[#allocation6 + $0x140] sm:$0xff]  ;;  %1783 = vmatpush.msrb.mxu2 %v5196_v20 }
 0x3b5   :  { %v1401_v44 = vsel %vm1400_vm4, %v3846_v32, %v1397_v14  ;;  %vm1439_vm10 = vmor %vm1437_vm9, %vm1438_vm8  ;;  %v5182_v32 = vld [vmem:[#allocation6 + $0x148] sm:$0xff]  ;;  %v5216_v6 = vld [vmem:[#allocation6 + $0xe0] sm:$0xff] }
 0x3b6   :  { %v1406_v57 = vsel %vm1403_vm6, %v1405_v17, %v1401_v44  ;;  %v1420_v59 = vsel %vm1419_vm5, %v3848_v0, %v1416_v16  ;;  %v1434_v1 = vsub.f32 1.0, %v1433_v61  ;;  %1762 = vmatpush.msrb.mxu1 %v5182_v32  ;;  %v5188_v0 = vld [vmem:[#allocation6 + $0x158] sm:$0xff]  ;;  %1784 = vmatpush.msrb.mxu2 %v5208_v45  ;;  %v6784_v16 = vld [vmem:[#allocation22_spill] sm:$0xff] }
 0x3b7   :  { %v1425_v5 = vsel %vm1422_vm7, %v1424_v10, %v1420_v59  ;;  %v1448_v58 = vmul.f32 %v3852_v55, %v1406_v57  ;;  %1802 = vmatpush.msrb.mxu3 %v5188_v0  ;;  %v6783_v14 = vld [vmem:[#allocation21_spill] sm:$0xff]  ;;  %v251_v61 = vadd.f32 %v6784_v16, %v6771_v24  ;;  %v5232_v57 = vld [vmem:[#allocation6 + $0xc0] sm:$0xff]  ;;  %v5234_v59 = vld [vmem:[#allocation6 + $0xc8] sm:$0xff] }
 0x3b8   :  { %v1447_v62 = vmul.f32 %v1425_v5, %v5093_v37  ;;  %v1435_v63 = vmul.f32 %v3850_v60, %v1434_v1  ;;  %v5120_v37 = vld [vmem:[#allocation6 + $0x1e0] sm:$0xff]  ;;  %1763 = vmatpush.msrb.mxu1 %v5194_v12  ;;  %v210_v17 = vadd.f32 %v6783_v14, %v6769_v19  ;;  %v5228_v10 = vld [vmem:[#allocation6 + $0xf8] sm:$0xff]  ;;  %v5236_v1 = vld [vmem:[#allocation6 + $0xd0] sm:$0xff] }
 0x3b9   :  { %1737 = vmatpush.msrb.mxu0 %v5120_v37  ;;  %1803 = vmatpush.msrb.mxu3 %v5200_v23  ;;  %v5260_v14 = vld [vmem:[#allocation6 + $0x90] sm:$0xff] }
 0x3ba   :  { %v5111_v39 = vadd.f32 %v1448_v58, %v1447_v62  ;;  %v1436_v26 = vadd.f32 %v3850_v60, %v1435_v63  ;;  %1764 = vmatpush.msrb.mxu1 %v5206_v41  ;;  %v5240_v62 = vld [vmem:[#allocation6 + $0xd8] sm:$0xff]  ;;  %v5244_v63 = vld [vmem:[#allocation6 + $0xa0] sm:$0xff]  ;;  %v6785_v16 = vld [vmem:[#allocation24_spill] sm:$0xff] }
 0x3bb   :  { %1738 = vmatpush.msrb.mxu0 %v5132_v13  ;;  %1804 = vmatpush.msrb.mxu3 %v5212_v46  ;;  %v5298_v24 = vld [vmem:[#allocation6 + $0x30] sm:$0xff] }
 0x3bc   :  { %3853 = vtanh.f32 %v5111_v39  ;;  %v1440_v22 = vsel %vm1439_vm10, %v3850_v60, %v1436_v26  ;;  %v5220_v60 = vld [vmem:[#allocation6 + $0xf0] sm:$0xff]  ;;  %1765 = vmatpush.msrb.mxu1 %v5218_v11  ;;  %v5246_v26 = vld [vmem:[#allocation6 + $0xa8] sm:$0xff] }
 0x3bd   :  { %v1445_v29 = vsel %vm1442_vm11, %v1444_v56, %v1440_v22  ;;  %1739 = vmatpush.msrb.mxu0 %v5144_v30  ;;  %1785 = vmatpush.msrb.mxu2 %v5220_v60  ;;  %v5252_v56 = vld [vmem:[#allocation6 + $0xb8] sm:$0xff] }
 0x3be   :  { %1805 = vmatpush.msrb.mxu3 %v5228_v10  ;;  %1766 = vmatpush.msrb.mxu1 %v5234_v59 }
 0x3bf   :  { %1740 = vmatpush.msrb.mxu0 %v5156_v3  ;;  %1786 = vmatpush.msrb.mxu2 %v5236_v1 }
 0x3c0   :  { %1806 = vmatpush.msrb.mxu3 %v5240_v62  ;;  %1767 = vmatpush.msrb.mxu1 %v5246_v26 }
 0x3c1   :  { %1741 = vmatpush.msrb.mxu0 %v5168_v51  ;;  %1787 = vmatpush.msrb.mxu2 %v5248_v52 }
 0x3c2   :  { %v3854_v28 = vpop.eup %3853  ;;  %1807 = vmatpush.msrb.mxu3 %v5252_v56 }
 0x3c3   :  { %v5114_v38 = vmul.f32 %v3854_v28, %v1445_v29  ;;  %1742 = vmatpush.msrb.mxu0 %v5180_v31  ;;  %v5256_v28 = vld [vmem:[#allocation6 + $0x80] sm:$0xff]  ;;  %v5258_v29 = vld [vmem:[#allocation6 + $0x88] sm:$0xff]  ;;  %1788 = vmatpush.msrb.mxu2 %v5260_v14 }
 0x3c4   :  { %1768 = vmatpush.msrb.mxu1 %v5258_v29 }
 0x3c5   :  { %6782 = vst [vmem:[#allocation54_spill] sm:$0xff] %v5114_v38  ;;  %1537 = vmatmul.f32.vlgmr.msra.gmra.mxu0 %v5114_v38  ;;  %1557 = vmatmul.f32.vlgmr.msra.gmra.mxu1 %v5114_v38 }
 0x3c6   :  { %1577 = vmatmul.f32.vlgmr.msra.gmra.mxu2 %v5114_v38  ;;  %1597 = vmatmul.f32.vlgmr.msra.gmra.mxu3 %v5114_v38 }
 0x3c7   :  { %1743 = vmatpush.msrb.mxu0 %v5192_v25 }
 0x3c9   :  { %1744 = vmatpush.msrb.mxu0 %v5204_v15 }
 0x3cb   :  { %1745 = vmatpush.msrb.mxu0 %v5216_v6 }
 0x3cd   :  { %1746 = vmatpush.msrb.mxu0 %v5232_v57 }
 0x3cf   :  { %1747 = vmatpush.msrb.mxu0 %v5244_v63 }
 0x3d1   :  { %1748 = vmatpush.msrb.mxu0 %v5256_v28 }
 0x442   :  { %v1538_v44 = vpop.f32.mrf.mxu0  ;;  %v1558_v55 = vpop.f32.mrf.mxu1 }
 0x443   :  { %v1601_v5 = vadd.f32 %v1538_v44, %v210_v17  ;;  %v1602_v58 = vadd.f32 %v1558_v55, %v251_v61  ;;  %v5264_v17 = vld [vmem:[#allocation6 + $0x98] sm:$0xff]  ;;  %v333_v61 = vadd.f32 %v6785_v16, %v6773_v7  ;;  %v5270_v44 = vld [vmem:[#allocation6 + $0x60] sm:$0xff]  ;;  %v5272_v55 = vld [vmem:[#allocation6 + $0x68] sm:$0xff] }
 0x444   :  { %1808 = vmatpush.msrb.mxu3 %v5264_v17  ;;  %1749 = vmatpush.msrb.mxu0 %v5270_v44  ;;  %v5284_v16 = vld [vmem:[#allocation6 + $0x48] sm:$0xff] }
 0x445   :  { %v3733_v21 = vmul.f32 -1.442695, %v1601_v5  ;;  %v3734_v22 = vmul.f32 -1.442695, %v1602_v58  ;;  %v5274_v5 = vld [vmem:[#allocation6 + $0x70] sm:$0xff]  ;;  %1769 = vmatpush.msrb.mxu1 %v5272_v55  ;;  %6789 = vst [vmem:[#allocation58_spill] sm:$0xff] %v5284_v16 }
 0x446   :  { %6786 = vst [vmem:[#allocation55_spill] sm:$0xff] %v5274_v5  ;;  %1789 = vmatpush.msrb.mxu2 %v5274_v5  ;;  %v5314_v5 = vld [vmem:[#allocation6 + $0x18] sm:$0xff] }
 0x447   :  { %3855 = vpow2.f32 %v3733_v21  ;;  %v5278_v21 = vld [vmem:[#allocation6 + $0x78] sm:$0xff]  ;;  %1770 = vmatpush.msrb.mxu1 %v5284_v16  ;;  %v5304_v16 = vld [vmem:[#allocation6] sm:$0xff] }
 0x448   :  { %3857 = vpow2.f32 %v3734_v22  ;;  %6787 = vst [vmem:[#allocation56_spill] sm:$0xff] %v5278_v21  ;;  %1809 = vmatpush.msrb.mxu3 %v5278_v21  ;;  %v5282_v22 = vld [vmem:[#allocation6 + $0x40] sm:$0xff]  ;;  %1790 = vmatpush.msrb.mxu2 %v5286_v27 }
 0x449   :  { %v1598_v58 = vpop.f32.mrf.mxu3  ;;  %6788 = vst [vmem:[#allocation57_spill] sm:$0xff] %v5282_v22  ;;  %1750 = vmatpush.msrb.mxu0 %v5282_v22  ;;  %v5302_v22 = vld [vmem:[#allocation6 + $0x38] sm:$0xff] }
 0x44a   :  { %v1604_v38 = vadd.f32 %v1598_v58, %v333_v61  ;;  %1810 = vmatpush.msrb.mxu3 %v5290_v50  ;;  %v5294_v61 = vld [vmem:[#allocation6 + $0x20] sm:$0xff]  ;;  %v5296_v58 = vld [vmem:[#allocation6 + $0x28] sm:$0xff]  ;;  %1791 = vmatpush.msrb.mxu2 %v5298_v24  ;;  %v5312_v50 = vld [vmem:[#allocation6 + $0x10] sm:$0xff] }
 0x44b   :  { %6792 = vst [vmem:[#allocation41_spill] sm:$0xff] %v5294_v61  ;;  %1751 = vmatpush.msrb.mxu0 %v5294_v61  ;;  %1771 = vmatpush.msrb.mxu1 %v5296_v58 }
 0x44c   :  { %v3735_v7 = vmul.f32 -1.442695, %v1604_v38  ;;  %v5306_v38 = vld [vmem:[#allocation6 + $0x8] sm:$0xff]  ;;  %1811 = vmatpush.msrb.mxu3 %v5302_v22  ;;  %6793 = vst [vmem:[#allocation42_spill] sm:$0xff] %v5312_v50  ;;  %1792 = vmatpush.msrb.mxu2 %v5312_v50 }
 0x44d   :  { %v3856_v19 = vpop.eup %3855  ;;  %1752 = vmatpush.msrb.mxu0 %v5304_v16  ;;  %1772 = vmatpush.msrb.mxu1 %v5306_v38 }
 0x44e   :  { %v3858_v27 = vpop.eup %3857  ;;  %v5308_v21 = vadd.f32 1.0, %v3856_v19  ;;  %3859 = vpow2.f32 %v3735_v7  ;;  %1812 = vmatpush.msrb.mxu3 %v5314_v5  ;;  %1993 = vmatpush.msra.mxu2 %v5124_v33  ;;  %v1578_v19 = vpop.f32.mrf.mxu2 }
 0x44f   :  { %v5316_v61 = vadd.f32 1.0, %v3858_v27  ;;  %1953 = vmatpush.msra.mxu0 %v5120_v37  ;;  %1973 = vmatpush.msra.mxu1 %v5122_v48  ;;  %v6794_v27 = vld [vmem:[#allocation27_spill] sm:$0xff] }
 0x450   :  { %3861 = vrcp.f32 %v5308_v21  ;;  %2013 = vmatpush.msra.mxu3 %v5128_v54  ;;  %v292_v50 = vadd.f32 %v6794_v27, %v6775_v49  ;;  %1994 = vmatpush.msra.mxu2 %v5136_v4  ;;  %vm1614_vm14 = vweird.f32 %v5308_v21  ;;  %v2153_v27 = vld [vmem:[#allocation8 + $0x160] sm:$0xff] }
 0x451   :  { %3863 = vrcp.f32 %v5316_v61  ;;  %1954 = vmatpush.msra.mxu0 %v5132_v13  ;;  %1974 = vmatpush.msra.mxu1 %v5134_v2  ;;  %vm1633_vm15 = vweird.f32 %v5316_v61 }
 0x452   :  { %2014 = vmatpush.msra.mxu3 %v5140_v34  ;;  %v1603_v33 = vadd.f32 %v1578_v19, %v292_v50  ;;  %1995 = vmatpush.msra.mxu2 %v5148_v36  ;;  %v1620_v34 = vand.u32 2147483648, %v5308_v21  ;;  %v1618_v36 = vand.u32 2147483647, %v5308_v21  ;;  %v2159_v19 = vld [vmem:[#allocation8 + $0x190] sm:$0xff] }
 0x453   :  { %1955 = vmatpush.msra.mxu0 %v5144_v30  ;;  %1975 = vmatpush.msra.mxu1 %v5146_v18  ;;  %v1639_v30 = vand.u32 2147483648, %v5316_v61 }
 0x454   :  { %v3860_v7 = vpop.eup %3859  ;;  %2015 = vmatpush.msra.mxu3 %v5152_v40  ;;  %1996 = vmatpush.msra.mxu2 %v5160_v43  ;;  %vm1619_vm2 = vcmp.eq.f32.partialorder %v1618_v36, 8.507059e+37  ;;  %v2149_v36 = vld [vmem:[#allocation8 + $0x140] sm:$0xff] }
 0x455   :  { %v5334_v37 = vadd.f32 1.0, %v3860_v7  ;;  %1956 = vmatpush.msra.mxu0 %v5156_v3  ;;  %1976 = vmatpush.msra.mxu1 %v5158_v42  ;;  %v1637_v3 = vand.u32 2147483647, %v5316_v61  ;;  %v2160_v7 = vld [vmem:[#allocation8 + $0x198] sm:$0xff] }
 0x456   :  { %v3862_v48 = vpop.eup %3861  ;;  %2016 = vmatpush.msra.mxu3 %v5164_v47  ;;  %1997 = vmatpush.msra.mxu2 %v5172_v8  ;;  %v1621_v47 = vor.u32 1.1754944e-38, %v1620_v34  ;;  %v1640_v8 = vor.u32 1.1754944e-38, %v1639_v30  ;;  %v2156_v34 = vld [vmem:[#allocation8 + $0x178] sm:$0xff] }
 0x457   :  { %v3864_v54 = vpop.eup %3863  ;;  %v1610_v13 = vmul.f32 %v3862_v48, %v5308_v21  ;;  %3865 = vrcp.f32 %v5334_v37  ;;  %1957 = vmatpush.msra.mxu0 %v5168_v51  ;;  %1977 = vmatpush.msra.mxu1 %v5170_v53  ;;  %vm1615_vm12 = vweird.f32 %v3862_v48  ;;  %vm1638_vm3 = vcmp.eq.f32.partialorder %v1637_v3, 8.507059e+37  ;;  %v2168_v21 = vld [vmem:[#allocation8 + $0x1d8] sm:$0xff]  ;;  %v2151_v3 = vld [vmem:[#allocation8 + $0x150] sm:$0xff] }
 0x458   :  { %v1629_v2 = vmul.f32 %v3864_v54, %v5316_v61  ;;  %3867 = vtanh.f32 %v1603_v33  ;;  %2017 = vmatpush.msra.mxu3 %v5176_v9  ;;  %vm1634_vm13 = vweird.f32 %v3864_v54  ;;  %1998 = vmatpush.msra.mxu2 %v5184_v35  ;;  %vm1616_vm0 = vmor %vm1614_vm14, %vm1615_vm12  ;;  %vm1653_vm5 = vweird.f32 %v5334_v37  ;;  %v2163_v61 = vld [vmem:[#allocation8 + $0x1b0] sm:$0xff]  ;;  %v6803_v33 = vld [vmem:[#allocation31_spill] sm:$0xff] }
 0x459   :  { %v1611_v50 = vsub.f32 1.0, %v1610_v13  ;;  %1958 = vmatpush.msra.mxu0 %v5180_v31  ;;  %1978 = vmatpush.msra.mxu1 %v5182_v32  ;;  %vm1635_vm1 = vmor %vm1633_vm15, %vm1634_vm13 }
 0x45a   :  { %v1630_v4 = vsub.f32 1.0, %v1629_v2  ;;  %2018 = vmatpush.msra.mxu3 %v5188_v0  ;;  %1999 = vmatpush.msra.mxu2 %v5196_v20  ;;  %v6805_v2 = vld [vmem:[#allocation32_spill] sm:$0xff] }
 0x45b   :  { %v1612_v18 = vmul.f32 %v3862_v48, %v1611_v50  ;;  %1959 = vmatpush.msra.mxu0 %v5192_v25  ;;  %1979 = vmatpush.msra.mxu1 %v5194_v12  ;;  %v6806_v50 = vld [vmem:[#allocation26_spill] sm:$0xff] }
 0x45c   :  { %v1631_v40 = vmul.f32 %v3864_v54, %v1630_v4  ;;  %2019 = vmatpush.msra.mxu3 %v5200_v23  ;;  %2000 = vmatpush.msra.mxu2 %v5208_v45  ;;  %v1657_v45 = vand.u32 2147483647, %v5334_v37  ;;  %v254_v4 = vadd.f32 %v6806_v50, %v6805_v2  ;;  %v2116_v50 = vld [vmem:[#allocation8 + $0x38] sm:$0xff] }
 0x45d   :  { %v5359_v42 = vpop.eup %3865  ;;  %v1613_v43 = vadd.f32 %v3862_v48, %v1612_v18  ;;  %1960 = vmatpush.msra.mxu0 %v5204_v15  ;;  %1980 = vmatpush.msra.mxu1 %v5206_v41 }
 0x45e   :  { %v1632_v51 = vadd.f32 %v3864_v54, %v1631_v40  ;;  %v1649_v53 = vmul.f32 %v5359_v42, %v5334_v37  ;;  %v3868_v31 = vpop.eup %3867  ;;  %2020 = vmatpush.msra.mxu3 %v5212_v46  ;;  %2001 = vmatpush.msra.mxu2 %v5220_v60  ;;  %vm1654_vm4 = vweird.f32 %v5359_v42  ;;  %v6796_v60 = vld [vmem:[#allocation56_spill] sm:$0xff]  ;;  %vm1658_vm7 = vcmp.eq.f32.partialorder %v1657_v45, 8.507059e+37  ;;  %v2150_v40 = vld [vmem:[#allocation8 + $0x148] sm:$0xff] }
 0x45f   :  { %v1617_v9 = vsel %vm1616_vm0, %v3862_v48, %v1613_v43  ;;  %1961 = vmatpush.msra.mxu0 %v5216_v6  ;;  %1981 = vmatpush.msra.mxu1 %v5218_v11  ;;  %vm1655_vm6 = vmor %vm1653_vm5, %vm1654_vm4  ;;  %v6795_v11 = vld [vmem:[#allocation55_spill] sm:$0xff]  ;;  %v2155_v48 = vld [vmem:[#allocation8 + $0x170] sm:$0xff] }
 0x460   :  { %v1622_v32 = vsel %vm1619_vm2, %v1621_v47, %v1617_v9  ;;  %v1636_v35 = vsel %vm1635_vm1, %v3864_v54, %v1632_v51  ;;  %v1650_v0 = vsub.f32 1.0, %v1649_v53  ;;  %2021 = vmatpush.msra.mxu3 %v5228_v10  ;;  %2002 = vmatpush.msra.mxu2 %v5236_v1  ;;  %v6797_v10 = vld [vmem:[#allocation57_spill] sm:$0xff]  ;;  %v2145_v51 = vld [vmem:[#allocation8 + $0x120] sm:$0xff]  ;;  %v2146_v53 = vld [vmem:[#allocation8 + $0x128] sm:$0xff] }
 0x461   :  { %v1641_v25 = vsel %vm1638_vm3, %v1640_v8, %v1636_v35  ;;  %v1664_v12 = vmul.f32 %v3868_v31, %v1622_v32  ;;  %1962 = vmatpush.msra.mxu0 %v5232_v57  ;;  %1982 = vmatpush.msra.mxu1 %v5234_v59  ;;  %v6798_v57 = vld [vmem:[#allocation58_spill] sm:$0xff]  ;;  %v6804_v54 = vld [vmem:[#allocation25_spill] sm:$0xff]  ;;  %v2147_v8 = vld [vmem:[#allocation8 + $0x130] sm:$0xff] }
 0x462   :  { %v1663_v20 = vmul.f32 %v1641_v25, %v5111_v39  ;;  %v1651_v23 = vmul.f32 %v5359_v42, %v1650_v0  ;;  %2022 = vmatpush.msra.mxu3 %v5240_v62  ;;  %v1659_v39 = vand.u32 2147483648, %v5334_v37  ;;  %2003 = vmatpush.msra.mxu2 %v5248_v52  ;;  %v6799_v62 = vld [vmem:[#allocation59_spill] sm:$0xff]  ;;  %v6801_v52 = vld [vmem:[#allocation41_spill] sm:$0xff]  ;;  %v213_v13 = vadd.f32 %v6804_v54, %v6803_v33  ;;  %v2141_v35 = vld [vmem:[#allocation8 + $0x100] sm:$0xff] }
 0x463   :  { %1963 = vmatpush.msra.mxu0 %v5244_v63  ;;  %1983 = vmatpush.msra.mxu1 %v5246_v26  ;;  %v6800_v63 = vld [vmem:[#allocation40_spill] sm:$0xff]  ;;  %v2154_v37 = vld [vmem:[#allocation8 + $0x168] sm:$0xff]  ;;  %v2152_v47 = vld [vmem:[#allocation8 + $0x158] sm:$0xff] }
 0x464   :  { %v5383_v15 = vadd.f32 %v1664_v12, %v1663_v20  ;;  %v1652_v41 = vadd.f32 %v5359_v42, %v1651_v23  ;;  %2023 = vmatpush.msra.mxu3 %v5252_v56  ;;  %2004 = vmatpush.msra.mxu2 %v5260_v14  ;;  %v1660_v6 = vor.u32 1.1754944e-38, %v1659_v39  ;;  %v6802_v56 = vld [vmem:[#allocation42_spill] sm:$0xff]  ;;  %v2172_v14 = vld [vmem:[#allocation8 + $0x1f8] sm:$0xff]  ;;  %v2142_v0 = vld [vmem:[#allocation8 + $0x108] sm:$0xff] }
 0x465   :  { %1964 = vmatpush.msra.mxu0 %v5256_v28  ;;  %1984 = vmatpush.msra.mxu1 %v5258_v29  ;;  %v2169_v28 = vld [vmem:[#allocation8 + $0x1e0] sm:$0xff]  ;;  %v2171_v29 = vld [vmem:[#allocation8 + $0x1f0] sm:$0xff]  ;;  %v2148_v32 = vld [vmem:[#allocation8 + $0x138] sm:$0xff] }
 0x466   :  { %3869 = vtanh.f32 %v5383_v15  ;;  %2024 = vmatpush.msra.mxu3 %v5264_v17  ;;  %v1656_v46 = vsel %vm1655_vm6, %v5359_v42, %v1652_v41  ;;  %2005 = vmatpush.msra.mxu2 %v6795_v11  ;;  %v2165_v17 = vld [vmem:[#allocation8 + $0x1c0] sm:$0xff]  ;;  %v2143_v25 = vld [vmem:[#allocation8 + $0x110] sm:$0xff]  ;;  %v2144_v12 = vld [vmem:[#allocation8 + $0x118] sm:$0xff] }
 0x467   :  { %1965 = vmatpush.msra.mxu0 %v5270_v44  ;;  %1985 = vmatpush.msra.mxu1 %v5272_v55  ;;  %v1661_v1 = vsel %vm1658_vm7, %v1660_v6, %v1656_v46  ;;  %v2166_v44 = vld [vmem:[#allocation8 + $0x1c8] sm:$0xff]  ;;  %v2167_v55 = vld [vmem:[#allocation8 + $0x1d0] sm:$0xff]  ;;  %v2137_v39 = vld [vmem:[#allocation8 + $0xe0] sm:$0xff] }
 0x468   :  { %2025 = vmatpush.msra.mxu3 %v6796_v60  ;;  %2006 = vmatpush.msra.mxu2 %v6799_v62  ;;  %v6807_v20 = vld [vmem:[#allocation35_spill] sm:$0xff]  ;;  %v6808_v23 = vld [vmem:[#allocation28_spill] sm:$0xff]  ;;  %v2140_v11 = vld [vmem:[#allocation8 + $0xf8] sm:$0xff] }
 0x469   :  { %1966 = vmatpush.msra.mxu0 %v6797_v10  ;;  %1986 = vmatpush.msra.mxu1 %v6798_v57  ;;  %v336_v41 = vadd.f32 %v6808_v23, %v6807_v20  ;;  %v2138_v45 = vld [vmem:[#allocation8 + $0xe8] sm:$0xff]  ;;  %v2139_v46 = vld [vmem:[#allocation8 + $0xf0] sm:$0xff]  ;;  %v2133_v10 = vld [vmem:[#allocation8 + $0xc0] sm:$0xff] }
 0x46a   :  { %2026 = vmatpush.msra.mxu3 %v6800_v63  ;;  %2007 = vmatpush.msra.mxu2 %v5298_v24  ;;  %v2170_v24 = vld [vmem:[#allocation8 + $0x1e8] sm:$0xff]  ;;  %v2129_v63 = vld [vmem:[#allocation8 + $0xa0] sm:$0xff] }
 0x46b   :  { %1967 = vmatpush.msra.mxu0 %v6801_v52  ;;  %1987 = vmatpush.msra.mxu1 %v5296_v58  ;;  %v2157_v58 = vld [vmem:[#allocation8 + $0x180] sm:$0xff]  ;;  %v2134_v57 = vld [vmem:[#allocation8 + $0xc8] sm:$0xff] }
 0x46c   :  { %v3870_v59 = vpop.eup %3869  ;;  %2027 = vmatpush.msra.mxu3 %v5302_v22  ;;  %2008 = vmatpush.msra.mxu2 %v6802_v56  ;;  %v2161_v22 = vld [vmem:[#allocation8 + $0x1a0] sm:$0xff]  ;;  %v2130_v52 = vld [vmem:[#allocation8 + $0xa8] sm:$0xff]  ;;  %v2131_v56 = vld [vmem:[#allocation8 + $0xb0] sm:$0xff] }
 0x46d   :  { %v5410_v26 = vmul.f32 %v3870_v59, %v1661_v1  ;;  %1968 = vmatpush.msra.mxu0 %v5304_v16  ;;  %1988 = vmatpush.msra.mxu1 %v5306_v38  ;;  %v2162_v16 = vld [vmem:[#allocation8 + $0x1a8] sm:$0xff]  ;;  %v2135_v59 = vld [vmem:[#allocation8 + $0xd0] sm:$0xff]  ;;  %v2136_v1 = vld [vmem:[#allocation8 + $0xd8] sm:$0xff] }
 0x46e   :  { %2028 = vmatpush.msra.mxu3 %v5314_v5  ;;  %v2164_v5 = vld [vmem:[#allocation8 + $0x1b8] sm:$0xff]  ;;  %v2158_v38 = vld [vmem:[#allocation8 + $0x188] sm:$0xff] }
 0x46f   :  { %1753 = vmatmul.f32.vlgmr.msrb.gmra.mxu0 %v5410_v26  ;;  %1773 = vmatmul.f32.vlgmr.msrb.gmra.mxu1 %v5410_v26  ;;  %v2114_v54 = vld [vmem:[#allocation8 + $0x28] sm:$0xff] }
 0x470   :  { %1793 = vmatmul.f32.vlgmr.msrb.gmra.mxu2 %v5410_v26  ;;  %1813 = vmatmul.f32.vlgmr.msrb.gmra.mxu3 %v5410_v26 }
 0x471   :  { %2183 = vmatpush.msrb.mxu0 %v2169_v28  ;;  %2224 = vmatpush.msrb.mxu1 %v2170_v24  ;;  %v2132_v24 = vld [vmem:[#allocation8 + $0xb8] sm:$0xff] }
 0x472   :  { %2265 = vmatpush.msrb.mxu2 %v2171_v29  ;;  %2306 = vmatpush.msrb.mxu3 %v2172_v14  ;;  %v2125_v29 = vld [vmem:[#allocation8 + $0x80] sm:$0xff]  ;;  %v2126_v14 = vld [vmem:[#allocation8 + $0x88] sm:$0xff] }
 0x473   :  { %2184 = vmatpush.msrb.mxu0 %v2165_v17  ;;  %2225 = vmatpush.msrb.mxu1 %v2166_v44 }
 0x474   :  { %2266 = vmatpush.msrb.mxu2 %v2167_v55  ;;  %2307 = vmatpush.msrb.mxu3 %v2168_v21  ;;  %v2127_v55 = vld [vmem:[#allocation8 + $0x90] sm:$0xff]  ;;  %v2128_v21 = vld [vmem:[#allocation8 + $0x98] sm:$0xff] }
 0x475   :  { %2185 = vmatpush.msrb.mxu0 %v2161_v22  ;;  %2226 = vmatpush.msrb.mxu1 %v2162_v16  ;;  %v2121_v16 = vld [vmem:[#allocation8 + $0x60] sm:$0xff] }
 0x476   :  { %2267 = vmatpush.msrb.mxu2 %v2163_v61  ;;  %2308 = vmatpush.msrb.mxu3 %v2164_v5  ;;  %v2122_v61 = vld [vmem:[#allocation8 + $0x68] sm:$0xff]  ;;  %v2123_v5 = vld [vmem:[#allocation8 + $0x70] sm:$0xff] }
 0x477   :  { %2186 = vmatpush.msrb.mxu0 %v2157_v58  ;;  %2227 = vmatpush.msrb.mxu1 %v2158_v38  ;;  %v2124_v58 = vld [vmem:[#allocation8 + $0x78] sm:$0xff]  ;;  %v2117_v38 = vld [vmem:[#allocation8 + $0x40] sm:$0xff] }
 0x478   :  { %2268 = vmatpush.msrb.mxu2 %v2159_v19  ;;  %2309 = vmatpush.msrb.mxu3 %v2160_v7  ;;  %v2118_v19 = vld [vmem:[#allocation8 + $0x48] sm:$0xff]  ;;  %v2119_v7 = vld [vmem:[#allocation8 + $0x50] sm:$0xff] }
 0x479   :  { %2187 = vmatpush.msrb.mxu0 %v2153_v27  ;;  %2228 = vmatpush.msrb.mxu1 %v2154_v37  ;;  %v2120_v27 = vld [vmem:[#allocation8 + $0x58] sm:$0xff]  ;;  %v2113_v37 = vld [vmem:[#allocation8 + $0x20] sm:$0xff] }
 0x47a   :  { %2269 = vmatpush.msrb.mxu2 %v2155_v48  ;;  %2310 = vmatpush.msrb.mxu3 %v2156_v34  ;;  %v6809_v34 = vld [vmem:[#allocation33_spill] sm:$0xff] }
 0x47b   :  { %2188 = vmatpush.msrb.mxu0 %v2149_v36  ;;  %2229 = vmatpush.msrb.mxu1 %v2150_v40  ;;  %v2110_v36 = vld [vmem:[#allocation8 + $0x8] sm:$0xff] }
 0x47c   :  { %2270 = vmatpush.msrb.mxu2 %v2151_v3  ;;  %2311 = vmatpush.msrb.mxu3 %v2152_v47  ;;  %v2111_v3 = vld [vmem:[#allocation8 + $0x10] sm:$0xff] }
 0x47d   :  { %2189 = vmatpush.msrb.mxu0 %v2145_v51  ;;  %2230 = vmatpush.msrb.mxu1 %v2146_v53 }
 0x47e   :  { %2271 = vmatpush.msrb.mxu2 %v2147_v8  ;;  %2312 = vmatpush.msrb.mxu3 %v2148_v32 }
 0x47f   :  { %2190 = vmatpush.msrb.mxu0 %v2141_v35  ;;  %2231 = vmatpush.msrb.mxu1 %v2142_v0 }
 0x480   :  { %2272 = vmatpush.msrb.mxu2 %v2143_v25  ;;  %2313 = vmatpush.msrb.mxu3 %v2144_v12 }
 0x481   :  { %2191 = vmatpush.msrb.mxu0 %v2137_v39  ;;  %2232 = vmatpush.msrb.mxu1 %v2138_v45 }
 0x482   :  { %2273 = vmatpush.msrb.mxu2 %v2139_v46  ;;  %2314 = vmatpush.msrb.mxu3 %v2140_v11 }
 0x483   :  { %2192 = vmatpush.msrb.mxu0 %v2133_v10  ;;  %2233 = vmatpush.msrb.mxu1 %v2134_v57 }
 0x484   :  { %2274 = vmatpush.msrb.mxu2 %v2135_v59  ;;  %2315 = vmatpush.msrb.mxu3 %v2136_v1 }
 0x485   :  { %2193 = vmatpush.msrb.mxu0 %v2129_v63  ;;  %2234 = vmatpush.msrb.mxu1 %v2130_v52 }
 0x486   :  { %2275 = vmatpush.msrb.mxu2 %v2131_v56  ;;  %2316 = vmatpush.msrb.mxu3 %v2132_v24 }
 0x487   :  { %2194 = vmatpush.msrb.mxu0 %v2125_v29  ;;  %2235 = vmatpush.msrb.mxu1 %v2126_v14 }
 0x488   :  { %2276 = vmatpush.msrb.mxu2 %v2127_v55  ;;  %2317 = vmatpush.msrb.mxu3 %v2128_v21 }
 0x489   :  { %2195 = vmatpush.msrb.mxu0 %v2121_v16  ;;  %2236 = vmatpush.msrb.mxu1 %v2122_v61  ;;  %v6811_v16 = vld [vmem:[#allocation39_spill] sm:$0xff]  ;;  %v6812_v61 = vld [vmem:[#allocation52_spill] sm:$0xff] }
 0x48a   :  { %2277 = vmatpush.msrb.mxu2 %v2123_v5  ;;  %2318 = vmatpush.msrb.mxu3 %v2124_v58  ;;  %v5462_v5 = vld [vmem:[#allocation9 + $0x1e0] sm:$0xff]  ;;  %v5464_v58 = vld [vmem:[#allocation9 + $0x1e8] sm:$0xff] }
 0x48b   :  { %2196 = vmatpush.msrb.mxu0 %v2117_v38  ;;  %2237 = vmatpush.msrb.mxu1 %v2118_v19  ;;  %6813 = vst [vmem:[#allocation43_spill] sm:$0xff] %v5462_v5  ;;  %v5466_v38 = vld [vmem:[#allocation9 + $0x1c0] sm:$0xff]  ;;  %v5470_v19 = vld [vmem:[#allocation9 + $0x1c8] sm:$0xff] }
 0x48c   :  { %2278 = vmatpush.msrb.mxu2 %v2119_v7  ;;  %2319 = vmatpush.msrb.mxu3 %v2120_v27  ;;  %6814 = vst [vmem:[#allocation44_spill] sm:$0xff] %v5470_v19  ;;  %v5472_v7 = vld [vmem:[#allocation9 + $0x1f8] sm:$0xff]  ;;  %v5475_v27 = vld [vmem:[#allocation9 + $0x1a0] sm:$0xff] }
 0x48d   :  { %2197 = vmatpush.msrb.mxu0 %v2113_v37  ;;  %2238 = vmatpush.msrb.mxu1 %v2114_v54  ;;  %v5477_v37 = vld [vmem:[#allocation9 + $0x1a8] sm:$0xff]  ;;  %v6817_v54 = vld [vmem:[#allocation53_spill] sm:$0xff] }
 0x48e   :  { %2320 = vmatpush.msrb.mxu3 %v2116_v50  ;;  %6815 = vst [vmem:[#allocation45_spill] sm:$0xff] %v5477_v37  ;;  %v5498_v50 = vld [vmem:[#allocation9 + $0x1f0] sm:$0xff] }
 0x48f   :  { %2239 = vmatpush.msrb.mxu1 %v2110_v36  ;;  %v5510_v36 = vld [vmem:[#allocation9 + $0x188] sm:$0xff] }
 0x4ec   :  { %v1754_v30 = vpop.f32.mrf.mxu0  ;;  %v1774_v18 = vpop.f32.mrf.mxu1 }
 0x4ed   :  { %v1817_v42 = vadd.f32 %v1754_v30, %v213_v13  ;;  %v1818_v43 = vadd.f32 %v1774_v18, %v254_v4  ;;  %v2115_v13 = vld [vmem:[#allocation8 + $0x30] sm:$0xff]  ;;  %v295_v30 = vadd.f32 %v6809_v34, %v6775_v49  ;;  %v2109_v18 = vld [vmem:[#allocation8] sm:$0xff]  ;;  %v5504_v34 = vld [vmem:[#allocation9 + $0x1b8] sm:$0xff] }
 0x4ee   :  { %2279 = vmatpush.msrb.mxu2 %v2115_v13  ;;  %2198 = vmatpush.msrb.mxu0 %v2109_v18  ;;  %v6818_v13 = vld [vmem:[#allocation54_spill] sm:$0xff]  ;;  %6819 = vst [vmem:[#allocation47_spill] sm:$0xff] %v5504_v34 }
 0x4ef   :  { %v3736_v9 = vmul.f32 -1.442695, %v1817_v42  ;;  %v3737_v31 = vmul.f32 -1.442695, %v1818_v43  ;;  %v2112_v42 = vld [vmem:[#allocation8 + $0x18] sm:$0xff]  ;;  %v5508_v18 = vld [vmem:[#allocation9 + $0x180] sm:$0xff] }
 0x4f0   :  { %2280 = vmatpush.msrb.mxu2 %v2111_v3  ;;  %2321 = vmatpush.msrb.mxu3 %v2112_v42  ;;  %6820 = vst [vmem:[#allocation48_spill] sm:$0xff] %v5508_v18  ;;  %v5520_v3 = vld [vmem:[#allocation9 + $0x198] sm:$0xff]  ;;  %v5522_v42 = vld [vmem:[#allocation9 + $0x190] sm:$0xff] }
 0x4f1   :  { %3871 = vpow2.f32 %v3736_v9 }
 0x4f2   :  { %3873 = vpow2.f32 %v3737_v31 }
 0x4f3   :  { %v1814_v6 = vpop.f32.mrf.mxu3  ;;  %v1794_v48 = vpop.f32.mrf.mxu2 }
 0x4f4   :  { %v1820_v60 = vadd.f32 %v1814_v6, %v336_v41  ;;  %v1819_v47 = vadd.f32 %v1794_v48, %v295_v30  ;;  %v5479_v48 = vld [vmem:[#allocation9 + $0x1d8] sm:$0xff]  ;;  %v5506_v30 = vld [vmem:[#allocation9 + $0x1b0] sm:$0xff] }
 0x4f5   :  { %6816 = vst [vmem:[#allocation46_spill] sm:$0xff] %v5479_v48 }
 0x4f6   :  { %v3738_v62 = vmul.f32 -1.442695, %v1820_v60 }
 0x4f7   :  { %v3872_v28 = vpop.eup %3871 }
 0x4f8   :  { %v3874_v17 = vpop.eup %3873  ;;  %v5430_v44 = vadd.f32 1.0, %v3872_v28  ;;  %3875 = vpow2.f32 %v3738_v62 }
 0x4f9   :  { %v5432_v22 = vadd.f32 1.0, %v3874_v17 }
 0x4fa   :  { %3877 = vrcp.f32 %v5430_v44  ;;  %v1836_v32 = vand.u32 2147483648, %v5430_v44  ;;  %v1834_v25 = vand.u32 2147483647, %v5430_v44  ;;  %vm1830_vm10 = vweird.f32 %v5430_v44 }
 0x4fb   :  { %3879 = vrcp.f32 %v5432_v22  ;;  %v1855_v35 = vand.u32 2147483648, %v5432_v22  ;;  %v1853_v23 = vand.u32 2147483647, %v5432_v22  ;;  %vm1849_vm11 = vweird.f32 %v5432_v22 }
 0x4fc   :  { %v1837_v45 = vor.u32 1.1754944e-38, %v1836_v32  ;;  %vm1835_vm14 = vcmp.eq.f32.partialorder %v1834_v25, 8.507059e+37  ;;  %v5540_v32 = vld [vmem:[#allocation9 + $0x148] sm:$0xff] }
 0x4fd   :  { %v1856_v11 = vor.u32 1.1754944e-38, %v1855_v35  ;;  %vm1854_vm15 = vcmp.eq.f32.partialorder %v1853_v23, 8.507059e+37  ;;  %v5542_v35 = vld [vmem:[#allocation9 + $0x158] sm:$0xff] }
 0x4fe   :  { %v3876_v4 = vpop.eup %3875 }
 0x4ff   :  { %v1863_v40 = vadd.f32 1.0, %v3876_v4  ;;  %v5501_v4 = vld [vmem:[#allocation9 + $0x1d0] sm:$0xff] }
 0x500   :  { %v3878_v43 = vpop.eup %3877 }
 0x501   :  { %v3880_v51 = vpop.eup %3879  ;;  %v1826_v53 = vmul.f32 %v3878_v43, %v5430_v44  ;;  %3881 = vrcp.f32 %v1863_v40  ;;  %vm1831_vm8 = vweird.f32 %v3878_v43  ;;  %v1875_v29 = vand.u32 2147483648, %v1863_v40 }
 0x502   :  { %v1845_v8 = vmul.f32 %v3880_v51, %v5432_v22  ;;  %3883 = vtanh.f32 %v1819_v47  ;;  %vm1850_vm9 = vweird.f32 %v3880_v51  ;;  %vm1832_vm12 = vmor %vm1830_vm10, %vm1831_vm8  ;;  %vm1869_vm1 = vweird.f32 %v1863_v40  ;;  %v5530_v47 = vld [vmem:[#allocation9 + $0x170] sm:$0xff] }
 0x503   :  { %v1827_v9 = vsub.f32 1.0, %v1826_v53  ;;  %vm1851_vm13 = vmor %vm1849_vm11, %vm1850_vm9  ;;  %v1873_v14 = vand.u32 2147483647, %v1863_v40  ;;  %v1876_v44 = vor.u32 1.1754944e-38, %v1875_v29 }
 0x504   :  { %v1846_v31 = vsub.f32 1.0, %v1845_v8  ;;  %v6822_v8 = vld [vmem:[#allocation30_spill] sm:$0xff] }
 0x505   :  { %v1828_v0 = vmul.f32 %v3878_v43, %v1827_v9  ;;  %vm1874_vm3 = vcmp.eq.f32.partialorder %v1873_v14, 8.507059e+37  ;;  %v257_v9 = vadd.f32 %v6822_v8, %v6805_v2  ;;  %v5553_v2 = vld [vmem:[#allocation9 + $0x138] sm:$0xff]  ;;  %v5588_v14 = vld [vmem:[#allocation9 + $0xa0] sm:$0xff] }
 0x506   :  { %v1847_v12 = vmul.f32 %v3880_v51, %v1846_v31  ;;  %v5538_v31 = vld [vmem:[#allocation9 + $0x140] sm:$0xff]  ;;  %6825 = vst [vmem:[#allocation50_spill] sm:$0xff] %v5588_v14 }
 0x507   :  { %v3882_v41 = vpop.eup %3881  ;;  %v1829_v39 = vadd.f32 %v3878_v43, %v1828_v0 }
 0x508   :  { %v1848_v46 = vadd.f32 %v3880_v51, %v1847_v12  ;;  %v1865_v6 = vmul.f32 %v3882_v41, %v1863_v40  ;;  %v3884_v10 = vpop.eup %3883  ;;  %vm1870_vm0 = vweird.f32 %v3882_v41  ;;  %v5518_v40 = vld [vmem:[#allocation9 + $0x168] sm:$0xff]  ;;  %v5546_v12 = vld [vmem:[#allocation9 + $0x150] sm:$0xff] }
 0x509   :  { %v1833_v60 = vsel %vm1832_vm12, %v3878_v43, %v1829_v39  ;;  %vm1871_vm2 = vmor %vm1869_vm1, %vm1870_vm0  ;;  %v5528_v43 = vld [vmem:[#allocation9 + $0x178] sm:$0xff]  ;;  %v5550_v39 = vld [vmem:[#allocation9 + $0x128] sm:$0xff] }
 0x50a   :  { %v1838_v57 = vsel %vm1835_vm14, %v1837_v45, %v1833_v60  ;;  %v1852_v59 = vsel %vm1851_vm13, %v3880_v51, %v1848_v46  ;;  %v1866_v1 = vsub.f32 1.0, %v1865_v6  ;;  %v6821_v51 = vld [vmem:[#allocation29_spill] sm:$0xff]  ;;  %v5558_v45 = vld [vmem:[#allocation9 + $0x130] sm:$0xff]  ;;  %v5562_v60 = vld [vmem:[#allocation9 + $0x108] sm:$0xff] }
 0x50b   :  { %v1857_v62 = vsel %vm1854_vm15, %v1856_v11, %v1852_v59  ;;  %v1880_v63 = vmul.f32 %v3884_v10, %v1838_v57  ;;  %v216_v53 = vadd.f32 %v6821_v51, %v6803_v33  ;;  %v5548_v33 = vld [vmem:[#allocation9 + $0x120] sm:$0xff]  ;;  %v5570_v57 = vld [vmem:[#allocation9 + $0xe8] sm:$0xff]  ;;  %v5572_v59 = vld [vmem:[#allocation9 + $0x118] sm:$0xff] }
 0x50c   :  { %v1879_v52 = vmul.f32 %v1857_v62, %v5383_v15  ;;  %v1867_v56 = vmul.f32 %v3882_v41, %v1866_v1  ;;  %v6810_v15 = vld [vmem:[#allocation38_spill] sm:$0xff]  ;;  %v5577_v62 = vld [vmem:[#allocation9 + $0xc8] sm:$0xff] }
 0x50d   :  { %v5560_v11 = vld [vmem:[#allocation9 + $0x100] sm:$0xff] }
 0x50e   :  { %v5447_v28 = vadd.f32 %v1880_v63, %v1879_v52  ;;  %v1868_v24 = vadd.f32 %v3882_v41, %v1867_v56  ;;  %v5568_v10 = vld [vmem:[#allocation9 + $0xe0] sm:$0xff]  ;;  %v5579_v63 = vld [vmem:[#allocation9 + $0xf8] sm:$0xff] }
 0x50f   :  { %v5575_v1 = vld [vmem:[#allocation9 + $0xc0] sm:$0xff] }
 0x510   :  { %3885 = vtanh.f32 %v5447_v28  ;;  %v1872_v17 = vsel %vm1871_vm2, %v3882_v41, %v1868_v24  ;;  %v6823_v52 = vld [vmem:[#allocation34_spill] sm:$0xff]  ;;  %v5585_v24 = vld [vmem:[#allocation9 + $0xd8] sm:$0xff] }
 0x511   :  { %v1877_v21 = vsel %vm1874_vm3, %v1876_v44, %v1872_v17  ;;  %v339_v56 = vadd.f32 %v6823_v52, %v6807_v20  ;;  %6824 = vst [vmem:[#allocation49_spill] sm:$0xff] %v5585_v24  ;;  %v5590_v17 = vld [vmem:[#allocation9 + $0xa8] sm:$0xff]  ;;  %v5592_v44 = vld [vmem:[#allocation9 + $0x110] sm:$0xff]  ;;  %v5596_v20 = vld [vmem:[#allocation9 + $0xb8] sm:$0xff] }
 0x512   :  { %6826 = vst [vmem:[#allocation51_spill] sm:$0xff] %v5590_v17  ;;  %v5614_v51 = vld [vmem:[#allocation9 + $0x60] sm:$0xff] }
 0x513   :  { %6827 = vst [vmem:[#allocation14_spill] sm:$0xff] %v5596_v20  ;;  %v5642_v52 = vld [vmem:[#allocation9 + $0x20] sm:$0xff] }
 0x514   :  { %6832 = vst [vmem:[#allocation18_spill] sm:$0xff] %v5614_v51 }
 0x515   :  { %6839 = vst [vmem:[#allocation27_spill] sm:$0xff] %v5642_v52 }
 0x516   :  { %v3886_v55 = vpop.eup %3885 }
 0x517   :  { %v1883_v22 = vmul.f32 %v3886_v55, %v1877_v21  ;;  %v5598_v21 = vld [vmem:[#allocation9 + $0xf0] sm:$0xff] }
 0x519   :  { %1969 = vmatmul.f32.vlgmr.msra.gmra.mxu0 %v1883_v22  ;;  %1989 = vmatmul.f32.vlgmr.msra.gmra.mxu1 %v1883_v22 }
 0x51a   :  { %2009 = vmatmul.f32.vlgmr.msra.gmra.mxu2 %v1883_v22  ;;  %2029 = vmatmul.f32.vlgmr.msra.gmra.mxu3 %v1883_v22 }
 0x51b   :  { %2447 = vmatpush.msra.mxu0 %v5462_v5  ;;  %2467 = vmatpush.msra.mxu1 %v5464_v58 }
 0x51c   :  { %2507 = vmatpush.msra.mxu3 %v5472_v7  ;;  %2487 = vmatpush.msra.mxu2 %v5498_v50 }
 0x51d   :  { %2448 = vmatpush.msra.mxu0 %v5466_v38  ;;  %2468 = vmatpush.msra.mxu1 %v5470_v19 }
 0x51e   :  { %2508 = vmatpush.msra.mxu3 %v5479_v48  ;;  %2488 = vmatpush.msra.mxu2 %v5501_v4 }
 0x51f   :  { %2449 = vmatpush.msra.mxu0 %v5475_v27  ;;  %2469 = vmatpush.msra.mxu1 %v5477_v37 }
 0x520   :  { %2509 = vmatpush.msra.mxu3 %v5504_v34  ;;  %2489 = vmatpush.msra.mxu2 %v5506_v30 }
 0x521   :  { %2199 = vmatmul.f32.vlgmr.msrb.gmra.mxu0 %v6810_v15  ;;  %2240 = vmatmul.f32.vlgmr.msrb.gmra.mxu1 %v6810_v15 }
 0x522   :  { %2281 = vmatmul.f32.vlgmr.msrb.gmra.mxu2 %v6810_v15  ;;  %2322 = vmatmul.f32.vlgmr.msrb.gmra.mxu3 %v6810_v15  ;;  %v5604_v15 = vld [vmem:[#allocation9 + $0x88] sm:$0xff] }
 0x523   :  { %2450 = vmatpush.msra.mxu0 %v5508_v18  ;;  %2470 = vmatpush.msra.mxu1 %v5510_v36  ;;  %6829 = vst [vmem:[#allocation17_spill] sm:$0xff] %v5604_v15 }
 0x524   :  { %2510 = vmatpush.msra.mxu3 %v5520_v3  ;;  %2490 = vmatpush.msra.mxu2 %v5522_v42 }
 0x525   :  { %2471 = vmatpush.msra.mxu1 %v5518_v40 }
 0x526   :  { %2511 = vmatpush.msra.mxu3 %v5528_v43  ;;  %2491 = vmatpush.msra.mxu2 %v5530_v47 }
 0x527   :  { %2472 = vmatpush.msra.mxu1 %v5540_v32 }
 0x528   :  { %2512 = vmatpush.msra.mxu3 %v5542_v35  ;;  %2492 = vmatpush.msra.mxu2 %v5546_v12 }
 0x529   :  { %2202 = vmatmul.f32.gmra.mxu0 %v6811_v16  ;;  %2243 = vmatmul.f32.gmra.mxu1 %v6811_v16 }
 0x52a   :  { %2284 = vmatmul.f32.gmra.mxu2 %v6811_v16  ;;  %2325 = vmatmul.f32.gmra.mxu3 %v6811_v16 }
 0x52b   :  { %2473 = vmatpush.msra.mxu1 %v5550_v39  ;;  %2513 = vmatpush.msra.mxu3 %v5553_v2 }
 0x52c   :  { %2493 = vmatpush.msra.mxu2 %v5558_v45 }
 0x52d   :  { %2474 = vmatpush.msra.mxu1 %v5562_v60  ;;  %2514 = vmatpush.msra.mxu3 %v5572_v59 }
 0x52e   :  { %2494 = vmatpush.msra.mxu2 %v5592_v44 }
 0x52f   :  { %2475 = vmatpush.msra.mxu1 %v5570_v57  ;;  %2515 = vmatpush.msra.mxu3 %v5579_v63 }
 0x530   :  { %2495 = vmatpush.msra.mxu2 %v5598_v21 }
 0x531   :  { %2205 = vmatmul.f32.gmra.mxu0 %v6812_v61  ;;  %2246 = vmatmul.f32.gmra.mxu1 %v6812_v61 }
 0x532   :  { %2287 = vmatmul.f32.gmra.mxu2 %v6812_v61  ;;  %2328 = vmatmul.f32.gmra.mxu3 %v6812_v61  ;;  %v5608_v61 = vld [vmem:[#allocation9 + $0x98] sm:$0xff] }
 0x533   :  { %2476 = vmatpush.msra.mxu1 %v5577_v62  ;;  %2516 = vmatpush.msra.mxu3 %v5585_v24  ;;  %6830 = vst [vmem:[#allocation37_spill] sm:$0xff] %v5608_v61 }
 0x535   :  { %2477 = vmatpush.msra.mxu1 %v5590_v17  ;;  %2517 = vmatpush.msra.mxu3 %v5596_v20 }
 0x537   :  { %2478 = vmatpush.msra.mxu1 %v5604_v15  ;;  %2518 = vmatpush.msra.mxu3 %v5608_v61  ;;  %v5666_v61 = vld [vmem:[#allocation9 + $0x18] sm:$0xff] }
 0x538   :  { %6848 = vst [vmem:[#allocation42_spill] sm:$0xff] %v5666_v61 }
 0x539   :  { %2208 = vmatmul.f32.gmra.mxu0 %v6817_v54  ;;  %2249 = vmatmul.f32.gmra.mxu1 %v6817_v54 }
 0x53a   :  { %2290 = vmatmul.f32.gmra.mxu2 %v6817_v54  ;;  %2331 = vmatmul.f32.gmra.mxu3 %v6817_v54  ;;  %v5610_v54 = vld [vmem:[#allocation9 + $0xd0] sm:$0xff] }
 0x53b   :  { %6831 = vst [vmem:[#allocation16_spill] sm:$0xff] %v5610_v54  ;;  %2496 = vmatpush.msra.mxu2 %v5610_v54 }
 0x541   :  { %2211 = vmatmul.f32.gmra.mxu0 %v6818_v13  ;;  %2252 = vmatmul.f32.gmra.mxu1 %v6818_v13 }
 0x542   :  { %2293 = vmatmul.f32.gmra.mxu2 %v6818_v13  ;;  %2334 = vmatmul.f32.gmra.mxu3 %v6818_v13 }
 0x549   :  { %2214 = vmatmul.f32.gmra.mxu0 %v5410_v26  ;;  %2255 = vmatmul.f32.gmra.mxu1 %v5410_v26 }
 0x54a   :  { %2296 = vmatmul.f32.gmra.mxu2 %v5410_v26  ;;  %2337 = vmatmul.f32.gmra.mxu3 %v5410_v26  ;;  %v5513_v26 = vld [vmem:[#allocation9 + $0x160] sm:$0xff] }
 0x54b   :  { %2451 = vmatpush.msra.mxu0 %v5513_v26 }
 0x54d   :  { %2452 = vmatpush.msra.mxu0 %v5538_v31 }
 0x54f   :  { %2453 = vmatpush.msra.mxu0 %v5548_v33 }
 0x551   :  { %2217 = vmatmul.f32.gmra.mxu0 %v1883_v22  ;;  %2258 = vmatmul.f32.gmra.mxu1 %v1883_v22 }
 0x552   :  { %2299 = vmatmul.f32.gmra.mxu2 %v1883_v22  ;;  %2340 = vmatmul.f32.gmra.mxu3 %v1883_v22  ;;  %v5602_v22 = vld [vmem:[#allocation9 + $0x80] sm:$0xff] }
 0x553   :  { %2454 = vmatpush.msra.mxu0 %v5560_v11  ;;  %6828 = vst [vmem:[#allocation15_spill] sm:$0xff] %v5602_v22 }
 0x555   :  { %2455 = vmatpush.msra.mxu0 %v5568_v10 }
 0x557   :  { %2456 = vmatpush.msra.mxu0 %v5575_v1 }
 0x559   :  { %2457 = vmatpush.msra.mxu0 %v5588_v14 }
 0x55b   :  { %2458 = vmatpush.msra.mxu0 %v5602_v22 }
 0x55d   :  { %2459 = vmatpush.msra.mxu0 %v5614_v51 }
 0x596   :  { %v1970_v0 = vpop.f32.mrf.mxu0  ;;  %v1990_v25 = vpop.f32.mrf.mxu1 }
 0x597   :  { %v2033_v23 = vadd.f32 %v1970_v0, %v216_v53  ;;  %v2034_v41 = vadd.f32 %v1990_v25, %v257_v9  ;;  %v5616_v53 = vld [vmem:[#allocation9 + $0x68] sm:$0xff]  ;;  %v5622_v0 = vld [vmem:[#allocation9 + $0xb0] sm:$0xff]  ;;  %v5624_v25 = vld [vmem:[#allocation9 + $0x78] sm:$0xff] }
 0x598   :  { %6833 = vst [vmem:[#allocation19_spill] sm:$0xff] %v5616_v53  ;;  %2479 = vmatpush.msra.mxu1 %v5616_v53  ;;  %2497 = vmatpush.msra.mxu2 %v5622_v0  ;;  %v6845_v53 = vld [vmem:[#allocation36_spill] sm:$0xff] }
 0x599   :  { %v3739_v46 = vmul.f32 -1.442695, %v2033_v23  ;;  %v3740_v6 = vmul.f32 -1.442695, %v2034_v41  ;;  %6834 = vst [vmem:[#allocation20_spill] sm:$0xff] %v5622_v0  ;;  %v5630_v41 = vld [vmem:[#allocation9 + $0x40] sm:$0xff]  ;;  %2519 = vmatpush.msra.mxu3 %v5624_v25  ;;  %v298_v51 = vadd.f32 %v6845_v53, %v6775_v49 }
 0x59a   :  { %6835 = vst [vmem:[#allocation23_spill] sm:$0xff] %v5624_v25  ;;  %2460 = vmatpush.msra.mxu0 %v5630_v41  ;;  %v5674_v49 = vld [vmem:[#allocation9 + $0x30] sm:$0xff] }
 0x59b   :  { %3887 = vpow2.f32 %v3739_v46  ;;  %6836 = vst [vmem:[#allocation21_spill] sm:$0xff] %v5630_v41  ;;  %v5632_v46 = vld [vmem:[#allocation9 + $0x48] sm:$0xff]  ;;  %v5664_v41 = vld [vmem:[#allocation9 + $0x38] sm:$0xff] }
 0x59c   :  { %3889 = vpow2.f32 %v3740_v6  ;;  %6837 = vst [vmem:[#allocation22_spill] sm:$0xff] %v5632_v46  ;;  %v5637_v6 = vld [vmem:[#allocation9 + $0x90] sm:$0xff]  ;;  %2480 = vmatpush.msra.mxu1 %v5632_v46  ;;  %2461 = vmatpush.msra.mxu0 %v5642_v52 }
 0x59d   :  { %v2030_v29 = vpop.f32.mrf.mxu3  ;;  %6838 = vst [vmem:[#allocation24_spill] sm:$0xff] %v5637_v6  ;;  %2498 = vmatpush.msra.mxu2 %v5637_v6  ;;  %v5662_v46 = vld [vmem:[#allocation9 + $0x50] sm:$0xff] }
 0x59e   :  { %v2036_v55 = vadd.f32 %v2030_v29, %v339_v56  ;;  %v5644_v56 = vld [vmem:[#allocation9 + $0x28] sm:$0xff]  ;;  %v5646_v29 = vld [vmem:[#allocation9 + $0x58] sm:$0xff]  ;;  %6846 = vst [vmem:[#allocation40_spill] sm:$0xff] %v5662_v46 }
 0x59f   :  { %6840 = vst [vmem:[#allocation55_spill] sm:$0xff] %v5644_v56  ;;  %2520 = vmatpush.msra.mxu3 %v5646_v29  ;;  %2481 = vmatpush.msra.mxu1 %v5644_v56 }
 0x5a0   :  { %v3741_v16 = vmul.f32 -1.442695, %v2036_v55  ;;  %6841 = vst [vmem:[#allocation56_spill] sm:$0xff] %v5646_v29  ;;  %v5650_v55 = vld [vmem:[#allocation9 + $0x70] sm:$0xff] }
 0x5a1   :  { %v3888_v13 = vpop.eup %3887  ;;  %6842 = vst [vmem:[#allocation57_spill] sm:$0xff] %v5650_v55  ;;  %2499 = vmatpush.msra.mxu2 %v5650_v55  ;;  %2521 = vmatpush.msra.mxu3 %v5664_v41 }
 0x5a2   :  { %v3890_v8 = vpop.eup %3889  ;;  %v5618_v9 = vadd.f32 1.0, %v3888_v13  ;;  %3891 = vpow2.f32 %v3741_v16  ;;  %v2010_v16 = vpop.f32.mrf.mxu2  ;;  %v5654_v13 = vld [vmem:[#allocation9] sm:$0xff]  ;;  %6847 = vst [vmem:[#allocation41_spill] sm:$0xff] %v5664_v41  ;;  %v5681_v41 = vld [vmem:[#allocation9 + $0x10] sm:$0xff] }
 0x5a3   :  { %v5626_v23 = vadd.f32 1.0, %v3890_v8  ;;  %6843 = vst [vmem:[#allocation58_spill] sm:$0xff] %v5654_v13  ;;  %v5656_v8 = vld [vmem:[#allocation9 + $0x8] sm:$0xff]  ;;  %v2035_v15 = vadd.f32 %v2010_v16, %v298_v51  ;;  %2462 = vmatpush.msra.mxu0 %v5654_v13  ;;  %2500 = vmatpush.msra.mxu2 %v5662_v46 }
 0x5a4   :  { %3893 = vrcp.f32 %v5618_v9  ;;  %6844 = vst [vmem:[#allocation59_spill] sm:$0xff] %v5656_v8  ;;  %2482 = vmatpush.msra.mxu1 %v5656_v8  ;;  %2522 = vmatpush.msra.mxu3 %v5666_v61  ;;  %v2052_v8 = vand.u32 2147483648, %v5618_v9  ;;  %vm2046_vm6 = vweird.f32 %v5618_v9 }
 0x5a5   :  { %3895 = vrcp.f32 %v5626_v23  ;;  %6849 = vst [vmem:[#allocation31_spill] sm:$0xff] %v5674_v49  ;;  %2598 = vmatpush.msrb.mxu0 %v5462_v5  ;;  %2501 = vmatpush.msra.mxu2 %v5674_v49  ;;  %v2071_v61 = vand.u32 2147483648, %v5626_v23  ;;  %v2050_v5 = vand.u32 2147483647, %v5618_v9  ;;  %vm2065_vm7 = vweird.f32 %v5626_v23 }
 0x5a6   :  { %6850 = vst [vmem:[#allocation25_spill] sm:$0xff] %v5681_v41  ;;  %2618 = vmatpush.msrb.mxu1 %v5464_v58  ;;  %2658 = vmatpush.msrb.mxu3 %v5472_v7 }
 0x5a7   :  { %2599 = vmatpush.msrb.mxu0 %v5466_v38  ;;  %2502 = vmatpush.msra.mxu2 %v5681_v41  ;;  %vm2051_vm10 = vcmp.eq.f32.partialorder %v2050_v5, 8.507059e+37 }
 0x5a8   :  { %v3892_v25 = vpop.eup %3891  ;;  %2619 = vmatpush.msrb.mxu1 %v5470_v19  ;;  %2659 = vmatpush.msrb.mxu3 %v5479_v48 }
 0x5a9   :  { %v5668_v6 = vadd.f32 1.0, %v3892_v25  ;;  %2638 = vmatpush.msrb.mxu2 %v5498_v50  ;;  %2600 = vmatpush.msrb.mxu0 %v5475_v27 }
 0x5aa   :  { %v3894_v29 = vpop.eup %3893  ;;  %2620 = vmatpush.msrb.mxu1 %v5477_v37  ;;  %2660 = vmatpush.msrb.mxu3 %v5504_v34 }
 0x5ab   :  { %v3896_v53 = vpop.eup %3895  ;;  %v2042_v56 = vmul.f32 %v3894_v29, %v5618_v9  ;;  %3897 = vrcp.f32 %v5668_v6  ;;  %vm2047_vm4 = vweird.f32 %v3894_v29  ;;  %2639 = vmatpush.msrb.mxu2 %v5501_v4  ;;  %2601 = vmatpush.msrb.mxu0 %v5508_v18  ;;  %v2072_v9 = vor.u32 1.1754944e-38, %v2071_v61 }
 0x5ac   :  { %v2061_v25 = vmul.f32 %v3896_v53, %v5626_v23  ;;  %3899 = vtanh.f32 %v2035_v15  ;;  %vm2066_vm5 = vweird.f32 %v3896_v53  ;;  %vm2048_vm8 = vmor %vm2046_vm6, %vm2047_vm4  ;;  %2621 = vmatpush.msrb.mxu1 %v5510_v36  ;;  %2661 = vmatpush.msrb.mxu3 %v5520_v3  ;;  %vm2085_vm13 = vweird.f32 %v5668_v6 }
 0x5ad   :  { %v2043_v51 = vsub.f32 1.0, %v2042_v56  ;;  %vm2067_vm9 = vmor %vm2065_vm7, %vm2066_vm5  ;;  %2640 = vmatpush.msrb.mxu2 %v5506_v30  ;;  %2602 = vmatpush.msrb.mxu0 %v5513_v26 }
 0x5ae   :  { %v2062_v16 = vsub.f32 1.0, %v2061_v25  ;;  %v2069_v25 = vand.u32 2147483647, %v5626_v23  ;;  %2622 = vmatpush.msrb.mxu1 %v5518_v40  ;;  %2662 = vmatpush.msrb.mxu3 %v5528_v43 }
 0x5af   :  { %v2044_v13 = vmul.f32 %v3894_v29, %v2043_v51  ;;  %v2053_v51 = vor.u32 1.1754944e-38, %v2052_v8  ;;  %2641 = vmatpush.msrb.mxu2 %v5522_v42  ;;  %2603 = vmatpush.msrb.mxu0 %v5538_v31 }
 0x5b0   :  { %v2063_v56 = vmul.f32 %v3896_v53, %v2062_v16  ;;  %vm2070_vm11 = vcmp.eq.f32.partialorder %v2069_v25, 8.507059e+37  ;;  %2623 = vmatpush.msrb.mxu1 %v5540_v32  ;;  %2663 = vmatpush.msrb.mxu3 %v5542_v35  ;;  %v6851_v25 = vld [vmem:[#allocation17_spill] sm:$0xff] }
 0x5b1   :  { %v5697_v15 = vpop.eup %3897  ;;  %v2045_v19 = vadd.f32 %v3894_v29, %v2044_v13  ;;  %2642 = vmatpush.msrb.mxu2 %v5530_v47  ;;  %2604 = vmatpush.msrb.mxu0 %v5548_v33 }
 0x5b2   :  { %v2064_v16 = vadd.f32 %v3896_v53, %v2063_v56  ;;  %v2081_v48 = vmul.f32 %v5697_v15, %v5668_v6  ;;  %v3900_v23 = vpop.eup %3899  ;;  %vm2086_vm12 = vweird.f32 %v5697_v15  ;;  %2624 = vmatpush.msrb.mxu1 %v5550_v39  ;;  %2664 = vmatpush.msrb.mxu3 %v5553_v2 }
 0x5b3   :  { %v2049_v13 = vsel %vm2048_vm8, %v3894_v29, %v2045_v19  ;;  %2643 = vmatpush.msrb.mxu2 %v5546_v12  ;;  %2605 = vmatpush.msrb.mxu0 %v5560_v11  ;;  %vm2087_vm14 = vmor %vm2085_vm13, %vm2086_vm12 }
 0x5b4   :  { %v2054_v34 = vsel %vm2051_vm10, %v2053_v51, %v2049_v13  ;;  %v2068_v8 = vsel %vm2067_vm9, %v3896_v53, %v2064_v16  ;;  %v2082_v56 = vsub.f32 1.0, %v2081_v48  ;;  %2625 = vmatpush.msrb.mxu1 %v5562_v60  ;;  %2665 = vmatpush.msrb.mxu3 %v5572_v59  ;;  %v6853_v51 = vld [vmem:[#allocation24_spill] sm:$0xff]  ;;  %v6854_v16 = vld [vmem:[#allocation18_spill] sm:$0xff]  ;;  %v6856_v13 = vld [vmem:[#allocation23_spill] sm:$0xff] }
 0x5b5   :  { %v2073_v37 = vsel %vm2070_vm11, %v2072_v9, %v2068_v8  ;;  %v2096_v18 = vmul.f32 %v3900_v23, %v2054_v34  ;;  %2644 = vmatpush.msrb.mxu2 %v5558_v45  ;;  %2606 = vmatpush.msrb.mxu0 %v5568_v10  ;;  %v6855_v9 = vld [vmem:[#allocation19_spill] sm:$0xff]  ;;  %v6857_v23 = vld [vmem:[#allocation21_spill] sm:$0xff]  ;;  %v6858_v8 = vld [vmem:[#allocation22_spill] sm:$0xff] }
 0x5b6   :  { %v2095_v5 = vmul.f32 %v2073_v37, %v5447_v28  ;;  %v2083_v19 = vmul.f32 %v5697_v15, %v2082_v56  ;;  %v2091_v28 = vand.u32 2147483648, %v5668_v6  ;;  %v2089_v37 = vand.u32 2147483647, %v5668_v6  ;;  %2626 = vmatpush.msrb.mxu1 %v5570_v57  ;;  %2666 = vmatpush.msrb.mxu3 %v5579_v63  ;;  %v6859_v56 = vld [vmem:[#allocation56_spill] sm:$0xff] }
 0x5b7   :  { %2645 = vmatpush.msrb.mxu2 %v5592_v44  ;;  %2607 = vmatpush.msrb.mxu0 %v5575_v1 }
 0x5b8   :  { %v2097_v48 = vadd.f32 %v2096_v18, %v2095_v5  ;;  %v2084_v34 = vadd.f32 %v5697_v15, %v2083_v19  ;;  %v2092_v61 = vor.u32 1.1754944e-38, %v2091_v28  ;;  %vm2090_vm15 = vcmp.eq.f32.partialorder %v2089_v37, 8.507059e+37  ;;  %2627 = vmatpush.msrb.mxu1 %v5577_v62  ;;  %2667 = vmatpush.msrb.mxu3 %v5585_v24  ;;  %v6861_v19 = vld [vmem:[#allocation55_spill] sm:$0xff]  ;;  %v6865_v37 = vld [vmem:[#allocation42_spill] sm:$0xff] }
 0x5b9   :  { %2646 = vmatpush.msrb.mxu2 %v5598_v21  ;;  %2608 = vmatpush.msrb.mxu0 %v5588_v14  ;;  %v6860_v5 = vmov 0.0   ;;  %v6864_v28 = vld [vmem:[#allocation59_spill] sm:$0xff] }
 0x5ba   :  { %3901 = vtanh.f32 %v2097_v48  ;;  %v2088_v18 = vsel %vm2087_vm14, %v5697_v15, %v2084_v34  ;;  %2628 = vmatpush.msrb.mxu1 %v5590_v17  ;;  %2668 = vmatpush.msrb.mxu3 %v5596_v20  ;;  %v6852_v15 = vld [vmem:[#allocation37_spill] sm:$0xff]  ;;  %v6863_v34 = vld [vmem:[#allocation58_spill] sm:$0xff] }
 0x5bb   :  { %v2093_v29 = vsel %vm2090_vm15, %v2092_v61, %v2088_v18  ;;  %2647 = vmatpush.msrb.mxu2 %v5610_v54  ;;  %2609 = vmatpush.msrb.mxu0 %v5602_v22  ;;  %v6862_v48 = vld [vmem:[#allocation41_spill] sm:$0xff]  ;;  %v6866_v18 = vld [vmem:[#allocation43_spill] sm:$0xff]  ;;  %v6867_v61 = vld [vmem:[#allocation44_spill] sm:$0xff] }
 0x5bc   :  { %2629 = vmatpush.msrb.mxu1 %v6851_v25  ;;  %2669 = vmatpush.msrb.mxu3 %v6852_v15 }
 0x5bd   :  { %2648 = vmatpush.msrb.mxu2 %v5622_v0  ;;  %2610 = vmatpush.msrb.mxu0 %v6854_v16 }
 0x5be   :  { %2630 = vmatpush.msrb.mxu1 %v6855_v9  ;;  %2670 = vmatpush.msrb.mxu3 %v6856_v13 }
 0x5bf   :  { %2649 = vmatpush.msrb.mxu2 %v6853_v51  ;;  %2611 = vmatpush.msrb.mxu0 %v6857_v23 }
 0x5c0   :  { %v3902_v6 = vpop.eup %3901  ;;  %2631 = vmatpush.msrb.mxu1 %v6858_v8  ;;  %2671 = vmatpush.msrb.mxu3 %v6859_v56 }
 0x5c1   :  { %v2099_v53 = vmul.f32 %v3902_v6, %v2093_v29  ;;  %2650 = vmatpush.msrb.mxu2 %v5650_v55  ;;  %2612 = vmatpush.msrb.mxu0 %v5642_v52  ;;  %v6868_v6 = vld [vmem:[#allocation46_spill] sm:$0xff]  ;;  %v6869_v29 = vld [vmem:[#allocation45_spill] sm:$0xff] }
 0x5c2   :  { %2632 = vmatpush.msrb.mxu1 %v6861_v19  ;;  %2672 = vmatpush.msrb.mxu3 %v6862_v48 }
 0x5c3   :  { %2220 = vmatmul.f32.gmra.mxu0 %v2099_v53  ;;  %2261 = vmatmul.f32.gmra.mxu1 %v2099_v53 }
 0x5c4   :  { %2302 = vmatmul.f32.gmra.mxu2 %v2099_v53  ;;  %2343 = vmatmul.f32.gmra.mxu3 %v2099_v53  ;;  %v6870_v53 = vld [vmem:[#allocation47_spill] sm:$0xff] }
 0x5c5   :  { %2651 = vmatpush.msrb.mxu2 %v5662_v46  ;;  %2613 = vmatpush.msrb.mxu0 %v6863_v34 }
 0x5c6   :  { %2633 = vmatpush.msrb.mxu1 %v6864_v28  ;;  %2673 = vmatpush.msrb.mxu3 %v6865_v37 }
 0x5c7   :  { %2652 = vmatpush.msrb.mxu2 %v5674_v49 }
 0x5c9   :  { %2653 = vmatpush.msrb.mxu2 %v5681_v41 }
 0x5cb   :  { %2463 = vmatmul.f32.vlgmr.msra.gmra.mxu0 %v6860_v5  ;;  %2483 = vmatmul.f32.vlgmr.msra.gmra.mxu1 %v6860_v5 }
 0x5cc   :  { %2503 = vmatmul.f32.vlgmr.msra.gmra.mxu2 %v6860_v5  ;;  %2523 = vmatmul.f32.vlgmr.msra.gmra.mxu3 %v6860_v5  ;;  %v6871_v5 = vld [vmem:[#allocation48_spill] sm:$0xff] }
 0x5cd   :  { %2749 = vmatpush.msra.mxu0 %v6866_v18  ;;  %2769 = vmatpush.msra.mxu1 %v5464_v58 }
 0x5ce   :  { %2789 = vmatpush.msra.mxu2 %v5498_v50  ;;  %2809 = vmatpush.msra.mxu3 %v5472_v7 }
 0x5cf   :  { %2750 = vmatpush.msra.mxu0 %v5466_v38  ;;  %2770 = vmatpush.msra.mxu1 %v6867_v61 }
 0x5d0   :  { %2790 = vmatpush.msra.mxu2 %v5501_v4  ;;  %2810 = vmatpush.msra.mxu3 %v6868_v6 }
 0x5d1   :  { %2751 = vmatpush.msra.mxu0 %v5475_v27  ;;  %2771 = vmatpush.msra.mxu1 %v6869_v29 }
 0x5d2   :  { %2791 = vmatpush.msra.mxu2 %v5506_v30  ;;  %2811 = vmatpush.msra.mxu3 %v6870_v53 }
 0x5d3   :  { %2752 = vmatpush.msra.mxu0 %v6871_v5  ;;  %2772 = vmatpush.msra.mxu1 %v5510_v36 }
 0x5d4   :  { %2792 = vmatpush.msra.mxu2 %v5522_v42  ;;  %2812 = vmatpush.msra.mxu3 %v5520_v3 }
 0x5d5   :  { %2753 = vmatpush.msra.mxu0 %v5513_v26  ;;  %2773 = vmatpush.msra.mxu1 %v5518_v40 }
 0x5d6   :  { %2793 = vmatpush.msra.mxu2 %v5530_v47  ;;  %2813 = vmatpush.msra.mxu3 %v5528_v43 }
 0x5d7   :  { %2754 = vmatpush.msra.mxu0 %v5538_v31  ;;  %2774 = vmatpush.msra.mxu1 %v5540_v32 }
 0x5d8   :  { %2794 = vmatpush.msra.mxu2 %v5546_v12  ;;  %2814 = vmatpush.msra.mxu3 %v5542_v35 }
 0x5d9   :  { %2755 = vmatpush.msra.mxu0 %v5548_v33  ;;  %2775 = vmatpush.msra.mxu1 %v5550_v39 }
 0x5da   :  { %2795 = vmatpush.msra.mxu2 %v5558_v45  ;;  %2815 = vmatpush.msra.mxu3 %v5553_v2 }
 0x5db   :  { %2756 = vmatpush.msra.mxu0 %v5560_v11  ;;  %2776 = vmatpush.msra.mxu1 %v5562_v60 }
 0x5dc   :  { %2796 = vmatpush.msra.mxu2 %v5592_v44  ;;  %2816 = vmatpush.msra.mxu3 %v5572_v59 }
 0x5dd   :  { %2757 = vmatpush.msra.mxu0 %v5568_v10  ;;  %2777 = vmatpush.msra.mxu1 %v5570_v57 }
 0x5de   :  { %2797 = vmatpush.msra.mxu2 %v5598_v21  ;;  %2817 = vmatpush.msra.mxu3 %v5579_v63 }
 0x5df   :  { %2758 = vmatpush.msra.mxu0 %v5575_v1  ;;  %2778 = vmatpush.msra.mxu1 %v5577_v62 }
 0x5e0   :  { %2798 = vmatpush.msra.mxu2 %v5610_v54  ;;  %2818 = vmatpush.msra.mxu3 %v5585_v24 }
 0x5e1   :  { %2759 = vmatpush.msra.mxu0 %v5588_v14  ;;  %2779 = vmatpush.msra.mxu1 %v5590_v17 }
 0x5e2   :  { %2799 = vmatpush.msra.mxu2 %v5622_v0  ;;  %2819 = vmatpush.msra.mxu3 %v5596_v20 }
 0x5e3   :  { %2760 = vmatpush.msra.mxu0 %v5602_v22  ;;  %2780 = vmatpush.msra.mxu1 %v6851_v25 }
 0x5e4   :  { %2800 = vmatpush.msra.mxu2 %v6853_v51  ;;  %2820 = vmatpush.msra.mxu3 %v6852_v15 }
 0x5e5   :  { %2761 = vmatpush.msra.mxu0 %v6854_v16  ;;  %2781 = vmatpush.msra.mxu1 %v6855_v9 }
 0x5e6   :  { %2801 = vmatpush.msra.mxu2 %v5650_v55  ;;  %2821 = vmatpush.msra.mxu3 %v6856_v13 }
 0x5e7   :  { %2762 = vmatpush.msra.mxu0 %v6857_v23  ;;  %2782 = vmatpush.msra.mxu1 %v6858_v8  ;;  %v2200_v8 = vpop.f32.mrf.mxu0  ;;  %v2323_v23 = vpop.f32.mrf.mxu3 }
 0x5e8   :  { %2802 = vmatpush.msra.mxu2 %v5662_v46  ;;  %2822 = vmatpush.msra.mxu3 %v6859_v56  ;;  %v2241_v46 = vpop.f32.mrf.mxu1 }
 0x5e9   :  { %2763 = vmatpush.msra.mxu0 %v5642_v52  ;;  %2783 = vmatpush.msra.mxu1 %v6861_v19  ;;  %v2282_v19 = vpop.f32.mrf.mxu2 }
 0x5ea   :  { %2803 = vmatpush.msra.mxu2 %v5674_v49  ;;  %2823 = vmatpush.msra.mxu3 %v6862_v48 }
 0x5eb   :  { %2764 = vmatpush.msra.mxu0 %v6863_v34  ;;  %2784 = vmatpush.msra.mxu1 %v6864_v28 }
 0x5ec   :  { %2804 = vmatpush.msra.mxu2 %v5681_v41  ;;  %2824 = vmatpush.msra.mxu3 %v6865_v37 }
 0x5ef   :  { %v5837_v56 = vpop.f32.mrf.mxu0  ;;  %v5841_v13 = vpop.f32.mrf.mxu3 }
 0x5f0   :  { %6872 = vst [vmem:[#allocation32_spill] sm:$0xff] %v5837_v56  ;;  %v5839_v52 = vpop.f32.mrf.mxu1 }
 0x5f1   :  { %6873 = vst [vmem:[#allocation26_spill] sm:$0xff] %v5839_v52  ;;  %v5847_v34 = vpop.f32.mrf.mxu2 }
 0x5f2   :  { %6874 = vst [vmem:[#allocation35_spill] sm:$0xff] %v5841_v13 }
 0x5f3   :  { %6877 = vst [vmem:[#allocation38_spill] sm:$0xff] %v5847_v34 }
 0x5f7   :  { %v5843_v49 = vpop.f32.mrf.mxu0  ;;  %v5849_v28 = vpop.f32.mrf.mxu3 }
 0x5f8   :  { %6875 = vst [vmem:[#allocation28_spill] sm:$0xff] %v5843_v49  ;;  %v5845_v48 = vpop.f32.mrf.mxu1 }
 0x5f9   :  { %6876 = vst [vmem:[#allocation33_spill] sm:$0xff] %v5845_v48  ;;  %v5855_v55 = vpop.f32.mrf.mxu2 }
 0x5fa   :  { %6878 = vst [vmem:[#allocation39_spill] sm:$0xff] %v5849_v28 }
 0x5fb   :  { %6881 = vst [vmem:[#allocation54_spill] sm:$0xff] %v5855_v55 }
 0x5ff   :  { %v5851_v41 = vpop.f32.mrf.mxu0  ;;  %v5857_v56 = vpop.f32.mrf.mxu3 }
 0x600   :  { %6879 = vst [vmem:[#allocation52_spill] sm:$0xff] %v5851_v41  ;;  %v5853_v37 = vpop.f32.mrf.mxu1 }
 0x601   :  { %6880 = vst [vmem:[#allocation53_spill] sm:$0xff] %v5853_v37  ;;  %v5863_v13 = vpop.f32.mrf.mxu2 }
 0x602   :  { %6882 = vst [vmem:[#allocation29_spill] sm:$0xff] %v5857_v56 }
 0x603   :  { %6885 = vst [vmem:[#allocation36_spill] sm:$0xff] %v5863_v13 }
 0x607   :  { %v5859_v52 = vpop.f32.mrf.mxu0  ;;  %v5865_v49 = vpop.f32.mrf.mxu3 }
 0x608   :  { %6883 = vst [vmem:[#allocation30_spill] sm:$0xff] %v5859_v52  ;;  %v5861_v9 = vpop.f32.mrf.mxu1 }
 0x609   :  { %6884 = vst [vmem:[#allocation34_spill] sm:$0xff] %v5861_v9  ;;  %v5871_v28 = vpop.f32.mrf.mxu2 }
 0x60a   :  { %6886 = vst [vmem:[#allocation43_spill] sm:$0xff] %v5865_v49  ;;  %v2173_v49 = vld [vmem:[%s6500_s6] sm:$0xf] }
 0x60b   :  { %6889 = vst [vmem:[#allocation45_spill] sm:$0xff] %v5871_v28  ;;  %v5892_v28 = vperm.slane %v2173_v49, 1  ;;  %v5900_v51 = vperm.slane %v2173_v49, 3 }
 0x60d   :  { %6898 = vst [vmem:[#allocation66_spill] sm:$0xff] %v5892_v28  ;;  %v2324_v25 = vadd.f32 %v2323_v23, %v5900_v51 }
 0x60e   :  { %6901 = vst [vmem:[#allocation69_spill] sm:$0xff] %v5900_v51 }
 0x60f   :  { %v5867_v48 = vpop.f32.mrf.mxu0  ;;  %v5873_v41 = vpop.f32.mrf.mxu3 }
 0x610   :  { %6887 = vst [vmem:[#allocation44_spill] sm:$0xff] %v5867_v48  ;;  %v5869_v34 = vpop.f32.mrf.mxu1 }
 0x611   :  { %6888 = vst [vmem:[#allocation46_spill] sm:$0xff] %v5869_v34  ;;  %v5879_v56 = vpop.f32.mrf.mxu2  ;;  %v5890_v34 = vperm.slane %v2173_v49, 0 }
 0x612   :  { %6890 = vst [vmem:[#allocation47_spill] sm:$0xff] %v5873_v41 }
 0x613   :  { %6893 = vst [vmem:[#allocation61_spill] sm:$0xff] %v5879_v56 }
 0x614   :  { %6897 = vst [vmem:[#allocation65_spill] sm:$0xff] %v5890_v34 }
 0x617   :  { %v5875_v37 = vpop.f32.mrf.mxu0  ;;  %v5881_v52 = vpop.f32.mrf.mxu3 }
 0x618   :  { %6891 = vst [vmem:[#allocation48_spill] sm:$0xff] %v5875_v37  ;;  %v5877_v55 = vpop.f32.mrf.mxu1  ;;  %v2201_v37 = vadd.f32 %v2200_v8, %v5890_v34 }
 0x619   :  { %6892 = vst [vmem:[#allocation60_spill] sm:$0xff] %v5877_v55  ;;  %v2242_v55 = vadd.f32 %v2241_v46, %v5892_v28  ;;  %v5896_v41 = vpop.f32.mrf.mxu2 }
 0x61a   :  { %6894 = vst [vmem:[#allocation62_spill] sm:$0xff] %v5881_v52 }
 0x61b   :  { %6899 = vst [vmem:[#allocation67_spill] sm:$0xff] %v5896_v41 }
 0x640   :  { %v5886_v9 = vpop.f32.mrf.mxu0  ;;  %v5888_v48 = vpop.f32.mrf.mxu1 }
 0x641   :  { %6895 = vst [vmem:[#allocation63_spill] sm:$0xff] %v5886_v9 }
 0x642   :  { %6896 = vst [vmem:[#allocation64_spill] sm:$0xff] %v5888_v48 }
 0x647   :  { %v5898_v56 = vpop.f32.mrf.mxu3  ;;  %v5903_v22 = vpop.f32.mrf.mxu2 }
 0x648   :  { %6900 = vst [vmem:[#allocation68_spill] sm:$0xff] %v5898_v56  ;;  %v2464_v52 = vpop.f32.mrf.mxu0  ;;  %v2484_v13 = vpop.f32.mrf.mxu1 }
 0x649   :  { %v2527_v16 = vadd.f32 %v2464_v52, %v2201_v37  ;;  %v2528_v15 = vadd.f32 %v2484_v13, %v2242_v55  ;;  %6902 = vst [vmem:[#allocation70_spill] sm:$0xff] %v5903_v22  ;;  %v5905_v52 = vperm.slane %v2173_v49, 2 }
 0x64b   :  { %v3742_v9 = vmul.f32 -1.442695, %v2527_v16  ;;  %v3743_v48 = vmul.f32 -1.442695, %v2528_v15  ;;  %6903 = vst [vmem:[#allocation71_spill] sm:$0xff] %v5905_v52  ;;  %v2283_v16 = vadd.f32 %v2282_v19, %v5905_v52 }
 0x64d   :  { %3903 = vpow2.f32 %v3742_v9 }
 0x64e   :  { %3905 = vpow2.f32 %v3743_v48 }
 0x64f   :  { %v2524_v8 = vpop.f32.mrf.mxu3  ;;  %v2504_v55 = vpop.f32.mrf.mxu2 }
 0x650   :  { %v2530_v46 = vadd.f32 %v2524_v8, %v2324_v25  ;;  %v2529_v23 = vadd.f32 %v2504_v55, %v2283_v16 }
 0x652   :  { %v3744_v28 = vmul.f32 -1.442695, %v2530_v46 }
 0x653   :  { %v3904_v41 = vpop.eup %3903 }
 0x654   :  { %v3906_v34 = vpop.eup %3905  ;;  %v2534_v56 = vadd.f32 1.0, %v3904_v41  ;;  %3907 = vpow2.f32 %v3744_v28 }
 0x655   :  { %v2553_v20 = vadd.f32 1.0, %v3906_v34 }
 0x656   :  { %3909 = vrcp.f32 %v2534_v56  ;;  %v2546_v41 = vand.u32 2147483648, %v2534_v56  ;;  %v2544_v28 = vand.u32 2147483647, %v2534_v56  ;;  %vm2540_vm2 = vweird.f32 %v2534_v56 }
 0x657   :  { %3911 = vrcp.f32 %v2553_v20  ;;  %v2565_v34 = vand.u32 2147483648, %v2553_v20  ;;  %v2563_v51 = vand.u32 2147483647, %v2553_v20  ;;  %vm2559_vm3 = vweird.f32 %v2553_v20 }
 0x658   :  { %v2547_v55 = vor.u32 1.1754944e-38, %v2546_v41  ;;  %vm2545_vm5 = vcmp.eq.f32.partialorder %v2544_v28, 8.507059e+37 }
 0x659   :  { %v2566_v52 = vor.u32 1.1754944e-38, %v2565_v34  ;;  %vm2564_vm7 = vcmp.eq.f32.partialorder %v2563_v51, 8.507059e+37 }
 0x65a   :  { %v3908_v15 = vpop.eup %3907 }
 0x65b   :  { %v2573_v9 = vadd.f32 1.0, %v3908_v15 }
 0x65c   :  { %v3910_v13 = vpop.eup %3909 }
 0x65d   :  { %v3912_v48 = vpop.eup %3911  ;;  %v2536_v37 = vmul.f32 %v3910_v13, %v2534_v56  ;;  %3913 = vrcp.f32 %v2573_v9  ;;  %vm2541_vm0 = vweird.f32 %v3910_v13  ;;  %vm2579_vm9 = vweird.f32 %v2573_v9 }
 0x65e   :  { %v2555_v25 = vmul.f32 %v3912_v48, %v2553_v20  ;;  %3915 = vtanh.f32 %v2529_v23  ;;  %vm2560_vm1 = vweird.f32 %v3912_v48  ;;  %vm2542_vm4 = vmor %vm2540_vm2, %vm2541_vm0  ;;  %v2583_v56 = vand.u32 2147483647, %v2573_v9 }
 0x65f   :  { %v2537_v8 = vsub.f32 1.0, %v2536_v37  ;;  %vm2561_vm6 = vmor %vm2559_vm3, %vm2560_vm1 }
 0x660   :  { %v2556_v46 = vsub.f32 1.0, %v2555_v25  ;;  %vm2584_vm11 = vcmp.eq.f32.partialorder %v2583_v56, 8.507059e+37 }
 0x661   :  { %v2538_v49 = vmul.f32 %v3910_v13, %v2537_v8 }
 0x662   :  { %v2557_v22 = vmul.f32 %v3912_v48, %v2556_v46 }
 0x663   :  { %v3914_v0 = vpop.eup %3913  ;;  %v2539_v19 = vadd.f32 %v3910_v13, %v2538_v49 }
 0x664   :  { %v2558_v15 = vadd.f32 %v3912_v48, %v2557_v22  ;;  %v2575_v16 = vmul.f32 %v3914_v0, %v2573_v9  ;;  %v3916_v23 = vpop.eup %3915  ;;  %vm2580_vm8 = vweird.f32 %v3914_v0  ;;  %v2585_v22 = vand.u32 2147483648, %v2573_v9 }
 0x665   :  { %v2543_v37 = vsel %vm2542_vm4, %v3910_v13, %v2539_v19  ;;  %vm2581_vm10 = vmor %vm2579_vm9, %vm2580_vm8 }
 0x666   :  { %v2548_v25 = vsel %vm2545_vm5, %v2547_v55, %v2543_v37  ;;  %v2562_v8 = vsel %vm2561_vm6, %v3912_v48, %v2558_v15  ;;  %v2576_v17 = vsub.f32 1.0, %v2575_v16  ;;  %v2586_v41 = vor.u32 1.1754944e-38, %v2585_v22  ;;  %v6936_v37 = vld [vmem:[#allocation71_spill] sm:$0xff] }
 0x667   :  { %v2567_v46 = vsel %vm2564_vm7, %v2566_v52, %v2562_v8  ;;  %v2590_v14 = vmul.f32 %v3916_v23, %v2548_v25  ;;  %v6937_v23 = vld [vmem:[#allocation38_spill] sm:$0xff] }
 0x668   :  { %v2589_v24 = vmul.f32 0.0, %v2567_v46  ;;  %v2577_v54 = vmul.f32 %v3914_v0, %v2576_v17  ;;  %v2286_v25 = vadd.f32 %v6937_v23, %v6936_v37  ;;  %v6044_v23 = vld [vmem:[#allocation9 + $0x178] sm:$0xff] }
 0x66a   :  { %v5908_v49 = vadd.f32 %v2590_v14, %v2589_v24  ;;  %v2578_v20 = vadd.f32 %v3914_v0, %v2577_v54  ;;  %v6933_v24 = vld [vmem:[#allocation26_spill] sm:$0xff] }
 0x66c   :  { %3917 = vtanh.f32 %v5908_v49  ;;  %v2582_v13 = vsel %vm2581_vm10, %v3914_v0, %v2578_v20 }
 0x66d   :  { %v2587_v51 = vsel %vm2584_vm11, %v2586_v41, %v2582_v13 }
 0x672   :  { %v3918_v48 = vpop.eup %3917 }
 0x673   :  { %v2593_v34 = vmul.f32 %v3918_v48, %v2587_v51 }
 0x675   :  { %2614 = vmatmul.f32.vlgmr.msrb.gmra.mxu0 %v2593_v34  ;;  %2634 = vmatmul.f32.vlgmr.msrb.gmra.mxu1 %v2593_v34 }
 0x676   :  { %2654 = vmatmul.f32.vlgmr.msrb.gmra.mxu2 %v2593_v34  ;;  %2674 = vmatmul.f32.vlgmr.msrb.gmra.mxu3 %v2593_v34 }
 0x677   :  { %2900 = vmatpush.msrb.mxu0 %v6866_v18  ;;  %2920 = vmatpush.msrb.mxu1 %v5464_v58  ;;  %v6904_v58 = vld [vmem:[#allocation16_spill] sm:$0xff] }
 0x678   :  { %2940 = vmatpush.msrb.mxu2 %v5498_v50  ;;  %2960 = vmatpush.msrb.mxu3 %v5472_v7  ;;  %v6906_v7 = vld [vmem:[#allocation50_spill] sm:$0xff]  ;;  %v6908_v50 = vld [vmem:[#allocation20_spill] sm:$0xff] }
 0x679   :  { %2901 = vmatpush.msrb.mxu0 %v5466_v38  ;;  %2921 = vmatpush.msrb.mxu1 %v6867_v61  ;;  %v6905_v38 = vld [vmem:[#allocation49_spill] sm:$0xff] }
 0x67a   :  { %2941 = vmatpush.msrb.mxu2 %v5501_v4  ;;  %2961 = vmatpush.msrb.mxu3 %v6868_v6  ;;  %v6909_v4 = vld [vmem:[#allocation14_spill] sm:$0xff]  ;;  %v6934_v61 = vld [vmem:[#allocation69_spill] sm:$0xff]  ;;  %v6935_v6 = vld [vmem:[#allocation35_spill] sm:$0xff] }
 0x67b   :  { %2902 = vmatpush.msrb.mxu0 %v5475_v27  ;;  %2922 = vmatpush.msrb.mxu1 %v6869_v29  ;;  %v6907_v27 = vld [vmem:[#allocation51_spill] sm:$0xff]  ;;  %v2327_v29 = vadd.f32 %v6935_v6, %v6934_v61  ;;  %v6011_v6 = vld [vmem:[#allocation9 + $0x1a0] sm:$0xff] }
 0x67c   :  { %2942 = vmatpush.msrb.mxu2 %v5506_v30  ;;  %2962 = vmatpush.msrb.mxu3 %v6870_v53  ;;  %v6910_v30 = vld [vmem:[#allocation15_spill] sm:$0xff] }
 0x67d   :  { %2903 = vmatpush.msrb.mxu0 %v6871_v5  ;;  %2923 = vmatpush.msrb.mxu1 %v5510_v36  ;;  %v6911_v36 = vld [vmem:[#allocation17_spill] sm:$0xff] }
 0x67e   :  { %2943 = vmatpush.msrb.mxu2 %v5522_v42  ;;  %2963 = vmatpush.msrb.mxu3 %v5520_v3  ;;  %v6914_v3 = vld [vmem:[#allocation18_spill] sm:$0xff]  ;;  %v6915_v42 = vld [vmem:[#allocation19_spill] sm:$0xff] }
 0x67f   :  { %2904 = vmatpush.msrb.mxu0 %v5513_v26  ;;  %2924 = vmatpush.msrb.mxu1 %v5518_v40  ;;  %v6912_v26 = vld [vmem:[#allocation24_spill] sm:$0xff]  ;;  %v6913_v40 = vld [vmem:[#allocation37_spill] sm:$0xff] }
 0x680   :  { %2944 = vmatpush.msrb.mxu2 %v5530_v47  ;;  %2964 = vmatpush.msrb.mxu3 %v5528_v43  ;;  %v6916_v43 = vld [vmem:[#allocation57_spill] sm:$0xff]  ;;  %v6917_v47 = vld [vmem:[#allocation23_spill] sm:$0xff] }
 0x681   :  { %2905 = vmatpush.msrb.mxu0 %v5538_v31  ;;  %2925 = vmatpush.msrb.mxu1 %v5540_v32  ;;  %v6918_v31 = vld [vmem:[#allocation21_spill] sm:$0xff]  ;;  %v6919_v32 = vld [vmem:[#allocation22_spill] sm:$0xff] }
 0x682   :  { %2945 = vmatpush.msrb.mxu2 %v5546_v12  ;;  %2965 = vmatpush.msrb.mxu3 %v5542_v35  ;;  %v6920_v35 = vld [vmem:[#allocation40_spill] sm:$0xff] }
 0x683   :  { %2906 = vmatpush.msrb.mxu0 %v5548_v33  ;;  %2926 = vmatpush.msrb.mxu1 %v5550_v39  ;;  %v6921_v12 = vld [vmem:[#allocation56_spill] sm:$0xff]  ;;  %v6922_v33 = vld [vmem:[#allocation27_spill] sm:$0xff] }
 0x684   :  { %2946 = vmatpush.msrb.mxu2 %v5558_v45  ;;  %2966 = vmatpush.msrb.mxu3 %v5553_v2  ;;  %v6923_v39 = vld [vmem:[#allocation55_spill] sm:$0xff]  ;;  %v6925_v45 = vld [vmem:[#allocation41_spill] sm:$0xff] }
 0x685   :  { %2907 = vmatpush.msrb.mxu0 %v5560_v11  ;;  %2927 = vmatpush.msrb.mxu1 %v5562_v60  ;;  %v6924_v2 = vld [vmem:[#allocation31_spill] sm:$0xff]  ;;  %v6926_v11 = vld [vmem:[#allocation58_spill] sm:$0xff] }
 0x686   :  { %2947 = vmatpush.msrb.mxu2 %v5592_v44  ;;  %2967 = vmatpush.msrb.mxu3 %v5572_v59  ;;  %v6927_v60 = vld [vmem:[#allocation59_spill] sm:$0xff]  ;;  %v6930_v59 = vld [vmem:[#allocation65_spill] sm:$0xff] }
 0x687   :  { %2908 = vmatpush.msrb.mxu0 %v5568_v10  ;;  %2928 = vmatpush.msrb.mxu1 %v5570_v57  ;;  %v6928_v10 = vld [vmem:[#allocation25_spill] sm:$0xff]  ;;  %v6929_v57 = vld [vmem:[#allocation42_spill] sm:$0xff] }
 0x688   :  { %2948 = vmatpush.msrb.mxu2 %v5598_v21  ;;  %2968 = vmatpush.msrb.mxu3 %v5579_v63  ;;  %v6932_v63 = vld [vmem:[#allocation66_spill] sm:$0xff] }
 0x689   :  { %2909 = vmatpush.msrb.mxu0 %v5575_v1  ;;  %2929 = vmatpush.msrb.mxu1 %v5577_v62  ;;  %v6931_v1 = vld [vmem:[#allocation32_spill] sm:$0xff]  ;;  %v2245_v14 = vadd.f32 %v6933_v24, %v6932_v63 }
 0x68a   :  { %2949 = vmatpush.msrb.mxu2 %v6904_v58  ;;  %2969 = vmatpush.msrb.mxu3 %v6905_v38  ;;  %v2204_v62 = vadd.f32 %v6931_v1, %v6930_v59 }
 0x68b   :  { %2910 = vmatpush.msrb.mxu0 %v6906_v7  ;;  %2930 = vmatpush.msrb.mxu1 %v6907_v27 }
 0x68c   :  { %2950 = vmatpush.msrb.mxu2 %v6908_v50  ;;  %2970 = vmatpush.msrb.mxu3 %v6909_v4 }
 0x68d   :  { %2911 = vmatpush.msrb.mxu0 %v6910_v30  ;;  %2931 = vmatpush.msrb.mxu1 %v6911_v36 }
 0x68e   :  { %2951 = vmatpush.msrb.mxu2 %v6912_v26  ;;  %2971 = vmatpush.msrb.mxu3 %v6913_v40 }
 0x68f   :  { %2912 = vmatpush.msrb.mxu0 %v6914_v3  ;;  %2932 = vmatpush.msrb.mxu1 %v6915_v42 }
 0x690   :  { %2952 = vmatpush.msrb.mxu2 %v6916_v43  ;;  %2972 = vmatpush.msrb.mxu3 %v6917_v47 }
 0x691   :  { %2913 = vmatpush.msrb.mxu0 %v6918_v31  ;;  %2933 = vmatpush.msrb.mxu1 %v6919_v32 }
 0x692   :  { %2953 = vmatpush.msrb.mxu2 %v6920_v35  ;;  %2973 = vmatpush.msrb.mxu3 %v6921_v12 }
 0x693   :  { %2914 = vmatpush.msrb.mxu0 %v6922_v33  ;;  %2934 = vmatpush.msrb.mxu1 %v6923_v39 }
 0x694   :  { %2954 = vmatpush.msrb.mxu2 %v6924_v2  ;;  %2974 = vmatpush.msrb.mxu3 %v6925_v45 }
 0x695   :  { %2915 = vmatpush.msrb.mxu0 %v6926_v11  ;;  %2935 = vmatpush.msrb.mxu1 %v6927_v60 }
 0x696   :  { %2955 = vmatpush.msrb.mxu2 %v6928_v10  ;;  %2975 = vmatpush.msrb.mxu3 %v6929_v57 }
 0x6f2   :  { %v2615_v17 = vpop.f32.mrf.mxu0  ;;  %v2635_v44 = vpop.f32.mrf.mxu1 }
 0x6f3   :  { %v2678_v21 = vadd.f32 %v2615_v17, %v2204_v62  ;;  %v2679_v54 = vadd.f32 %v2635_v44, %v2245_v14  ;;  %v5990_v14 = vld [vmem:[#allocation9 + $0x1e8] sm:$0xff]  ;;  %v5993_v17 = vld [vmem:[#allocation9 + $0x1f0] sm:$0xff]  ;;  %v5996_v44 = vld [vmem:[#allocation9 + $0x1f8] sm:$0xff] }
 0x6f5   :  { %v3745_v0 = vmul.f32 -1.442695, %v2678_v21  ;;  %v3746_v18 = vmul.f32 -1.442695, %v2679_v54  ;;  %v5999_v21 = vld [vmem:[#allocation9 + $0x1c0] sm:$0xff]  ;;  %v6002_v54 = vld [vmem:[#allocation9 + $0x1c8] sm:$0xff] }
 0x6f7   :  { %3919 = vpow2.f32 %v3745_v0  ;;  %v6005_v0 = vld [vmem:[#allocation9 + $0x1d0] sm:$0xff] }
 0x6f8   :  { %3921 = vpow2.f32 %v3746_v18  ;;  %v6008_v18 = vld [vmem:[#allocation9 + $0x1d8] sm:$0xff] }
 0x6f9   :  { %v2675_v53 = vpop.f32.mrf.mxu3  ;;  %v2655_v15 = vpop.f32.mrf.mxu2 }
 0x6fa   :  { %v2681_v5 = vadd.f32 %v2675_v53, %v2327_v29  ;;  %v2680_v20 = vadd.f32 %v2655_v15, %v2286_v25  ;;  %v6014_v29 = vld [vmem:[#allocation9 + $0x1a8] sm:$0xff]  ;;  %v6017_v53 = vld [vmem:[#allocation9 + $0x1b0] sm:$0xff]  ;;  %v6047_v25 = vld [vmem:[#allocation9 + $0x140] sm:$0xff] }
 0x6fb   :  { %v6038_v15 = vld [vmem:[#allocation9 + $0x168] sm:$0xff] }
 0x6fc   :  { %v3747_v52 = vmul.f32 -1.442695, %v2681_v5  ;;  %v6020_v5 = vld [vmem:[#allocation9 + $0x1b8] sm:$0xff] }
 0x6fd   :  { %v3920_v9 = vpop.eup %3919 }
 0x6fe   :  { %v3922_v28 = vpop.eup %3921  ;;  %v2685_v19 = vadd.f32 1.0, %v3920_v9  ;;  %3923 = vpow2.f32 %v3747_v52  ;;  %v6023_v52 = vld [vmem:[#allocation9 + $0x180] sm:$0xff]  ;;  %v6026_v9 = vld [vmem:[#allocation9 + $0x188] sm:$0xff] }
 0x6ff   :  { %v2704_v55 = vadd.f32 1.0, %v3922_v28  ;;  %v6029_v28 = vld [vmem:[#allocation9 + $0x190] sm:$0xff] }
 0x700   :  { %3925 = vrcp.f32 %v2685_v19  ;;  %v2697_v51 = vand.u32 2147483648, %v2685_v19  ;;  %v2695_v38 = vand.u32 2147483647, %v2685_v19  ;;  %vm2691_vm14 = vweird.f32 %v2685_v19 }
 0x701   :  { %3927 = vrcp.f32 %v2704_v55  ;;  %v2716_v34 = vand.u32 2147483648, %v2704_v55  ;;  %v2714_v27 = vand.u32 2147483647, %v2704_v55  ;;  %vm2710_vm15 = vweird.f32 %v2704_v55 }
 0x702   :  { %v2698_v30 = vor.u32 1.1754944e-38, %v2697_v51  ;;  %vm2696_vm2 = vcmp.eq.f32.partialorder %v2695_v38, 8.507059e+37  ;;  %v6074_v51 = vld [vmem:[#allocation9 + $0x108] sm:$0xff]  ;;  %v6083_v38 = vld [vmem:[#allocation9 + $0xe0] sm:$0xff] }
 0x703   :  { %v2717_v40 = vor.u32 1.1754944e-38, %v2716_v34  ;;  %vm2715_vm3 = vcmp.eq.f32.partialorder %v2714_v27, 8.507059e+37  ;;  %v6077_v34 = vld [vmem:[#allocation9 + $0x110] sm:$0xff] }
 0x704   :  { %v3924_v16 = vpop.eup %3923  ;;  %v6089_v27 = vld [vmem:[#allocation9 + $0xf0] sm:$0xff] }
 0x705   :  { %v2724_v8 = vadd.f32 1.0, %v3924_v16  ;;  %v6041_v16 = vld [vmem:[#allocation9 + $0x170] sm:$0xff] }
 0x706   :  { %v3926_v46 = vpop.eup %3925 }
 0x707   :  { %v3928_v22 = vpop.eup %3927  ;;  %v2687_v56 = vmul.f32 %v3926_v46, %v2685_v19  ;;  %3929 = vrcp.f32 %v2724_v8  ;;  %vm2692_vm12 = vweird.f32 %v3926_v46  ;;  %v2736_v45 = vand.u32 2147483648, %v2724_v8  ;;  %v6032_v19 = vld [vmem:[#allocation9 + $0x198] sm:$0xff] }
 0x708   :  { %v2706_v13 = vmul.f32 %v3928_v22, %v2704_v55  ;;  %3931 = vtanh.f32 %v2680_v20  ;;  %vm2711_vm13 = vweird.f32 %v3928_v22  ;;  %vm2693_vm0 = vmor %vm2691_vm14, %vm2692_vm12  ;;  %vm2730_vm5 = vweird.f32 %v2724_v8  ;;  %v6035_v55 = vld [vmem:[#allocation9 + $0x160] sm:$0xff]  ;;  %v6056_v20 = vld [vmem:[#allocation9 + $0x158] sm:$0xff] }
 0x709   :  { %v2688_v41 = vsub.f32 1.0, %v2687_v56  ;;  %vm2712_vm1 = vmor %vm2710_vm15, %vm2711_vm13  ;;  %v2734_v11 = vand.u32 2147483647, %v2724_v8  ;;  %v2737_v57 = vor.u32 1.1754944e-38, %v2736_v45  ;;  %v6062_v56 = vld [vmem:[#allocation9 + $0x128] sm:$0xff]  ;;  %v6140_v45 = vld [vmem:[#allocation9 + $0x78] sm:$0xff] }
 0x70a   :  { %v2707_v48 = vsub.f32 1.0, %v2706_v13  ;;  %v6065_v13 = vld [vmem:[#allocation9 + $0x130] sm:$0xff]  ;;  %6951 = vst [vmem:[#allocation23_spill] sm:$0xff] %v6140_v45 }
 0x70b   :  { %v2689_v58 = vmul.f32 %v3926_v46, %v2688_v41  ;;  %vm2735_vm7 = vcmp.eq.f32.partialorder %v2734_v11, 8.507059e+37  ;;  %v6068_v41 = vld [vmem:[#allocation9 + $0x138] sm:$0xff]  ;;  %v6143_v11 = vld [vmem:[#allocation9 + $0x40] sm:$0xff] }
 0x70c   :  { %v2708_v7 = vmul.f32 %v3928_v22, %v2707_v48  ;;  %v6071_v48 = vld [vmem:[#allocation9 + $0x100] sm:$0xff]  ;;  %6952 = vst [vmem:[#allocation21_spill] sm:$0xff] %v6143_v11 }
 0x70d   :  { %v3930_v50 = vpop.eup %3929  ;;  %v2690_v4 = vadd.f32 %v3926_v46, %v2689_v58  ;;  %v6080_v58 = vld [vmem:[#allocation9 + $0x118] sm:$0xff] }
 0x70e   :  { %v2709_v36 = vadd.f32 %v3928_v22, %v2708_v7  ;;  %v2726_v26 = vmul.f32 %v3930_v50, %v2724_v8  ;;  %v3932_v42 = vpop.eup %3931  ;;  %vm2731_vm4 = vweird.f32 %v3930_v50  ;;  %v6050_v8 = vld [vmem:[#allocation9 + $0x148] sm:$0xff] }
 0x70f   :  { %v2694_v3 = vsel %vm2693_vm0, %v3926_v46, %v2690_v4  ;;  %vm2732_vm6 = vmor %vm2730_vm5, %vm2731_vm4  ;;  %v6053_v46 = vld [vmem:[#allocation9 + $0x150] sm:$0xff]  ;;  %v6086_v7 = vld [vmem:[#allocation9 + $0xe8] sm:$0xff] }
 0x710   :  { %v2699_v43 = vsel %vm2696_vm2, %v2698_v30, %v2694_v3  ;;  %v2713_v47 = vsel %vm2712_vm1, %v3928_v22, %v2709_v36  ;;  %v2727_v31 = vsub.f32 1.0, %v2726_v26  ;;  %v6059_v22 = vld [vmem:[#allocation9 + $0x120] sm:$0xff]  ;;  %v6098_v30 = vld [vmem:[#allocation9 + $0xc8] sm:$0xff]  ;;  %v6101_v36 = vld [vmem:[#allocation9 + $0xd0] sm:$0xff] }
 0x711   :  { %v2718_v32 = vsel %vm2715_vm3, %v2717_v40, %v2713_v47  ;;  %v2741_v35 = vmul.f32 %v3932_v42, %v2699_v43  ;;  %v6095_v4 = vld [vmem:[#allocation9 + $0xc0] sm:$0xff]  ;;  %6938 = vst [vmem:[#allocation16_spill] sm:$0xff] %v6101_v36  ;;  %v6104_v26 = vld [vmem:[#allocation9 + $0xd8] sm:$0xff]  ;;  %v6110_v3 = vld [vmem:[#allocation9 + $0xa8] sm:$0xff] }
 0x712   :  { %v2740_v12 = vmul.f32 %v2718_v32, %v5908_v49  ;;  %v2728_v33 = vmul.f32 %v3930_v50, %v2727_v31  ;;  %v5987_v49 = vld [vmem:[#allocation9 + $0x1e0] sm:$0xff]  ;;  %6939 = vst [vmem:[#allocation49_spill] sm:$0xff] %v6104_v26  ;;  %v6113_v42 = vld [vmem:[#allocation9 + $0xb0] sm:$0xff]  ;;  %v6116_v43 = vld [vmem:[#allocation9 + $0xb8] sm:$0xff] }
 0x713   :  { %v6107_v40 = vld [vmem:[#allocation9 + $0xa0] sm:$0xff]  ;;  %6941 = vst [vmem:[#allocation51_spill] sm:$0xff] %v6110_v3  ;;  %v6122_v31 = vld [vmem:[#allocation9 + $0x88] sm:$0xff]  ;;  %v6125_v32 = vld [vmem:[#allocation9 + $0x90] sm:$0xff] }
 0x714   :  { %v5984_v39 = vadd.f32 %v2741_v35, %v2740_v12  ;;  %v2729_v2 = vadd.f32 %v3930_v50, %v2728_v33  ;;  %6940 = vst [vmem:[#allocation50_spill] sm:$0xff] %v6107_v40  ;;  %v6119_v47 = vld [vmem:[#allocation9 + $0x80] sm:$0xff]  ;;  %v6128_v35 = vld [vmem:[#allocation9 + $0x98] sm:$0xff]  ;;  %v6134_v33 = vld [vmem:[#allocation9 + $0x68] sm:$0xff] }
 0x715   :  { %6942 = vst [vmem:[#allocation20_spill] sm:$0xff] %v6113_v42  ;;  %v6131_v12 = vld [vmem:[#allocation9 + $0x60] sm:$0xff] }
 0x716   :  { %3933 = vtanh.f32 %v5984_v39  ;;  %v2733_v60 = vsel %vm2732_vm6, %v3930_v50, %v2729_v2  ;;  %v6092_v50 = vld [vmem:[#allocation9 + $0xf8] sm:$0xff]  ;;  %6943 = vst [vmem:[#allocation14_spill] sm:$0xff] %v6116_v43  ;;  %v6137_v2 = vld [vmem:[#allocation9 + $0x70] sm:$0xff] }
 0x717   :  { %v2738_v62 = vsel %vm2735_vm7, %v2737_v57, %v2733_v60  ;;  %6944 = vst [vmem:[#allocation15_spill] sm:$0xff] %v6119_v47  ;;  %v6146_v60 = vld [vmem:[#allocation9 + $0x48] sm:$0xff]  ;;  %v6149_v57 = vld [vmem:[#allocation9 + $0x50] sm:$0xff] }
 0x718   :  { %6945 = vst [vmem:[#allocation17_spill] sm:$0xff] %v6122_v31 }
 0x719   :  { %6946 = vst [vmem:[#allocation24_spill] sm:$0xff] %v6125_v32 }
 0x71a   :  { %6947 = vst [vmem:[#allocation37_spill] sm:$0xff] %v6128_v35 }
 0x71b   :  { %6948 = vst [vmem:[#allocation18_spill] sm:$0xff] %v6131_v12 }
 0x71c   :  { %v3934_v1 = vpop.eup %3933  ;;  %6949 = vst [vmem:[#allocation19_spill] sm:$0xff] %v6134_v33 }
 0x71d   :  { %v2744_v24 = vmul.f32 %v3934_v1, %v2738_v62  ;;  %6950 = vst [vmem:[#allocation57_spill] sm:$0xff] %v6137_v2  ;;  %v6152_v1 = vld [vmem:[#allocation9 + $0x58] sm:$0xff]  ;;  %v6155_v62 = vld [vmem:[#allocation9 + $0x20] sm:$0xff] }
 0x71e   :  { %6953 = vst [vmem:[#allocation22_spill] sm:$0xff] %v6146_v60 }
 0x71f   :  { %2765 = vmatmul.f32.vlgmr.msra.gmra.mxu0 %v2744_v24  ;;  %2785 = vmatmul.f32.vlgmr.msra.gmra.mxu1 %v2744_v24  ;;  %6954 = vst [vmem:[#allocation40_spill] sm:$0xff] %v6149_v57 }
 0x720   :  { %2805 = vmatmul.f32.vlgmr.msra.gmra.mxu2 %v2744_v24  ;;  %2825 = vmatmul.f32.vlgmr.msra.gmra.mxu3 %v2744_v24  ;;  %6955 = vst [vmem:[#allocation56_spill] sm:$0xff] %v6152_v1  ;;  %v6158_v24 = vld [vmem:[#allocation9 + $0x28] sm:$0xff] }
 0x721   :  { %3051 = vmatpush.msra.mxu0 %v5987_v49  ;;  %3071 = vmatpush.msra.mxu1 %v5990_v14  ;;  %6956 = vst [vmem:[#allocation27_spill] sm:$0xff] %v6155_v62 }
 0x722   :  { %3091 = vmatpush.msra.mxu2 %v5993_v17  ;;  %3111 = vmatpush.msra.mxu3 %v5996_v44  ;;  %6957 = vst [vmem:[#allocation55_spill] sm:$0xff] %v6158_v24 }
 0x723   :  { %3052 = vmatpush.msra.mxu0 %v5999_v21  ;;  %3072 = vmatpush.msra.mxu1 %v6002_v54 }
 0x724   :  { %3092 = vmatpush.msra.mxu2 %v6005_v0  ;;  %3112 = vmatpush.msra.mxu3 %v6008_v18 }
 0x725   :  { %3053 = vmatpush.msra.mxu0 %v6011_v6  ;;  %3073 = vmatpush.msra.mxu1 %v6014_v29 }
 0x726   :  { %3093 = vmatpush.msra.mxu2 %v6017_v53  ;;  %3113 = vmatpush.msra.mxu3 %v6020_v5 }
 0x727   :  { %3054 = vmatpush.msra.mxu0 %v6023_v52  ;;  %3074 = vmatpush.msra.mxu1 %v6026_v9 }
 0x728   :  { %3094 = vmatpush.msra.mxu2 %v6029_v28  ;;  %3114 = vmatpush.msra.mxu3 %v6032_v19 }
 0x729   :  { %3055 = vmatpush.msra.mxu0 %v6035_v55  ;;  %3075 = vmatpush.msra.mxu1 %v6038_v15 }
 0x72a   :  { %3095 = vmatpush.msra.mxu2 %v6041_v16  ;;  %3115 = vmatpush.msra.mxu3 %v6044_v23 }
 0x72b   :  { %3056 = vmatpush.msra.mxu0 %v6047_v25  ;;  %3076 = vmatpush.msra.mxu1 %v6050_v8 }
 0x72c   :  { %3096 = vmatpush.msra.mxu2 %v6053_v46  ;;  %3116 = vmatpush.msra.mxu3 %v6056_v20 }
 0x72d   :  { %3057 = vmatpush.msra.mxu0 %v6059_v22  ;;  %3077 = vmatpush.msra.mxu1 %v6062_v56 }
 0x72e   :  { %3097 = vmatpush.msra.mxu2 %v6065_v13  ;;  %3117 = vmatpush.msra.mxu3 %v6068_v41 }
 0x72f   :  { %3058 = vmatpush.msra.mxu0 %v6071_v48  ;;  %3078 = vmatpush.msra.mxu1 %v6074_v51 }
 0x730   :  { %3098 = vmatpush.msra.mxu2 %v6077_v34  ;;  %3118 = vmatpush.msra.mxu3 %v6080_v58 }
 0x731   :  { %3059 = vmatpush.msra.mxu0 %v6083_v38  ;;  %3079 = vmatpush.msra.mxu1 %v6086_v7 }
 0x732   :  { %3099 = vmatpush.msra.mxu2 %v6089_v27  ;;  %3119 = vmatpush.msra.mxu3 %v6092_v50 }
 0x733   :  { %3060 = vmatpush.msra.mxu0 %v6095_v4  ;;  %3080 = vmatpush.msra.mxu1 %v6098_v30 }
 0x734   :  { %3100 = vmatpush.msra.mxu2 %v6101_v36  ;;  %3120 = vmatpush.msra.mxu3 %v6104_v26 }
 0x735   :  { %3061 = vmatpush.msra.mxu0 %v6107_v40  ;;  %3081 = vmatpush.msra.mxu1 %v6110_v3 }
 0x736   :  { %3101 = vmatpush.msra.mxu2 %v6113_v42  ;;  %3121 = vmatpush.msra.mxu3 %v6116_v43 }
 0x737   :  { %3062 = vmatpush.msra.mxu0 %v6119_v47  ;;  %3082 = vmatpush.msra.mxu1 %v6122_v31 }
 0x738   :  { %3102 = vmatpush.msra.mxu2 %v6125_v32  ;;  %3122 = vmatpush.msra.mxu3 %v6128_v35 }
 0x739   :  { %3063 = vmatpush.msra.mxu0 %v6131_v12  ;;  %3083 = vmatpush.msra.mxu1 %v6134_v33 }
 0x73a   :  { %3103 = vmatpush.msra.mxu2 %v6137_v2  ;;  %3123 = vmatpush.msra.mxu3 %v6140_v45  ;;  %v6964_v45 = vld [vmem:[#allocation33_spill] sm:$0xff] }
 0x73b   :  { %3064 = vmatpush.msra.mxu0 %v6143_v11  ;;  %3084 = vmatpush.msra.mxu1 %v6146_v60  ;;  %v6161_v11 = vld [vmem:[#allocation9 + $0x30] sm:$0xff]  ;;  %v6164_v60 = vld [vmem:[#allocation9 + $0x38] sm:$0xff] }
 0x73c   :  { %3104 = vmatpush.msra.mxu2 %v6149_v57  ;;  %3124 = vmatpush.msra.mxu3 %v6152_v1  ;;  %6958 = vst [vmem:[#allocation31_spill] sm:$0xff] %v6161_v11  ;;  %v6167_v57 = vld [vmem:[#allocation9] sm:$0xff]  ;;  %v6170_v1 = vld [vmem:[#allocation9 + $0x8] sm:$0xff] }
 0x73d   :  { %3065 = vmatpush.msra.mxu0 %v6155_v62  ;;  %3085 = vmatpush.msra.mxu1 %v6158_v24  ;;  %6959 = vst [vmem:[#allocation41_spill] sm:$0xff] %v6164_v60  ;;  %v6174_v62 = vld [vmem:[#allocation9 + $0x18] sm:$0xff] }
 0x73e   :  { %3105 = vmatpush.msra.mxu2 %v6161_v11  ;;  %3125 = vmatpush.msra.mxu3 %v6164_v60  ;;  %6960 = vst [vmem:[#allocation58_spill] sm:$0xff] %v6167_v57  ;;  %v6963_v11 = vld [vmem:[#allocation28_spill] sm:$0xff]  ;;  %v2248_v60 = vadd.f32 %v6964_v45, %v6932_v63 }
 0x73f   :  { %3066 = vmatpush.msra.mxu0 %v6167_v57  ;;  %6961 = vst [vmem:[#allocation59_spill] sm:$0xff] %v6170_v1  ;;  %3086 = vmatpush.msra.mxu1 %v6170_v1  ;;  %v2207_v24 = vadd.f32 %v6963_v11, %v6930_v59  ;;  %v6965_v1 = vld [vmem:[#allocation39_spill] sm:$0xff] }
 0x740   :  { %3106 = vmatpush.msra.mxu2 %v6928_v10  ;;  %6962 = vst [vmem:[#allocation25_spill] sm:$0xff] %v6174_v62  ;;  %3126 = vmatpush.msra.mxu3 %v6174_v62  ;;  %v2330_v10 = vadd.f32 %v6965_v1, %v6934_v61 }
 0x79c   :  { %v2766_v2 = vpop.f32.mrf.mxu0  ;;  %v2786_v33 = vpop.f32.mrf.mxu1 }
 0x79d   :  { %v2829_v12 = vadd.f32 %v2766_v2, %v2207_v24  ;;  %v2830_v57 = vadd.f32 %v2786_v33, %v2248_v60 }
 0x79f   :  { %v3748_v35 = vmul.f32 -1.442695, %v2829_v12  ;;  %v3749_v32 = vmul.f32 -1.442695, %v2830_v57  ;;  %v6966_v12 = vld [vmem:[#allocation54_spill] sm:$0xff] }
 0x7a0   :  { %v2289_v33 = vadd.f32 %v6966_v12, %v6936_v37 }
 0x7a1   :  { %3935 = vpow2.f32 %v3748_v35 }
 0x7a2   :  { %3937 = vpow2.f32 %v3749_v32 }
 0x7a3   :  { %v2826_v31 = vpop.f32.mrf.mxu3  ;;  %v2806_v45 = vpop.f32.mrf.mxu2 }
 0x7a4   :  { %v2832_v47 = vadd.f32 %v2826_v31, %v2330_v10  ;;  %v2831_v57 = vadd.f32 %v2806_v45, %v2289_v33 }
 0x7a6   :  { %v3750_v62 = vmul.f32 -1.442695, %v2832_v47 }
 0x7a7   :  { %v3936_v43 = vpop.eup %3935 }
 0x7a8   :  { %v3938_v42 = vpop.eup %3937  ;;  %v2836_v11 = vadd.f32 1.0, %v3936_v43  ;;  %3939 = vpow2.f32 %v3750_v62 }
 0x7a9   :  { %v2855_v59 = vadd.f32 1.0, %v3938_v42 }
 0x7aa   :  { %3941 = vrcp.f32 %v2836_v11  ;;  %v2848_v10 = vand.u32 2147483648, %v2836_v11  ;;  %v2846_v62 = vand.u32 2147483647, %v2836_v11  ;;  %vm2842_vm10 = vweird.f32 %v2836_v11 }
 0x7ab   :  { %3943 = vrcp.f32 %v2855_v59  ;;  %v2867_v43 = vand.u32 2147483648, %v2855_v59  ;;  %v2865_v63 = vand.u32 2147483647, %v2855_v59  ;;  %vm2861_vm11 = vweird.f32 %v2855_v59 }
 0x7ac   :  { %v2849_v45 = vor.u32 1.1754944e-38, %v2848_v10  ;;  %vm2847_vm14 = vcmp.eq.f32.partialorder %v2846_v62, 8.507059e+37 }
 0x7ad   :  { %vm2866_vm15 = vcmp.eq.f32.partialorder %v2865_v63, 8.507059e+37 }
 0x7ae   :  { %v3940_v2 = vpop.eup %3939 }
 0x7af   :  { %v2875_v35 = vadd.f32 1.0, %v3940_v2 }
 0x7b0   :  { %v3942_v60 = vpop.eup %3941 }
 0x7b1   :  { %v3944_v1 = vpop.eup %3943  ;;  %v2838_v32 = vmul.f32 %v3942_v60, %v2836_v11  ;;  %3945 = vrcp.f32 %v2875_v35  ;;  %vm2843_vm8 = vweird.f32 %v3942_v60  ;;  %vm2881_vm1 = vweird.f32 %v2875_v35 }
 0x7b2   :  { %v2857_v31 = vmul.f32 %v3944_v1, %v2855_v59  ;;  %3947 = vtanh.f32 %v2831_v57  ;;  %vm2862_vm9 = vweird.f32 %v3944_v1  ;;  %vm2844_vm12 = vmor %vm2842_vm10, %vm2843_vm8 }
 0x7b3   :  { %v2839_v47 = vsub.f32 1.0, %v2838_v32  ;;  %vm2863_vm13 = vmor %vm2861_vm11, %vm2862_vm9  ;;  %v2868_v32 = vor.u32 1.1754944e-38, %v2867_v43 }
 0x7b4   :  { %v2858_v24 = vsub.f32 1.0, %v2857_v31 }
 0x7b5   :  { %v2840_v42 = vmul.f32 %v3942_v60, %v2839_v47 }
 0x7b6   :  { %v2859_v61 = vmul.f32 %v3944_v1, %v2858_v24 }
 0x7b7   :  { %v3946_v3 = vpop.eup %3945  ;;  %v2841_v12 = vadd.f32 %v3942_v60, %v2840_v42 }
 0x7b8   :  { %v2860_v2 = vadd.f32 %v3944_v1, %v2859_v61  ;;  %v2877_v33 = vmul.f32 %v3946_v3, %v2875_v35  ;;  %v3948_v57 = vpop.eup %3947  ;;  %vm2882_vm0 = vweird.f32 %v3946_v3  ;;  %v2887_v61 = vand.u32 2147483648, %v2875_v35 }
 0x7b9   :  { %v2845_v31 = vsel %vm2844_vm12, %v3942_v60, %v2841_v12  ;;  %v2885_v60 = vand.u32 2147483647, %v2875_v35  ;;  %vm2883_vm2 = vmor %vm2881_vm1, %vm2882_vm0  ;;  %v6973_v35 = vld [vmem:[#allocation15_spill] sm:$0xff]  ;;  %v6974_v12 = vld [vmem:[#allocation17_spill] sm:$0xff] }
 0x7ba   :  { %v2850_v37 = vsel %vm2847_vm14, %v2849_v45, %v2845_v31  ;;  %v2864_v47 = vsel %vm2863_vm13, %v3944_v1, %v2860_v2  ;;  %v2878_v40 = vsub.f32 1.0, %v2877_v33  ;;  %v2888_v43 = vor.u32 1.1754944e-38, %v2887_v61  ;;  %v6975_v45 = vld [vmem:[#allocation24_spill] sm:$0xff]  ;;  %v6976_v2 = vld [vmem:[#allocation37_spill] sm:$0xff]  ;;  %v6977_v33 = vld [vmem:[#allocation18_spill] sm:$0xff] }
 0x7bb   :  { %v2869_v24 = vsel %vm2866_vm15, %v2868_v32, %v2864_v47  ;;  %v2892_v26 = vmul.f32 %v3948_v57, %v2850_v37  ;;  %vm2886_vm3 = vcmp.eq.f32.partialorder %v2885_v60, 8.507059e+37  ;;  %v6967_v37 = vld [vmem:[#allocation16_spill] sm:$0xff]  ;;  %v6978_v32 = vld [vmem:[#allocation19_spill] sm:$0xff]  ;;  %v6979_v31 = vld [vmem:[#allocation57_spill] sm:$0xff] }
 0x7bc   :  { %v2891_v36 = vmul.f32 %v2869_v24, %v5984_v39  ;;  %v2879_v42 = vmul.f32 %v3946_v3, %v2878_v40  ;;  %v6968_v39 = vld [vmem:[#allocation49_spill] sm:$0xff]  ;;  %v6971_v40 = vld [vmem:[#allocation20_spill] sm:$0xff]  ;;  %v6980_v57 = vld [vmem:[#allocation23_spill] sm:$0xff] }
 0x7bd   :  { %v6981_v47 = vld [vmem:[#allocation21_spill] sm:$0xff]  ;;  %v6982_v24 = vld [vmem:[#allocation22_spill] sm:$0xff]  ;;  %v6985_v61 = vld [vmem:[#allocation27_spill] sm:$0xff] }
 0x7be   :  { %v6186_v11 = vadd.f32 %v2892_v26, %v2891_v36  ;;  %v2880_v59 = vadd.f32 %v3946_v3, %v2879_v42  ;;  %v6969_v36 = vld [vmem:[#allocation50_spill] sm:$0xff]  ;;  %v6970_v26 = vld [vmem:[#allocation51_spill] sm:$0xff]  ;;  %v6983_v42 = vld [vmem:[#allocation40_spill] sm:$0xff] }
 0x7bf   :  { %v6986_v60 = vld [vmem:[#allocation55_spill] sm:$0xff] }
 0x7c0   :  { %3949 = vtanh.f32 %v6186_v11  ;;  %v2884_v10 = vsel %vm2883_vm2, %v3946_v3, %v2880_v59  ;;  %v6972_v3 = vld [vmem:[#allocation14_spill] sm:$0xff]  ;;  %v6984_v59 = vld [vmem:[#allocation56_spill] sm:$0xff] }
 0x7c1   :  { %v2889_v1 = vsel %vm2886_vm3, %v2888_v43, %v2884_v10  ;;  %v6987_v10 = vld [vmem:[#allocation31_spill] sm:$0xff]  ;;  %v6988_v43 = vld [vmem:[#allocation41_spill] sm:$0xff] }
 0x7c6   :  { %v3950_v63 = vpop.eup %3949 }
 0x7c7   :  { %v2895_v62 = vmul.f32 %v3950_v63, %v2889_v1  ;;  %v6989_v63 = vld [vmem:[#allocation58_spill] sm:$0xff]  ;;  %v6990_v1 = vld [vmem:[#allocation59_spill] sm:$0xff] }
 0x7c9   :  { %2916 = vmatmul.f32.vlgmr.msrb.gmra.mxu0 %v2895_v62  ;;  %2936 = vmatmul.f32.vlgmr.msrb.gmra.mxu1 %v2895_v62 }
 0x7ca   :  { %2956 = vmatmul.f32.vlgmr.msrb.gmra.mxu2 %v2895_v62  ;;  %2976 = vmatmul.f32.vlgmr.msrb.gmra.mxu3 %v2895_v62  ;;  %v6251_v62 = vld [vmem:[#allocation9 + $0x10] sm:$0xff] }
 0x7cb   :  { %3202 = vmatpush.msrb.mxu0 %v5987_v49  ;;  %3222 = vmatpush.msrb.mxu1 %v5990_v14  ;;  %6991 = vst [vmem:[#allocation42_spill] sm:$0xff] %v6251_v62 }
 0x7cc   :  { %3242 = vmatpush.msrb.mxu2 %v5993_v17  ;;  %3262 = vmatpush.msrb.mxu3 %v5996_v44 }
 0x7cd   :  { %3203 = vmatpush.msrb.mxu0 %v5999_v21  ;;  %3223 = vmatpush.msrb.mxu1 %v6002_v54 }
 0x7ce   :  { %3243 = vmatpush.msrb.mxu2 %v6005_v0  ;;  %3263 = vmatpush.msrb.mxu3 %v6008_v18 }
 0x7cf   :  { %3204 = vmatpush.msrb.mxu0 %v6011_v6  ;;  %3224 = vmatpush.msrb.mxu1 %v6014_v29 }
 0x7d0   :  { %3244 = vmatpush.msrb.mxu2 %v6017_v53  ;;  %3264 = vmatpush.msrb.mxu3 %v6020_v5 }
 0x7d1   :  { %3205 = vmatpush.msrb.mxu0 %v6023_v52  ;;  %3225 = vmatpush.msrb.mxu1 %v6026_v9 }
 0x7d2   :  { %3245 = vmatpush.msrb.mxu2 %v6029_v28  ;;  %3265 = vmatpush.msrb.mxu3 %v6032_v19 }
 0x7d3   :  { %3206 = vmatpush.msrb.mxu0 %v6035_v55  ;;  %3226 = vmatpush.msrb.mxu1 %v6038_v15 }
 0x7d4   :  { %3246 = vmatpush.msrb.mxu2 %v6041_v16  ;;  %3266 = vmatpush.msrb.mxu3 %v6044_v23 }
 0x7d5   :  { %3207 = vmatpush.msrb.mxu0 %v6047_v25  ;;  %3227 = vmatpush.msrb.mxu1 %v6050_v8 }
 0x7d6   :  { %3247 = vmatpush.msrb.mxu2 %v6053_v46  ;;  %3267 = vmatpush.msrb.mxu3 %v6056_v20 }
 0x7d7   :  { %3208 = vmatpush.msrb.mxu0 %v6059_v22  ;;  %3228 = vmatpush.msrb.mxu1 %v6062_v56 }
 0x7d8   :  { %3248 = vmatpush.msrb.mxu2 %v6065_v13  ;;  %3268 = vmatpush.msrb.mxu3 %v6068_v41 }
 0x7d9   :  { %3209 = vmatpush.msrb.mxu0 %v6071_v48  ;;  %3229 = vmatpush.msrb.mxu1 %v6074_v51 }
 0x7da   :  { %3249 = vmatpush.msrb.mxu2 %v6077_v34  ;;  %3269 = vmatpush.msrb.mxu3 %v6080_v58 }
 0x7db   :  { %3210 = vmatpush.msrb.mxu0 %v6083_v38  ;;  %3230 = vmatpush.msrb.mxu1 %v6086_v7 }
 0x7dc   :  { %3250 = vmatpush.msrb.mxu2 %v6089_v27  ;;  %3270 = vmatpush.msrb.mxu3 %v6092_v50 }
 0x7dd   :  { %3211 = vmatpush.msrb.mxu0 %v6095_v4  ;;  %3231 = vmatpush.msrb.mxu1 %v6098_v30 }
 0x7de   :  { %3251 = vmatpush.msrb.mxu2 %v6967_v37  ;;  %3271 = vmatpush.msrb.mxu3 %v6968_v39 }
 0x7df   :  { %3212 = vmatpush.msrb.mxu0 %v6969_v36  ;;  %3232 = vmatpush.msrb.mxu1 %v6970_v26 }
 0x7e0   :  { %3252 = vmatpush.msrb.mxu2 %v6971_v40  ;;  %3272 = vmatpush.msrb.mxu3 %v6972_v3 }
 0x7e1   :  { %3213 = vmatpush.msrb.mxu0 %v6973_v35  ;;  %3233 = vmatpush.msrb.mxu1 %v6974_v12 }
 0x7e2   :  { %3253 = vmatpush.msrb.mxu2 %v6975_v45  ;;  %3273 = vmatpush.msrb.mxu3 %v6976_v2  ;;  %v6998_v2 = vld [vmem:[#allocation29_spill] sm:$0xff] }
 0x7e3   :  { %3214 = vmatpush.msrb.mxu0 %v6977_v33  ;;  %3234 = vmatpush.msrb.mxu1 %v6978_v32 }
 0x7e4   :  { %3254 = vmatpush.msrb.mxu2 %v6979_v31  ;;  %3274 = vmatpush.msrb.mxu3 %v6980_v57  ;;  %v6996_v57 = vld [vmem:[#allocation53_spill] sm:$0xff] }
 0x7e5   :  { %3215 = vmatpush.msrb.mxu0 %v6981_v47  ;;  %3235 = vmatpush.msrb.mxu1 %v6982_v24  ;;  %v6992_v24 = vld [vmem:[#allocation25_spill] sm:$0xff] }
 0x7e6   :  { %3255 = vmatpush.msrb.mxu2 %v6983_v42  ;;  %3275 = vmatpush.msrb.mxu3 %v6984_v59  ;;  %v6993_v42 = vld [vmem:[#allocation65_spill] sm:$0xff]  ;;  %v6994_v59 = vld [vmem:[#allocation52_spill] sm:$0xff] }
 0x7e7   :  { %3216 = vmatpush.msrb.mxu0 %v6985_v61  ;;  %3236 = vmatpush.msrb.mxu1 %v6986_v60  ;;  %v2210_v47 = vadd.f32 %v6994_v59, %v6993_v42  ;;  %v6995_v61 = vld [vmem:[#allocation66_spill] sm:$0xff] }
 0x7e8   :  { %3256 = vmatpush.msrb.mxu2 %v6987_v10  ;;  %3276 = vmatpush.msrb.mxu3 %v6988_v43  ;;  %v2251_v60 = vadd.f32 %v6996_v57, %v6995_v61 }
 0x7e9   :  { %3217 = vmatpush.msrb.mxu0 %v6989_v63  ;;  %3237 = vmatpush.msrb.mxu1 %v6990_v1  ;;  %v6997_v1 = vld [vmem:[#allocation69_spill] sm:$0xff] }
 0x7ea   :  { %3257 = vmatpush.msrb.mxu2 %v6251_v62  ;;  %3277 = vmatpush.msrb.mxu3 %v6992_v24  ;;  %v2333_v45 = vadd.f32 %v6998_v2, %v6997_v1 }
 0x846   :  { %v2917_v31 = vpop.f32.mrf.mxu0  ;;  %v2937_v10 = vpop.f32.mrf.mxu1 }
 0x847   :  { %v2980_v32 = vadd.f32 %v2917_v31, %v2210_v47  ;;  %v2981_v43 = vadd.f32 %v2937_v10, %v2251_v60  ;;  %v6999_v47 = vld [vmem:[#allocation71_spill] sm:$0xff] }
 0x849   :  { %v3751_v33 = vmul.f32 -1.442695, %v2980_v32  ;;  %v3752_v63 = vmul.f32 -1.442695, %v2981_v43  ;;  %v7000_v32 = vld [vmem:[#allocation36_spill] sm:$0xff] }
 0x84a   :  { %v2292_v60 = vadd.f32 %v7000_v32, %v6999_v47 }
 0x84b   :  { %3951 = vpow2.f32 %v3751_v33 }
 0x84c   :  { %3953 = vpow2.f32 %v3752_v63 }
 0x84d   :  { %v2977_v62 = vpop.f32.mrf.mxu3  ;;  %v2957_v57 = vpop.f32.mrf.mxu2 }
 0x84e   :  { %v2983_v12 = vadd.f32 %v2977_v62, %v2333_v45  ;;  %v2982_v43 = vadd.f32 %v2957_v57, %v2292_v60 }
 0x850   :  { %v3753_v24 = vmul.f32 -1.442695, %v2983_v12 }
 0x851   :  { %v3952_v35 = vpop.eup %3951 }
 0x852   :  { %v3954_v3 = vpop.eup %3953  ;;  %v2987_v59 = vadd.f32 1.0, %v3952_v35  ;;  %3955 = vpow2.f32 %v3753_v24 }
 0x853   :  { %v3006_v42 = vadd.f32 1.0, %v3954_v3 }
 0x854   :  { %3957 = vrcp.f32 %v2987_v59  ;;  %v2999_v1 = vand.u32 2147483648, %v2987_v59  ;;  %v2997_v24 = vand.u32 2147483647, %v2987_v59  ;;  %vm2993_vm6 = vweird.f32 %v2987_v59 }
 0x855   :  { %3959 = vrcp.f32 %v3006_v42  ;;  %v3018_v35 = vand.u32 2147483648, %v3006_v42  ;;  %v3016_v40 = vand.u32 2147483647, %v3006_v42  ;;  %vm3012_vm7 = vweird.f32 %v3006_v42 }
 0x856   :  { %v3000_v57 = vor.u32 1.1754944e-38, %v2999_v1  ;;  %vm2998_vm10 = vcmp.eq.f32.partialorder %v2997_v24, 8.507059e+37 }
 0x857   :  { %vm3017_vm11 = vcmp.eq.f32.partialorder %v3016_v40, 8.507059e+37 }
 0x858   :  { %v3956_v31 = vpop.eup %3955 }
 0x859   :  { %v3026_v33 = vadd.f32 1.0, %v3956_v31 }
 0x85a   :  { %v3958_v10 = vpop.eup %3957 }
 0x85b   :  { %v3960_v2 = vpop.eup %3959  ;;  %v2989_v63 = vmul.f32 %v3958_v10, %v2987_v59  ;;  %3961 = vrcp.f32 %v3026_v33  ;;  %vm2994_vm4 = vweird.f32 %v3958_v10  ;;  %vm3032_vm13 = vweird.f32 %v3026_v33 }
 0x85c   :  { %v3008_v45 = vmul.f32 %v3960_v2, %v3006_v42  ;;  %3963 = vtanh.f32 %v2982_v43  ;;  %vm3013_vm5 = vweird.f32 %v3960_v2  ;;  %vm2995_vm8 = vmor %vm2993_vm6, %vm2994_vm4  ;;  %v3036_v1 = vand.u32 2147483647, %v3026_v33 }
 0x85d   :  { %v2990_v12 = vsub.f32 1.0, %v2989_v63  ;;  %vm3014_vm9 = vmor %vm3012_vm7, %vm3013_vm5  ;;  %v3019_v63 = vor.u32 1.1754944e-38, %v3018_v35 }
 0x85e   :  { %v3009_v62 = vsub.f32 1.0, %v3008_v45  ;;  %vm3037_vm15 = vcmp.eq.f32.partialorder %v3036_v1, 8.507059e+37  ;;  %v7020_v1 = vld [vmem:[#allocation55_spill] sm:$0xff] }
 0x85f   :  { %v2991_v3 = vmul.f32 %v3958_v10, %v2990_v12 }
 0x860   :  { %v3010_v61 = vmul.f32 %v3960_v2, %v3009_v62 }
 0x861   :  { %v3962_v26 = vpop.eup %3961  ;;  %v2992_v32 = vadd.f32 %v3958_v10, %v2991_v3 }
 0x862   :  { %v3011_v31 = vadd.f32 %v3960_v2, %v3010_v61  ;;  %v3028_v60 = vmul.f32 %v3962_v26, %v3026_v33  ;;  %v3964_v43 = vpop.eup %3963  ;;  %vm3033_vm12 = vweird.f32 %v3962_v26  ;;  %v3038_v61 = vand.u32 2147483648, %v3026_v33  ;;  %v7007_v33 = vld [vmem:[#allocation15_spill] sm:$0xff] }
 0x863   :  { %v2996_v45 = vsel %vm2995_vm8, %v3958_v10, %v2992_v32  ;;  %vm3034_vm14 = vmor %vm3032_vm13, %vm3033_vm12  ;;  %v7008_v32 = vld [vmem:[#allocation17_spill] sm:$0xff] }
 0x864   :  { %v3001_v47 = vsel %vm2998_vm10, %v3000_v57, %v2996_v45  ;;  %v3015_v12 = vsel %vm3014_vm9, %v3960_v2, %v3011_v31  ;;  %v3029_v36 = vsub.f32 1.0, %v3028_v60  ;;  %v3039_v35 = vor.u32 1.1754944e-38, %v3038_v61  ;;  %v7009_v57 = vld [vmem:[#allocation24_spill] sm:$0xff]  ;;  %v7010_v31 = vld [vmem:[#allocation37_spill] sm:$0xff]  ;;  %v7011_v60 = vld [vmem:[#allocation18_spill] sm:$0xff] }
 0x865   :  { %v3020_v62 = vsel %vm3017_vm11, %v3019_v63, %v3015_v12  ;;  %v3043_v39 = vmul.f32 %v3964_v43, %v3001_v47  ;;  %v7006_v47 = vld [vmem:[#allocation14_spill] sm:$0xff]  ;;  %v7012_v63 = vld [vmem:[#allocation19_spill] sm:$0xff]  ;;  %v7013_v45 = vld [vmem:[#allocation57_spill] sm:$0xff] }
 0x866   :  { %v3042_v37 = vmul.f32 %v3020_v62, %v6186_v11  ;;  %v3030_v3 = vmul.f32 %v3962_v26, %v3029_v36  ;;  %v7001_v11 = vld [vmem:[#allocation16_spill] sm:$0xff]  ;;  %v7004_v36 = vld [vmem:[#allocation51_spill] sm:$0xff]  ;;  %v7015_v12 = vld [vmem:[#allocation21_spill] sm:$0xff] }
 0x867   :  { %v7014_v43 = vld [vmem:[#allocation23_spill] sm:$0xff]  ;;  %v7016_v62 = vld [vmem:[#allocation22_spill] sm:$0xff] }
 0x868   :  { %v6264_v59 = vadd.f32 %v3043_v39, %v3042_v37  ;;  %v3031_v42 = vadd.f32 %v3962_v26, %v3030_v3  ;;  %v7002_v37 = vld [vmem:[#allocation49_spill] sm:$0xff]  ;;  %v7003_v39 = vld [vmem:[#allocation50_spill] sm:$0xff]  ;;  %v7017_v3 = vld [vmem:[#allocation40_spill] sm:$0xff] }
 0x869   :  { %v7019_v61 = vld [vmem:[#allocation27_spill] sm:$0xff] }
 0x86a   :  { %3965 = vtanh.f32 %v6264_v59  ;;  %v3035_v10 = vsel %vm3034_vm14, %v3962_v26, %v3031_v42  ;;  %v7005_v26 = vld [vmem:[#allocation20_spill] sm:$0xff] }
 0x86b   :  { %v3040_v2 = vsel %vm3037_vm15, %v3039_v35, %v3035_v10  ;;  %v7018_v42 = vld [vmem:[#allocation56_spill] sm:$0xff]  ;;  %v7021_v10 = vld [vmem:[#allocation31_spill] sm:$0xff]  ;;  %v7022_v35 = vld [vmem:[#allocation41_spill] sm:$0xff] }
 0x870   :  { %v3966_v40 = vpop.eup %3965 }
 0x871   :  { %v3046_v24 = vmul.f32 %v3966_v40, %v3040_v2  ;;  %v7023_v40 = vld [vmem:[#allocation58_spill] sm:$0xff]  ;;  %v7024_v2 = vld [vmem:[#allocation59_spill] sm:$0xff] }
 0x873   :  { %3067 = vmatmul.f32.vlgmr.msra.gmra.mxu0 %v3046_v24  ;;  %3087 = vmatmul.f32.vlgmr.msra.gmra.mxu1 %v3046_v24 }
 0x874   :  { %3107 = vmatmul.f32.vlgmr.msra.gmra.mxu2 %v3046_v24  ;;  %3127 = vmatmul.f32.vlgmr.msra.gmra.mxu3 %v3046_v24  ;;  %v7025_v24 = vld [vmem:[#allocation42_spill] sm:$0xff] }
 0x875   :  { %3353 = vmatpush.msra.mxu0 %v5987_v49  ;;  %3373 = vmatpush.msra.mxu1 %v5990_v14 }
 0x876   :  { %3393 = vmatpush.msra.mxu2 %v5993_v17  ;;  %3413 = vmatpush.msra.mxu3 %v5996_v44 }
 0x877   :  { %3354 = vmatpush.msra.mxu0 %v5999_v21  ;;  %3374 = vmatpush.msra.mxu1 %v6002_v54 }
 0x878   :  { %3394 = vmatpush.msra.mxu2 %v6005_v0  ;;  %3414 = vmatpush.msra.mxu3 %v6008_v18 }
 0x879   :  { %3355 = vmatpush.msra.mxu0 %v6011_v6  ;;  %3375 = vmatpush.msra.mxu1 %v6014_v29 }
 0x87a   :  { %3395 = vmatpush.msra.mxu2 %v6017_v53  ;;  %3415 = vmatpush.msra.mxu3 %v6020_v5 }
 0x87b   :  { %3356 = vmatpush.msra.mxu0 %v6023_v52  ;;  %3376 = vmatpush.msra.mxu1 %v6026_v9 }
 0x87c   :  { %3396 = vmatpush.msra.mxu2 %v6029_v28  ;;  %3416 = vmatpush.msra.mxu3 %v6032_v19 }
 0x87d   :  { %3357 = vmatpush.msra.mxu0 %v6035_v55  ;;  %3377 = vmatpush.msra.mxu1 %v6038_v15 }
 0x87e   :  { %3397 = vmatpush.msra.mxu2 %v6041_v16  ;;  %3417 = vmatpush.msra.mxu3 %v6044_v23 }
 0x87f   :  { %3358 = vmatpush.msra.mxu0 %v6047_v25  ;;  %3378 = vmatpush.msra.mxu1 %v6050_v8 }
 0x880   :  { %3398 = vmatpush.msra.mxu2 %v6053_v46  ;;  %3418 = vmatpush.msra.mxu3 %v6056_v20 }
 0x881   :  { %3359 = vmatpush.msra.mxu0 %v6059_v22  ;;  %3379 = vmatpush.msra.mxu1 %v6062_v56 }
 0x882   :  { %3399 = vmatpush.msra.mxu2 %v6065_v13  ;;  %3419 = vmatpush.msra.mxu3 %v6068_v41 }
 0x883   :  { %3360 = vmatpush.msra.mxu0 %v6071_v48  ;;  %3380 = vmatpush.msra.mxu1 %v6074_v51 }
 0x884   :  { %3400 = vmatpush.msra.mxu2 %v6077_v34  ;;  %3420 = vmatpush.msra.mxu3 %v6080_v58 }
 0x885   :  { %3361 = vmatpush.msra.mxu0 %v6083_v38  ;;  %3381 = vmatpush.msra.mxu1 %v6086_v7 }
 0x886   :  { %3401 = vmatpush.msra.mxu2 %v6089_v27  ;;  %3421 = vmatpush.msra.mxu3 %v6092_v50 }
 0x887   :  { %3362 = vmatpush.msra.mxu0 %v6095_v4  ;;  %3382 = vmatpush.msra.mxu1 %v6098_v30 }
 0x888   :  { %3402 = vmatpush.msra.mxu2 %v7001_v11  ;;  %3422 = vmatpush.msra.mxu3 %v7002_v37 }
 0x889   :  { %3363 = vmatpush.msra.mxu0 %v7003_v39  ;;  %3383 = vmatpush.msra.mxu1 %v7004_v36 }
 0x88a   :  { %3403 = vmatpush.msra.mxu2 %v7005_v26  ;;  %3423 = vmatpush.msra.mxu3 %v7006_v47 }
 0x88b   :  { %3364 = vmatpush.msra.mxu0 %v7007_v33  ;;  %3384 = vmatpush.msra.mxu1 %v7008_v32 }
 0x88c   :  { %3404 = vmatpush.msra.mxu2 %v7009_v57  ;;  %3424 = vmatpush.msra.mxu3 %v7010_v31  ;;  %v7032_v57 = vld [vmem:[#allocation43_spill] sm:$0xff] }
 0x88d   :  { %3365 = vmatpush.msra.mxu0 %v7011_v60  ;;  %3385 = vmatpush.msra.mxu1 %v7012_v63 }
 0x88e   :  { %3405 = vmatpush.msra.mxu2 %v7013_v45  ;;  %3425 = vmatpush.msra.mxu3 %v7014_v43  ;;  %v7030_v45 = vld [vmem:[#allocation34_spill] sm:$0xff] }
 0x88f   :  { %3366 = vmatpush.msra.mxu0 %v7015_v12  ;;  %3386 = vmatpush.msra.mxu1 %v7016_v62  ;;  %v7026_v12 = vld [vmem:[#allocation25_spill] sm:$0xff] }
 0x890   :  { %3406 = vmatpush.msra.mxu2 %v7017_v3  ;;  %3426 = vmatpush.msra.mxu3 %v7018_v42  ;;  %v7027_v62 = vld [vmem:[#allocation65_spill] sm:$0xff]  ;;  %v7028_v3 = vld [vmem:[#allocation30_spill] sm:$0xff] }
 0x891   :  { %3367 = vmatpush.msra.mxu0 %v7019_v61  ;;  %3387 = vmatpush.msra.mxu1 %v7020_v1  ;;  %v2213_v43 = vadd.f32 %v7028_v3, %v7027_v62  ;;  %v7029_v42 = vld [vmem:[#allocation66_spill] sm:$0xff] }
 0x892   :  { %3407 = vmatpush.msra.mxu2 %v7021_v10  ;;  %3427 = vmatpush.msra.mxu3 %v7022_v35  ;;  %v2254_v61 = vadd.f32 %v7030_v45, %v7029_v42 }
 0x893   :  { %3368 = vmatpush.msra.mxu0 %v7023_v40  ;;  %3388 = vmatpush.msra.mxu1 %v7024_v2  ;;  %v7031_v40 = vld [vmem:[#allocation69_spill] sm:$0xff] }
 0x894   :  { %3408 = vmatpush.msra.mxu2 %v7025_v24  ;;  %3428 = vmatpush.msra.mxu3 %v7026_v12  ;;  %v2336_v2 = vadd.f32 %v7032_v57, %v7031_v40 }
 0x8f0   :  { %v3068_v63 = vpop.f32.mrf.mxu0  ;;  %v3088_v1 = vpop.f32.mrf.mxu1 }
 0x8f1   :  { %v3131_v60 = vadd.f32 %v3068_v63, %v2213_v43  ;;  %v3132_v10 = vadd.f32 %v3088_v1, %v2254_v61  ;;  %v7033_v43 = vld [vmem:[#allocation71_spill] sm:$0xff] }
 0x8f3   :  { %v3754_v31 = vmul.f32 -1.442695, %v3131_v60  ;;  %v3755_v35 = vmul.f32 -1.442695, %v3132_v10  ;;  %v7034_v60 = vld [vmem:[#allocation45_spill] sm:$0xff] }
 0x8f4   :  { %v2295_v61 = vadd.f32 %v7034_v60, %v7033_v43 }
 0x8f5   :  { %3967 = vpow2.f32 %v3754_v31 }
 0x8f6   :  { %3969 = vpow2.f32 %v3755_v35 }
 0x8f7   :  { %v3128_v24 = vpop.f32.mrf.mxu3  ;;  %v3108_v45 = vpop.f32.mrf.mxu2 }
 0x8f8   :  { %v3134_v32 = vadd.f32 %v3128_v24, %v2336_v2  ;;  %v3133_v10 = vadd.f32 %v3108_v45, %v2295_v61 }
 0x8fa   :  { %v3756_v12 = vmul.f32 -1.442695, %v3134_v32 }
 0x8fb   :  { %v3968_v33 = vpop.eup %3967 }
 0x8fc   :  { %v3970_v47 = vpop.eup %3969  ;;  %v3138_v3 = vadd.f32 1.0, %v3968_v33  ;;  %3971 = vpow2.f32 %v3756_v12 }
 0x8fd   :  { %v3157_v62 = vadd.f32 1.0, %v3970_v47 }
 0x8fe   :  { %3973 = vrcp.f32 %v3138_v3  ;;  %v3150_v40 = vand.u32 2147483648, %v3138_v3  ;;  %v3148_v12 = vand.u32 2147483647, %v3138_v3  ;;  %vm3144_vm2 = vweird.f32 %v3138_v3 }
 0x8ff   :  { %3975 = vrcp.f32 %v3157_v62  ;;  %v3169_v33 = vand.u32 2147483648, %v3157_v62  ;;  %v3167_v26 = vand.u32 2147483647, %v3157_v62  ;;  %vm3163_vm3 = vweird.f32 %v3157_v62 }
 0x900   :  { %v3151_v45 = vor.u32 1.1754944e-38, %v3150_v40  ;;  %vm3149_vm6 = vcmp.eq.f32.partialorder %v3148_v12, 8.507059e+37 }
 0x901   :  { %vm3168_vm7 = vcmp.eq.f32.partialorder %v3167_v26, 8.507059e+37 }
 0x902   :  { %v3972_v63 = vpop.eup %3971 }
 0x903   :  { %v3177_v31 = vadd.f32 1.0, %v3972_v63 }
 0x904   :  { %v3974_v1 = vpop.eup %3973 }
 0x905   :  { %v3976_v57 = vpop.eup %3975  ;;  %v3140_v35 = vmul.f32 %v3974_v1, %v3138_v3  ;;  %3977 = vrcp.f32 %v3177_v31  ;;  %vm3145_vm0 = vweird.f32 %v3974_v1  ;;  %vm3183_vm9 = vweird.f32 %v3177_v31 }
 0x906   :  { %v3159_v2 = vmul.f32 %v3976_v57, %v3157_v62  ;;  %3979 = vtanh.f32 %v3133_v10  ;;  %vm3164_vm1 = vweird.f32 %v3976_v57  ;;  %vm3146_vm4 = vmor %vm3144_vm2, %vm3145_vm0  ;;  %v3187_v40 = vand.u32 2147483647, %v3177_v31 }
 0x907   :  { %v3141_v32 = vsub.f32 1.0, %v3140_v35  ;;  %vm3165_vm5 = vmor %vm3163_vm3, %vm3164_vm1  ;;  %v3170_v35 = vor.u32 1.1754944e-38, %v3169_v33 }
 0x908   :  { %v3160_v24 = vsub.f32 1.0, %v3159_v2  ;;  %vm3188_vm11 = vcmp.eq.f32.partialorder %v3187_v40, 8.507059e+37 }
 0x909   :  { %v3142_v47 = vmul.f32 %v3974_v1, %v3141_v32 }
 0x90a   :  { %v3161_v42 = vmul.f32 %v3976_v57, %v3160_v24 }
 0x90b   :  { %v3978_v36 = vpop.eup %3977  ;;  %v3143_v60 = vadd.f32 %v3974_v1, %v3142_v47 }
 0x90c   :  { %v3162_v63 = vadd.f32 %v3976_v57, %v3161_v42  ;;  %v3179_v61 = vmul.f32 %v3978_v36, %v3177_v31  ;;  %v3980_v10 = vpop.eup %3979  ;;  %vm3184_vm8 = vweird.f32 %v3978_v36  ;;  %v3189_v42 = vand.u32 2147483648, %v3177_v31 }
 0x90d   :  { %v3147_v2 = vsel %vm3146_vm4, %v3974_v1, %v3143_v60  ;;  %vm3185_vm10 = vmor %vm3183_vm9, %vm3184_vm8 }
 0x90e   :  { %v3152_v43 = vsel %vm3149_vm6, %v3151_v45, %v3147_v2  ;;  %v3166_v32 = vsel %vm3165_vm5, %v3976_v57, %v3162_v63  ;;  %v3180_v39 = vsub.f32 1.0, %v3179_v61  ;;  %v3190_v33 = vor.u32 1.1754944e-38, %v3189_v42  ;;  %v7067_v2 = vld [vmem:[#allocation71_spill] sm:$0xff] }
 0x90f   :  { %v3171_v24 = vsel %vm3168_vm7, %v3170_v35, %v3166_v32  ;;  %v3194_v37 = vmul.f32 %v3980_v10, %v3152_v43  ;;  %v7068_v10 = vld [vmem:[#allocation61_spill] sm:$0xff] }
 0x910   :  { %v3193_v11 = vmul.f32 %v3171_v24, %v6264_v59  ;;  %v3181_v47 = vmul.f32 %v3978_v36, %v3180_v39  ;;  %v7065_v59 = vld [vmem:[#allocation69_spill] sm:$0xff]  ;;  %v2298_v32 = vadd.f32 %v7068_v10, %v7067_v2 }
 0x912   :  { %v6340_v3 = vadd.f32 %v3194_v37, %v3193_v11  ;;  %v3182_v62 = vadd.f32 %v3978_v36, %v3181_v47  ;;  %v7066_v11 = vld [vmem:[#allocation47_spill] sm:$0xff] }
 0x913   :  { %v2339_v37 = vadd.f32 %v7066_v11, %v7065_v59 }
 0x914   :  { %3981 = vtanh.f32 %v6340_v3  ;;  %v3186_v1 = vsel %vm3185_vm10, %v3978_v36, %v3182_v62 }
 0x915   :  { %v3191_v57 = vsel %vm3188_vm11, %v3190_v33, %v3186_v1 }
 0x91a   :  { %v3982_v26 = vpop.eup %3981 }
 0x91b   :  { %v3197_v12 = vmul.f32 %v3982_v26, %v3191_v57 }
 0x91d   :  { %3218 = vmatmul.f32.vlgmr.msrb.gmra.mxu0 %v3197_v12  ;;  %3238 = vmatmul.f32.vlgmr.msrb.gmra.mxu1 %v3197_v12 }
 0x91e   :  { %3258 = vmatmul.f32.vlgmr.msrb.gmra.mxu2 %v3197_v12  ;;  %3278 = vmatmul.f32.vlgmr.msrb.gmra.mxu3 %v3197_v12 }
 0x91f   :  { %3504 = vmatpush.msrb.mxu0 %v5987_v49  ;;  %3524 = vmatpush.msrb.mxu1 %v5990_v14  ;;  %v7035_v49 = vld [vmem:[#allocation16_spill] sm:$0xff]  ;;  %v7036_v14 = vld [vmem:[#allocation49_spill] sm:$0xff] }
 0x920   :  { %3544 = vmatpush.msrb.mxu2 %v5993_v17  ;;  %3564 = vmatpush.msrb.mxu3 %v5996_v44  ;;  %v7037_v17 = vld [vmem:[#allocation50_spill] sm:$0xff]  ;;  %v7038_v44 = vld [vmem:[#allocation51_spill] sm:$0xff] }
 0x921   :  { %3505 = vmatpush.msrb.mxu0 %v5999_v21  ;;  %3525 = vmatpush.msrb.mxu1 %v6002_v54  ;;  %v7039_v21 = vld [vmem:[#allocation20_spill] sm:$0xff]  ;;  %v7040_v54 = vld [vmem:[#allocation14_spill] sm:$0xff] }
 0x922   :  { %3545 = vmatpush.msrb.mxu2 %v6005_v0  ;;  %3565 = vmatpush.msrb.mxu3 %v6008_v18  ;;  %v7041_v0 = vld [vmem:[#allocation15_spill] sm:$0xff]  ;;  %v7042_v18 = vld [vmem:[#allocation17_spill] sm:$0xff] }
 0x923   :  { %3506 = vmatpush.msrb.mxu0 %v6011_v6  ;;  %3526 = vmatpush.msrb.mxu1 %v6014_v29  ;;  %v7043_v6 = vld [vmem:[#allocation24_spill] sm:$0xff]  ;;  %v7044_v29 = vld [vmem:[#allocation37_spill] sm:$0xff] }
 0x924   :  { %3546 = vmatpush.msrb.mxu2 %v6017_v53  ;;  %3566 = vmatpush.msrb.mxu3 %v6020_v5  ;;  %v7045_v53 = vld [vmem:[#allocation18_spill] sm:$0xff]  ;;  %v7046_v5 = vld [vmem:[#allocation19_spill] sm:$0xff] }
 0x925   :  { %3507 = vmatpush.msrb.mxu0 %v6023_v52  ;;  %3527 = vmatpush.msrb.mxu1 %v6026_v9  ;;  %v7047_v52 = vld [vmem:[#allocation57_spill] sm:$0xff]  ;;  %v7048_v9 = vld [vmem:[#allocation23_spill] sm:$0xff] }
 0x926   :  { %3547 = vmatpush.msrb.mxu2 %v6029_v28  ;;  %3567 = vmatpush.msrb.mxu3 %v6032_v19  ;;  %v7049_v28 = vld [vmem:[#allocation21_spill] sm:$0xff]  ;;  %v7050_v19 = vld [vmem:[#allocation22_spill] sm:$0xff] }
 0x927   :  { %3508 = vmatpush.msrb.mxu0 %v6035_v55  ;;  %3528 = vmatpush.msrb.mxu1 %v6038_v15  ;;  %v7051_v55 = vld [vmem:[#allocation40_spill] sm:$0xff] }
 0x928   :  { %3548 = vmatpush.msrb.mxu2 %v6041_v16  ;;  %3568 = vmatpush.msrb.mxu3 %v6044_v23  ;;  %v7052_v15 = vld [vmem:[#allocation56_spill] sm:$0xff]  ;;  %v7053_v16 = vld [vmem:[#allocation27_spill] sm:$0xff] }
 0x929   :  { %3509 = vmatpush.msrb.mxu0 %v6047_v25  ;;  %3529 = vmatpush.msrb.mxu1 %v6050_v8  ;;  %v7054_v23 = vld [vmem:[#allocation55_spill] sm:$0xff]  ;;  %v7056_v8 = vld [vmem:[#allocation41_spill] sm:$0xff] }
 0x92a   :  { %3549 = vmatpush.msrb.mxu2 %v6053_v46  ;;  %3569 = vmatpush.msrb.mxu3 %v6056_v20  ;;  %v7055_v25 = vld [vmem:[#allocation31_spill] sm:$0xff]  ;;  %v7057_v46 = vld [vmem:[#allocation58_spill] sm:$0xff] }
 0x92b   :  { %3510 = vmatpush.msrb.mxu0 %v6059_v22  ;;  %3530 = vmatpush.msrb.mxu1 %v6062_v56  ;;  %v7058_v20 = vld [vmem:[#allocation59_spill] sm:$0xff]  ;;  %v7059_v22 = vld [vmem:[#allocation42_spill] sm:$0xff]  ;;  %v7060_v56 = vld [vmem:[#allocation25_spill] sm:$0xff] }
 0x92c   :  { %3550 = vmatpush.msrb.mxu2 %v6065_v13  ;;  %3570 = vmatpush.msrb.mxu3 %v6068_v41  ;;  %v7061_v13 = vld [vmem:[#allocation65_spill] sm:$0xff]  ;;  %v7062_v41 = vld [vmem:[#allocation44_spill] sm:$0xff] }
 0x92d   :  { %3511 = vmatpush.msrb.mxu0 %v6071_v48  ;;  %3531 = vmatpush.msrb.mxu1 %v6074_v51  ;;  %v2216_v48 = vadd.f32 %v7062_v41, %v7061_v13  ;;  %v7063_v51 = vld [vmem:[#allocation66_spill] sm:$0xff] }
 0x92e   :  { %3551 = vmatpush.msrb.mxu2 %v6077_v34  ;;  %3571 = vmatpush.msrb.mxu3 %v6080_v58  ;;  %v7064_v34 = vld [vmem:[#allocation46_spill] sm:$0xff] }
 0x92f   :  { %3512 = vmatpush.msrb.mxu0 %v6083_v38  ;;  %3532 = vmatpush.msrb.mxu1 %v6086_v7  ;;  %v2257_v58 = vadd.f32 %v7064_v34, %v7063_v51 }
 0x930   :  { %3552 = vmatpush.msrb.mxu2 %v6089_v27  ;;  %3572 = vmatpush.msrb.mxu3 %v6092_v50 }
 0x931   :  { %3513 = vmatpush.msrb.mxu0 %v6095_v4  ;;  %3533 = vmatpush.msrb.mxu1 %v6098_v30 }
 0x932   :  { %3553 = vmatpush.msrb.mxu2 %v7035_v49  ;;  %3573 = vmatpush.msrb.mxu3 %v7036_v14 }
 0x933   :  { %3514 = vmatpush.msrb.mxu0 %v7037_v17  ;;  %3534 = vmatpush.msrb.mxu1 %v7038_v44 }
 0x934   :  { %3554 = vmatpush.msrb.mxu2 %v7039_v21  ;;  %3574 = vmatpush.msrb.mxu3 %v7040_v54 }
 0x935   :  { %3515 = vmatpush.msrb.mxu0 %v7041_v0  ;;  %3535 = vmatpush.msrb.mxu1 %v7042_v18 }
 0x936   :  { %3555 = vmatpush.msrb.mxu2 %v7043_v6  ;;  %3575 = vmatpush.msrb.mxu3 %v7044_v29 }
 0x937   :  { %3516 = vmatpush.msrb.mxu0 %v7045_v53  ;;  %3536 = vmatpush.msrb.mxu1 %v7046_v5 }
 0x938   :  { %3556 = vmatpush.msrb.mxu2 %v7047_v52  ;;  %3576 = vmatpush.msrb.mxu3 %v7048_v9 }
 0x939   :  { %3517 = vmatpush.msrb.mxu0 %v7049_v28  ;;  %3537 = vmatpush.msrb.mxu1 %v7050_v19 }
 0x93a   :  { %3557 = vmatpush.msrb.mxu2 %v7051_v55  ;;  %3577 = vmatpush.msrb.mxu3 %v7052_v15 }
 0x93b   :  { %3518 = vmatpush.msrb.mxu0 %v7053_v16  ;;  %3538 = vmatpush.msrb.mxu1 %v7054_v23 }
 0x93c   :  { %3558 = vmatpush.msrb.mxu2 %v7055_v25  ;;  %3578 = vmatpush.msrb.mxu3 %v7056_v8 }
 0x93d   :  { %3519 = vmatpush.msrb.mxu0 %v7057_v46  ;;  %3539 = vmatpush.msrb.mxu1 %v7058_v20 }
 0x93e   :  { %3559 = vmatpush.msrb.mxu2 %v7059_v22  ;;  %3579 = vmatpush.msrb.mxu3 %v7060_v56 }
 0x99a   :  { %v3219_v38 = vpop.f32.mrf.mxu0  ;;  %v3239_v7 = vpop.f32.mrf.mxu1 }
 0x99b   :  { %v3282_v27 = vadd.f32 %v3219_v38, %v2216_v48  ;;  %v3283_v50 = vadd.f32 %v3239_v7, %v2257_v58  ;;  %v7070_v58 = vld [vmem:[#allocation60_spill] sm:$0xff] }
 0x99c   :  { %v2260_v38 = vadd.f32 %v7070_v58, %v7063_v51  ;;  %v3665_v58 = vld [vmem:[%s6501_s7 + $0x70] sm:$0xff] }
 0x99d   :  { %v3757_v4 = vmul.f32 -1.442695, %v3282_v27  ;;  %v3758_v30 = vmul.f32 -1.442695, %v3283_v50 }
 0x99f   :  { %3983 = vpow2.f32 %v3757_v4 }
 0x9a0   :  { %3985 = vpow2.f32 %v3758_v30 }
 0x9a1   :  { %v3279_v39 = vpop.f32.mrf.mxu3  ;;  %v3259_v61 = vpop.f32.mrf.mxu2 }
 0x9a2   :  { %v3285_v36 = vadd.f32 %v3279_v39, %v2339_v37  ;;  %v3284_v62 = vadd.f32 %v3259_v61, %v2298_v32  ;;  %v7071_v37 = vld [vmem:[#allocation62_spill] sm:$0xff]  ;;  %v7072_v32 = vld [vmem:[#allocation67_spill] sm:$0xff] }
 0x9a3   :  { %v2342_v39 = vadd.f32 %v7071_v37, %v7065_v59  ;;  %v7073_v37 = vld [vmem:[#allocation63_spill] sm:$0xff] }
 0x9a4   :  { %v3759_v43 = vmul.f32 -1.442695, %v3285_v36 }
 0x9a5   :  { %v3984_v31 = vpop.eup %3983 }
 0x9a6   :  { %v3986_v60 = vpop.eup %3985  ;;  %v3289_v45 = vadd.f32 1.0, %v3984_v31  ;;  %3987 = vpow2.f32 %v3759_v43 }
 0x9a7   :  { %v3308_v63 = vadd.f32 1.0, %v3986_v60 }
 0x9a8   :  { %3989 = vrcp.f32 %v3289_v45  ;;  %v3301_v57 = vand.u32 2147483648, %v3289_v45  ;;  %v3299_v14 = vand.u32 2147483647, %v3289_v45  ;;  %vm3295_vm14 = vweird.f32 %v3289_v45 }
 0x9a9   :  { %3991 = vrcp.f32 %v3308_v63  ;;  %v3320_v12 = vand.u32 2147483648, %v3308_v63  ;;  %v3318_v44 = vand.u32 2147483647, %v3308_v63  ;;  %vm3314_vm15 = vweird.f32 %v3308_v63 }
 0x9aa   :  { %v3302_v0 = vor.u32 1.1754944e-38, %v3301_v57  ;;  %vm3300_vm2 = vcmp.eq.f32.partialorder %v3299_v14, 8.507059e+37 }
 0x9ab   :  { %v3321_v29 = vor.u32 1.1754944e-38, %v3320_v12  ;;  %vm3319_vm3 = vcmp.eq.f32.partialorder %v3318_v44, 8.507059e+37 }
 0x9ac   :  { %v3988_v35 = vpop.eup %3987 }
 0x9ad   :  { %v3328_v24 = vadd.f32 1.0, %v3988_v35 }
 0x9ae   :  { %v3990_v47 = vpop.eup %3989 }
 0x9af   :  { %v3992_v42 = vpop.eup %3991  ;;  %v3291_v40 = vmul.f32 %v3990_v47, %v3289_v45  ;;  %3993 = vrcp.f32 %v3328_v24  ;;  %vm3296_vm12 = vweird.f32 %v3990_v47  ;;  %v3340_v8 = vand.u32 2147483648, %v3328_v24 }
 0x9b0   :  { %v3310_v1 = vmul.f32 %v3992_v42, %v3308_v63  ;;  %3995 = vtanh.f32 %v3284_v62  ;;  %vm3315_vm13 = vweird.f32 %v3992_v42  ;;  %vm3297_vm0 = vmor %vm3295_vm14, %vm3296_vm12  ;;  %vm3334_vm5 = vweird.f32 %v3328_v24 }
 0x9b1   :  { %v3292_v33 = vsub.f32 1.0, %v3291_v40  ;;  %vm3316_vm1 = vmor %vm3314_vm15, %vm3315_vm13  ;;  %v3338_v46 = vand.u32 2147483647, %v3328_v24  ;;  %v3341_v22 = vor.u32 1.1754944e-38, %v3340_v8 }
 0x9b2   :  { %v3311_v26 = vsub.f32 1.0, %v3310_v1 }
 0x9b3   :  { %v3293_v49 = vmul.f32 %v3990_v47, %v3292_v33  ;;  %vm3339_vm7 = vcmp.eq.f32.partialorder %v3338_v46, 8.507059e+37 }
 0x9b4   :  { %v3312_v17 = vmul.f32 %v3992_v42, %v3311_v26 }
 0x9b5   :  { %v3994_v21 = vpop.eup %3993  ;;  %v3294_v54 = vadd.f32 %v3990_v47, %v3293_v49 }
 0x9b6   :  { %v3313_v18 = vadd.f32 %v3992_v42, %v3312_v17  ;;  %v3330_v6 = vmul.f32 %v3994_v21, %v3328_v24  ;;  %v3996_v5 = vpop.eup %3995  ;;  %vm3335_vm4 = vweird.f32 %v3994_v21  ;;  %v2301_v24 = vadd.f32 %v7072_v32, %v7067_v2 }
 0x9b7   :  { %v3298_v53 = vsel %vm3297_vm0, %v3990_v47, %v3294_v54  ;;  %vm3336_vm6 = vmor %vm3334_vm5, %vm3335_vm4 }
 0x9b8   :  { %v3303_v52 = vsel %vm3300_vm2, %v3302_v0, %v3298_v53  ;;  %v3317_v9 = vsel %vm3316_vm1, %v3992_v42, %v3313_v18  ;;  %v3331_v28 = vsub.f32 1.0, %v3330_v6 }
 0x9b9   :  { %v3322_v19 = vsel %vm3319_vm3, %v3321_v29, %v3317_v9  ;;  %v3345_v55 = vmul.f32 %v3996_v5, %v3303_v52 }
 0x9ba   :  { %v3344_v15 = vmul.f32 %v3322_v19, %v6340_v3  ;;  %v3332_v16 = vmul.f32 %v3994_v21, %v3331_v28  ;;  %v7069_v3 = vld [vmem:[#allocation48_spill] sm:$0xff] }
 0x9bb   :  { %v2219_v34 = vadd.f32 %v7069_v3, %v7061_v13 }
 0x9bc   :  { %v6416_v23 = vadd.f32 %v3345_v55, %v3344_v15  ;;  %v3333_v25 = vadd.f32 %v3994_v21, %v3332_v16 }
 0x9be   :  { %3997 = vtanh.f32 %v6416_v23  ;;  %v3337_v20 = vsel %vm3336_vm6, %v3994_v21, %v3333_v25 }
 0x9bf   :  { %v3342_v41 = vsel %vm3339_vm7, %v3341_v22, %v3337_v20 }
 0x9c4   :  { %v3998_v56 = vpop.eup %3997 }
 0x9c5   :  { %v3348_v48 = vmul.f32 %v3998_v56, %v3342_v41 }
 0x9c7   :  { %3369 = vmatmul.f32.vlgmr.msra.gmra.mxu0 %v3348_v48  ;;  %3389 = vmatmul.f32.vlgmr.msra.gmra.mxu1 %v3348_v48 }
 0x9c8   :  { %3409 = vmatmul.f32.vlgmr.msra.gmra.mxu2 %v3348_v48  ;;  %3429 = vmatmul.f32.vlgmr.msra.gmra.mxu3 %v3348_v48 }
 0xa44   :  { %v3370_v7 = vpop.f32.mrf.mxu0  ;;  %v3390_v27 = vpop.f32.mrf.mxu1 }
 0xa45   :  { %v3433_v50 = vadd.f32 %v3370_v7, %v2219_v34  ;;  %v3434_v4 = vadd.f32 %v3390_v27, %v2260_v38  ;;  %v3664_v38 = vld [vmem:[%s6501_s7 + $0x68] sm:$0xff]  ;;  %v3663_v7 = vld [vmem:[%s6501_s7 + $0x60] sm:$0xff]  ;;  %v3662_v27 = vld [vmem:[%s6501_s7 + $0x58] sm:$0xff] }
 0xa47   :  { %v3760_v30 = vmul.f32 -1.442695, %v3433_v50  ;;  %v3761_v11 = vmul.f32 -1.442695, %v3434_v4  ;;  %v3661_v50 = vld [vmem:[%s6501_s7 + $0x50] sm:$0xff]  ;;  %v3660_v4 = vld [vmem:[%s6501_s7 + $0x48] sm:$0xff] }
 0xa49   :  { %3999 = vpow2.f32 %v3760_v30  ;;  %v3659_v30 = vld [vmem:[%s6501_s7 + $0x40] sm:$0xff] }
 0xa4a   :  { %4001 = vpow2.f32 %v3761_v11  ;;  %v3658_v11 = vld [vmem:[%s6501_s7 + $0x38] sm:$0xff] }
 0xa4b   :  { %v3430_v36 = vpop.f32.mrf.mxu3  ;;  %v3410_v35 = vpop.f32.mrf.mxu2 }
 0xa4c   :  { %v3436_v43 = vadd.f32 %v3430_v36, %v2342_v39  ;;  %v3435_v42 = vadd.f32 %v3410_v35, %v2301_v24  ;;  %v2222_v39 = vadd.f32 %v7073_v37, %v7061_v13  ;;  %v7074_v36 = vld [vmem:[#allocation64_spill] sm:$0xff]  ;;  %v3656_v35 = vld [vmem:[%s6501_s7 + $0x28] sm:$0xff]  ;;  %v3655_v13 = vld [vmem:[%s6501_s7 + $0x20] sm:$0xff] }
 0xa4d   :  { %v7075_v24 = vld [vmem:[#allocation68_spill] sm:$0xff] }
 0xa4e   :  { %v3762_v31 = vmul.f32 -1.442695, %v3436_v43  ;;  %v2263_v43 = vadd.f32 %v7074_v36, %v7063_v51  ;;  %v3654_v51 = vld [vmem:[%s6501_s7 + $0x18] sm:$0xff] }
 0xa4f   :  { %v4000_v60 = vpop.eup %3999 }
 0xa50   :  { %v4002_v45 = vpop.eup %4001  ;;  %v3440_v63 = vadd.f32 1.0, %v4000_v60  ;;  %4003 = vpow2.f32 %v3762_v31 }
 0xa51   :  { %v3459_v61 = vadd.f32 1.0, %v4002_v45  ;;  %v3657_v45 = vld [vmem:[%s6501_s7 + $0x30] sm:$0xff] }
 0xa52   :  { %4005 = vrcp.f32 %v3440_v63  ;;  %v3452_v12 = vand.u32 2147483648, %v3440_v63  ;;  %v3450_v17 = vand.u32 2147483647, %v3440_v63  ;;  %vm3446_vm10 = vweird.f32 %v3440_v63 }
 0xa53   :  { %4007 = vrcp.f32 %v3459_v61  ;;  %v3471_v49 = vand.u32 2147483648, %v3459_v61  ;;  %v3469_v21 = vand.u32 2147483647, %v3459_v61  ;;  %vm3465_vm11 = vweird.f32 %v3459_v61 }
 0xa54   :  { %v3453_v18 = vor.u32 1.1754944e-38, %v3452_v12  ;;  %vm3451_vm14 = vcmp.eq.f32.partialorder %v3450_v17, 8.507059e+37 }
 0xa55   :  { %v3472_v53 = vor.u32 1.1754944e-38, %v3471_v49  ;;  %vm3470_vm15 = vcmp.eq.f32.partialorder %v3469_v21, 8.507059e+37 }
 0xa56   :  { %v4004_v10 = vpop.eup %4003 }
 0xa57   :  { %v3479_v47 = vadd.f32 1.0, %v4004_v10 }
 0xa58   :  { %v4006_v62 = vpop.eup %4005 }
 0xa59   :  { %v4008_v40 = vpop.eup %4007  ;;  %v3442_v1 = vmul.f32 %v4006_v62, %v3440_v63  ;;  %4009 = vrcp.f32 %v3479_v47  ;;  %vm3447_vm8 = vweird.f32 %v4006_v62  ;;  %v3491_v20 = vand.u32 2147483648, %v3479_v47 }
 0xa5a   :  { %v3461_v33 = vmul.f32 %v4008_v40, %v3459_v61  ;;  %4011 = vtanh.f32 %v3435_v42  ;;  %vm3466_vm9 = vweird.f32 %v4008_v40  ;;  %vm3448_vm12 = vmor %vm3446_vm10, %vm3447_vm8  ;;  %vm3485_vm1 = vweird.f32 %v3479_v47 }
 0xa5b   :  { %v3443_v26 = vsub.f32 1.0, %v3442_v1  ;;  %vm3467_vm13 = vmor %vm3465_vm11, %vm3466_vm9  ;;  %v3489_v22 = vand.u32 2147483647, %v3479_v47  ;;  %v3492_v41 = vor.u32 1.1754944e-38, %v3491_v20  ;;  %v3652_v1 = vld [vmem:[%s6501_s7 + $0x8] sm:$0xff] }
 0xa5c   :  { %v3462_v57 = vsub.f32 1.0, %v3461_v33 }
 0xa5d   :  { %v3444_v14 = vmul.f32 %v4006_v62, %v3443_v26  ;;  %vm3490_vm3 = vcmp.eq.f32.partialorder %v3489_v22, 8.507059e+37  ;;  %v3651_v26 = vld [vmem:[%s6501_s7] sm:$0xff] }
 0xa5e   :  { %v3463_v44 = vmul.f32 %v4008_v40, %v3462_v57 }
 0xa5f   :  { %v4010_v54 = vpop.eup %4009  ;;  %v3445_v0 = vadd.f32 %v4006_v62, %v3444_v14 }
 0xa60   :  { %v3464_v6 = vadd.f32 %v4008_v40, %v3463_v44  ;;  %v3481_v29 = vmul.f32 %v4010_v54, %v3479_v47  ;;  %v4012_v52 = vpop.eup %4011  ;;  %vm3486_vm0 = vweird.f32 %v4010_v54  ;;  %v2345_v47 = vadd.f32 %v7075_v24, %v7065_v59  ;;  %v7076_v44 = vld [vmem:[#allocation70_spill] sm:$0xff] }
 0xa61   :  { %v3449_v5 = vsel %vm3448_vm12, %v4006_v62, %v3445_v0  ;;  %vm3487_vm2 = vmor %vm3485_vm1, %vm3486_vm0  ;;  %v3653_v62 = vld [vmem:[%s6501_s7 + $0x10] sm:$0xff]  ;;  %v2304_v21 = vadd.f32 %v7076_v44, %v7067_v2 }
 0xa62   :  { %v3454_v9 = vsel %vm3451_vm14, %v3453_v18, %v3449_v5  ;;  %v3468_v28 = vsel %vm3467_vm13, %v4008_v40, %v3464_v6  ;;  %v3482_v19 = vsub.f32 1.0, %v3481_v29 }
 0xa63   :  { %v3473_v55 = vsel %vm3470_vm15, %v3472_v53, %v3468_v28  ;;  %v3496_v15 = vmul.f32 %v4012_v52, %v3454_v9 }
 0xa64   :  { %v3495_v16 = vmul.f32 %v3473_v55, %v6416_v23  ;;  %v3483_v25 = vmul.f32 %v4010_v54, %v3482_v19  ;;  %v3666_v23 = vld [vmem:[%s6501_s7 + $0x78] sm:$0xff] }
 0xa65   :  { %3671 = vmatpush.msra.mxu0 %v3666_v23 }
 0xa66   :  { %v6428_v8 = vadd.f32 %v3496_v15, %v3495_v16  ;;  %v3484_v46 = vadd.f32 %v4010_v54, %v3483_v25 }
 0xa67   :  { %3672 = vmatpush.msra.mxu0 %v3665_v58 }
 0xa68   :  { %4013 = vtanh.f32 %v6428_v8  ;;  %v3488_v56 = vsel %vm3487_vm2, %v4010_v54, %v3484_v46 }
 0xa69   :  { %v3493_v3 = vsel %vm3490_vm3, %v3492_v41, %v3488_v56  ;;  %3673 = vmatpush.msra.mxu0 %v3664_v38 }
 0xa6b   :  { %3674 = vmatpush.msra.mxu0 %v3663_v7 }
 0xa6d   :  { %3675 = vmatpush.msra.mxu0 %v3662_v27 }
 0xa6e   :  { %v4014_v48 = vpop.eup %4013 }
 0xa6f   :  { %v3499_v34 = vmul.f32 %v4014_v48, %v3493_v3  ;;  %3676 = vmatpush.msra.mxu0 %v3661_v50 }
 0xa71   :  { %3520 = vmatmul.f32.vlgmr.msrb.gmra.mxu0 %v3499_v34  ;;  %3540 = vmatmul.f32.vlgmr.msrb.gmra.mxu1 %v3499_v34 }
 0xa72   :  { %3560 = vmatmul.f32.vlgmr.msrb.gmra.mxu2 %v3499_v34  ;;  %3580 = vmatmul.f32.vlgmr.msrb.gmra.mxu3 %v3499_v34 }
 0xa73   :  { %3677 = vmatpush.msra.mxu0 %v3660_v4 }
 0xa75   :  { %3678 = vmatpush.msra.mxu0 %v3659_v30 }
 0xa77   :  { %3679 = vmatpush.msra.mxu0 %v3658_v11 }
 0xa79   :  { %3680 = vmatpush.msra.mxu0 %v3657_v45 }
 0xa7b   :  { %3681 = vmatpush.msra.mxu0 %v3656_v35 }
 0xa7d   :  { %3682 = vmatpush.msra.mxu0 %v3655_v13 }
 0xa7f   :  { %3683 = vmatpush.msra.mxu0 %v3654_v51 }
 0xa81   :  { %3684 = vmatpush.msra.mxu0 %v3653_v62 }
 0xa83   :  { %3685 = vmatpush.msra.mxu0 %v3652_v1 }
 0xa85   :  { %3686 = vmatpush.msra.mxu0 %v3651_v26 }
 0xaee   :  { %v3521_v31 = vpop.f32.mrf.mxu0  ;;  %v3541_v60 = vpop.f32.mrf.mxu1 }
 0xaef   :  { %v3584_v63 = vadd.f32 %v3521_v31, %v2222_v39  ;;  %v3585_v61 = vadd.f32 %v3541_v60, %v2263_v43 }
 0xaf1   :  { %v3763_v10 = vmul.f32 -1.442695, %v3584_v63  ;;  %v3764_v32 = vmul.f32 -1.442695, %v3585_v61 }
 0xaf3   :  { %4015 = vpow2.f32 %v3763_v10 }
 0xaf4   :  { %4017 = vpow2.f32 %v3764_v32 }
 0xaf5   :  { %v3581_v42 = vpop.f32.mrf.mxu3  ;;  %v3561_v14 = vpop.f32.mrf.mxu2 }
 0xaf6   :  { %v3587_v40 = vadd.f32 %v3581_v42, %v2345_v47  ;;  %v3586_v18 = vadd.f32 %v3561_v14, %v2304_v21 }
 0xaf8   :  { %v3765_v33 = vmul.f32 -1.442695, %v3587_v40 }
 0xaf9   :  { %v4016_v57 = vpop.eup %4015 }
 0xafa   :  { %v4018_v59 = vpop.eup %4017  ;;  %v3591_v12 = vadd.f32 1.0, %v4016_v57  ;;  %4019 = vpow2.f32 %v3765_v33 }
 0xafb   :  { %v3610_v49 = vadd.f32 1.0, %v4018_v59 }
 0xafc   :  { %4021 = vrcp.f32 %v3591_v12  ;;  %v3603_v9 = vand.u32 2147483648, %v3591_v12  ;;  %v3601_v55 = vand.u32 2147483647, %v3591_v12  ;;  %vm3597_vm6 = vweird.f32 %v3591_v12 }
 0xafd   :  { %4023 = vrcp.f32 %v3610_v49  ;;  %v3622_v28 = vand.u32 2147483648, %v3610_v49  ;;  %v3620_v16 = vand.u32 2147483647, %v3610_v49  ;;  %vm3616_vm7 = vweird.f32 %v3610_v49 }
 0xafe   :  { %v3604_v46 = vor.u32 1.1754944e-38, %v3603_v9  ;;  %vm3602_vm10 = vcmp.eq.f32.partialorder %v3601_v55, 8.507059e+37 }
 0xaff   :  { %v3623_v56 = vor.u32 1.1754944e-38, %v3622_v28  ;;  %vm3621_vm11 = vcmp.eq.f32.partialorder %v3620_v16, 8.507059e+37 }
 0xb00   :  { %v4020_v17 = vpop.eup %4019 }
 0xb01   :  { %v3630_v54 = vadd.f32 1.0, %v4020_v17 }
 0xb02   :  { %v4022_v0 = vpop.eup %4021 }
 0xb03   :  { %v4024_v6 = vpop.eup %4023  ;;  %v3593_v29 = vmul.f32 %v4022_v0, %v3591_v12  ;;  %4025 = vrcp.f32 %v3630_v54  ;;  %vm3598_vm4 = vweird.f32 %v4022_v0  ;;  %v3642_v30 = vand.u32 2147483648, %v3630_v54 }
 0xb04   :  { %v3612_v53 = vmul.f32 %v4024_v6, %v3610_v49  ;;  %4027 = vtanh.f32 %v3586_v18  ;;  %vm3617_vm5 = vweird.f32 %v4024_v6  ;;  %vm3599_vm8 = vmor %vm3597_vm6, %vm3598_vm4  ;;  %vm3636_vm13 = vweird.f32 %v3630_v54 }
 0xb05   :  { %v3594_v5 = vsub.f32 1.0, %v3593_v29  ;;  %vm3618_vm9 = vmor %vm3616_vm7, %vm3617_vm5  ;;  %v3640_v11 = vand.u32 2147483647, %v3630_v54  ;;  %v3643_v39 = vor.u32 1.1754944e-38, %v3642_v30 }
 0xb06   :  { %v3613_v52 = vsub.f32 1.0, %v3612_v53 }
 0xb07   :  { %v3595_v19 = vmul.f32 %v4022_v0, %v3594_v5  ;;  %vm3641_vm15 = vcmp.eq.f32.partialorder %v3640_v11, 8.507059e+37 }
 0xb08   :  { %v3614_v15 = vmul.f32 %v4024_v6, %v3613_v52 }
 0xb09   :  { %v4026_v25 = vpop.eup %4025  ;;  %v3596_v2 = vadd.f32 %v4022_v0, %v3595_v19 }
 0xb0a   :  { %v3615_v20 = vadd.f32 %v4024_v6, %v3614_v15  ;;  %v3632_v22 = vmul.f32 %v4026_v25, %v3630_v54  ;;  %v4028_v48 = vpop.eup %4027  ;;  %vm3637_vm12 = vweird.f32 %v4026_v25 }
 0xb0b   :  { %v3600_v41 = vsel %vm3599_vm8, %v4022_v0, %v3596_v2  ;;  %vm3638_vm14 = vmor %vm3636_vm13, %vm3637_vm12 }
 0xb0c   :  { %v3605_v3 = vsel %vm3602_vm10, %v3604_v46, %v3600_v41  ;;  %v3619_v34 = vsel %vm3618_vm9, %v4024_v6, %v3615_v20  ;;  %v3633_v23 = vsub.f32 1.0, %v3632_v22 }
 0xb0d   :  { %v3624_v58 = vsel %vm3621_vm11, %v3623_v56, %v3619_v34  ;;  %v3647_v38 = vmul.f32 %v4028_v48, %v3605_v3 }
 0xb0e   :  { %v3646_v7 = vmul.f32 %v3624_v58, %v6428_v8  ;;  %v3634_v27 = vmul.f32 %v4026_v25, %v3633_v23  ;;  %v3774_v8 = vld [vmem:[%s6502_s8] ss:$0 sm:$0xff] }
 0xb10   :  { %v3648_v50 = vadd.f32 %v3647_v38, %v3646_v7  ;;  %v3635_v4 = vadd.f32 %v4026_v25, %v3634_v27 }
 0xb12   :  { %4029 = vtanh.f32 %v3648_v50  ;;  %v3639_v37 = vsel %vm3638_vm14, %v4026_v25, %v3635_v4 }
 0xb13   :  { %v3644_v43 = vsel %vm3641_vm15, %v3643_v39, %v3639_v37 }
 0xb18   :  { %v4030_v36 = vpop.eup %4029 }
 0xb19   :  { %v3650_v31 = vmul.f32 %v4030_v36, %v3644_v43 }
 0xb1b   :  { %3687 = vmatmul.f32.vlgmr.msra.gmra.mxu0 %v3650_v31 }
 0xb98   :  { %v3688_v60 = vpop.f32.mrf.mxu0 }
 0xb99   :  { %v3689_v45 = vadd.f32 %v3774_v8, %v3688_v60 }
 0xb9b   :  { %v3766_v63 = vmul.f32 -1.442695, %v3689_v45 }
 0xb9d   :  { %4031 = vpow2.f32 %v3766_v63 }
 0xba3   :  { %v4032_v61 = vpop.eup %4031 }
 0xba4   :  { %v3694_v35 = vadd.f32 1.0, %v4032_v61 }
 0xba6   :  { %4033 = vrcp.f32 %v3694_v35  ;;  %v3706_v51 = vand.u32 2147483648, %v3694_v35  ;;  %v3704_v47 = vand.u32 2147483647, %v3694_v35  ;;  %vm3700_vm1 = vweird.f32 %v3694_v35 }
 0xba8   :  { %v3707_v42 = vor.u32 1.1754944e-38, %v3706_v51  ;;  %vm3705_vm3 = vcmp.eq.f32.partialorder %v3704_v47, 8.507059e+37 }
 0xbac   :  { %v4034_v10 = vpop.eup %4033 }
 0xbad   :  { %v3696_v32 = vmul.f32 %v4034_v10, %v3694_v35  ;;  %vm3701_vm0 = vweird.f32 %v4034_v10 }
 0xbae   :  { %vm3702_vm2 = vmor %vm3700_vm1, %vm3701_vm0 }
 0xbaf   :  { %v3697_v13 = vsub.f32 1.0, %v3696_v32 }
 0xbb1   :  { %v3698_v24 = vmul.f32 %v4034_v10, %v3697_v13 }
 0xbb3   :  { %v3699_v62 = vadd.f32 %v4034_v10, %v3698_v24 }
 0xbb5   :  { %v3703_v40 = vsel %vm3702_vm2, %v4034_v10, %v3699_v62 }
 0xbb6   :  { %v3708_v1 = vsel %vm3705_vm3, %v3707_v42, %v3703_v40 }
 0xbb7   :  { %3710 = vst [vmem:[%s6503_s9] sm:$0xff] %v3708_v1 }
 0xbb8   :  { %3715 = vsyncpa [#allocation5], 1 }
 0xbb9   :  { %3716 = vsyncpa [#allocation7], 1 }
 0xbba   :  { %3717 = vsyncpa [#allocation10], 1 }

</bundles_post_ra>
